<compile_context>
chip_gen: v7x
topology: tpu7x:2x2x1
jax: 0.10.0
libtpu: 0.0.40
codegen_flags: <defaults>
</compile_context>

<pallas_src>
import functools

import jax
import jax.numpy as jnp
import numpy as np
from jax.experimental import pallas as pl
from jax.experimental.pallas import tpu as pltpu


# ---------------------------------------------------------------------------
# Helpers for picking static tile sizes
# ---------------------------------------------------------------------------
def _largest_divisor_at_most(n, cap):
    for d in range(min(n, cap), 0, -1):
        if n % d == 0:
            return d
    return 1


def _row_tile(n, cap):
    # Row tile must be a multiple of 8 (sublane) unless it is the full dim.
    if n <= cap:
        return n
    for d in range(cap - cap % 8, 7, -8):
        if n % d == 0:
            return d
    return n  # fallback: full dim (prefer padding N to a multiple of 8 upstream)


def _col_tile(n, cap):
    # Column tile must be a multiple of 128 (lane) unless it is the full dim.
    if n <= cap:
        return n
    for d in range(cap - cap % 128, 127, -128):
        if n % d == 0:
            return d
    return n


# ---------------------------------------------------------------------------
# Single-buffering of grid-invariant operands (pl.Buffered(1)), probed once so
# the script degrades gracefully on Pallas builds without pipeline_mode support.
# ---------------------------------------------------------------------------
_SINGLE_BUFFER_OK = None


def _single_buffer_supported():
    global _SINGLE_BUFFER_OK
    if _SINGLE_BUFFER_OK is None:
        def _copy(x_ref, o_ref):
            o_ref[...] = x_ref[...]

        try:
            out = pl.pallas_call(
                _copy,
                grid=(1,),
                in_specs=[pl.BlockSpec((8, 128), lambda i: (0, 0),
                                       pipeline_mode=pl.Buffered(1))],
                out_specs=pl.BlockSpec((8, 128), lambda i: (0, 0)),
                out_shape=jax.ShapeDtypeStruct((8, 128), jnp.float32),
            )(jnp.zeros((8, 128), jnp.float32))
            jax.block_until_ready(out)
            _SINGLE_BUFFER_OK = True
        except Exception:
            _SINGLE_BUFFER_OK = False
    return _SINGLE_BUFFER_OK


def _invariant_spec(block_shape, index_map):
    """Spec for a grid-invariant operand: single-buffer it when supported
    (double-buffering a constant block buys zero overlap, only VMEM)."""
    if _single_buffer_supported():
        return pl.BlockSpec(block_shape, index_map, pipeline_mode=pl.Buffered(1))
    return pl.BlockSpec(block_shape, index_map)


# ---------------------------------------------------------------------------
# Row+column tiled linear kernel:  y = x @ w_t + b   (weight pre-transposed (K,O))
# Used only for fc_hy (input projections are fused into the recurrent kernel).
# ---------------------------------------------------------------------------
def _linear_kernel(x_ref, wt_ref, b_ref, o_ref):
    o_ref[...] = (
        jnp.dot(x_ref[...].astype(wt_ref.dtype), wt_ref[...],
                preferred_element_type=jnp.float32)
        + b_ref[...]
    ).astype(o_ref.dtype)


def linear_rows(x, w_t, b, *, max_row_tile=512, max_col_tile=512):
    N, K = x.shape
    O = w_t.shape[1]
    b = b.reshape(1, O).astype(jnp.float32)
    tn = _row_tile(N, max_row_tile)
    to = _col_tile(O, max_col_tile)
    nj = O // to
    # Weight/bias are grid-invariant only if there is a single column tile.
    if nj == 1:
        w_spec = _invariant_spec((K, to), lambda i, j: (0, j))
        b_spec = _invariant_spec((1, to), lambda i, j: (0, j))
    else:
        w_spec = pl.BlockSpec((K, to), lambda i, j: (0, j))
        b_spec = pl.BlockSpec((1, to), lambda i, j: (0, j))
    return pl.pallas_call(
        _linear_kernel,
        grid=(N // tn, nj),
        in_specs=[pl.BlockSpec((tn, K), lambda i, j: (i, 0)), w_spec, b_spec],
        out_specs=pl.BlockSpec((tn, to), lambda i, j: (i, j)),
        out_shape=jax.ShapeDtypeStruct((N, O), jnp.float32),
        compiler_params=pltpu.CompilerParams(
            dimension_semantics=("parallel", "parallel")),
    )(x, w_t, b)


# ---------------------------------------------------------------------------
# GRU recurrence kernel. Grid = (batch tiles ["parallel"], time chunks
# ["arbitrary"]). The layer-input projection for the whole chunk is computed
# in-kernel (one big-LHS matmul) and the hidden state is carried in VMEM scratch.
# ---------------------------------------------------------------------------
def _gru_recurrent_kernel(x_ref, h0_ref, wxzr_ref, bzr_ref, whzr_ref,
                          y_ref, ht_ref, xzr_scr, h_scr, *, unroll):
    """
    x_ref   : (T, tb, I)   layer input chunk (time-major)
    h0_ref  : (tb, H)      initial hidden state for this batch tile
    wxzr_ref: (I, 2H)      [Wxz^T | Wxr^T]   (pre-transposed, fused)
    bzr_ref : (1, 2H)      [bhz | bhr]
    whzr_ref: (H, 2H)      [Whz^T | Whr^T]   (pre-transposed, fused)
    y_ref   : (T, tb, H)   per-timestep hidden states (layer output chunk)
    ht_ref  : (tb, H)      final hidden state for this batch tile
    xzr_scr : (T, tb, 2H)  VMEM scratch for the chunk's input projections
    h_scr   : (tb, H)      VMEM hidden-state carry across time chunks
    """
    c = pl.program_id(1)                       # time-chunk index
    T, tb, I = x_ref.shape
    H = whzr_ref.shape[0]

    @pl.when(c == 0)
    def _():
        h_scr[...] = h0_ref[...]

    # Fused input projection for the whole chunk: one (T*tb, I) x (I, 2H) matmul
    # (big-LHS MXU work, no HBM intermediate). Biases are folded in here.
    x_flat = x_ref[...].reshape(T * tb, I)
    xzr_scr[...] = (
        jnp.dot(x_flat.astype(wxzr_ref.dtype), wxzr_ref[...],
                preferred_element_type=jnp.float32)
        + bzr_ref[...]
    ).reshape(T, tb, 2 * H)

    wh_zr = whzr_ref[...]        # (H, 2H) = [Whz^T | Whr^T]
    wh_r = whzr_ref[:, H:]       # (H, H)  = Whr^T (lane-aligned slice; no 2nd DMA)

    def step(t, h):
        xt = xzr_scr[t]                                        # (tb, 2H)
        zr = jax.nn.sigmoid(
            xt + jnp.dot(h.astype(wh_zr.dtype), wh_zr,
                         preferred_element_type=jnp.float32))
        zt = zr[:, :H]
        rt = zr[:, H:]
        # Candidate gate reuses the r-gate weights + bias (reference quirk).
        gt = jnp.tanh(
            xt[:, H:] + jnp.dot((rt * h).astype(wh_r.dtype), wh_r,
                                preferred_element_type=jnp.float32))
        ht = zt * (h - gt)   # == z*h + (0 - z)*g  (reference "ones = zeros" quirk)
        y_ref[t] = ht.astype(y_ref.dtype)
        return ht

    h_final = jax.lax.fori_loop(0, T, step, h_scr[...], unroll=unroll)
    h_scr[...] = h_final

    @pl.when(c == pl.num_programs(1) - 1)
    def _():
        ht_ref[...] = h_final.astype(ht_ref.dtype)


def gru_layer(x_tmajor, h0, wx_zr_t, b_zr, wh_zr_t, *, max_time_chunk=32,
              unroll=None):
    S, B, I = x_tmajor.shape
    H = wh_zr_t.shape[0]
    T = _largest_divisor_at_most(S, max_time_chunk)
    # Batch tiling: give v7x's second TensorCore independent rows when there are
    # enough sublane-aligned rows per core; otherwise a single tile (v5e/v6e).
    tb = B // 2 if (B >= 16 and B % 16 == 0) else B
    nb = B // tb
    if unroll is None:
        # Full unroll only while live vregs per unrolled step stay small;
        # otherwise partial unroll to avoid spills on the serial
        # sigmoid->matmul->tanh critical path.
        unroll = True if T * max(1, (2 * H) // 128) <= 32 else 4

    kernel = functools.partial(_gru_recurrent_kernel, unroll=unroll)
    y, h_t = pl.pallas_call(
        kernel,
        grid=(nb, S // T),
        in_specs=[
            pl.BlockSpec((T, tb, I), lambda b, c: (c, b, 0)),    # layer input chunk
            pl.BlockSpec((tb, H), lambda b, c: (b, 0)),          # h0 (tiny)
            _invariant_spec((I, 2 * H), lambda b, c: (0, 0)),    # [Wxz^T | Wxr^T]
            _invariant_spec((1, 2 * H), lambda b, c: (0, 0)),    # [bhz | bhr]
            _invariant_spec((H, 2 * H), lambda b, c: (0, 0)),    # [Whz^T | Whr^T]
        ],
        out_specs=[
            pl.BlockSpec((T, tb, H), lambda b, c: (c, b, 0)),    # per-step outputs
            pl.BlockSpec((tb, H), lambda b, c: (b, 0)),          # final hidden
        ],
        out_shape=[
            jax.ShapeDtypeStruct((S, B, H), jnp.float32),
            jax.ShapeDtypeStruct((B, H), jnp.float32),
        ],
        scratch_shapes=[
            pltpu.VMEM((T, tb, 2 * H), jnp.float32),   # chunk input projections
            pltpu.VMEM((tb, H), jnp.float32),          # hidden-state carry
        ],
        # NOTE: for large H, set vmem_limit_bytes explicitly and re-derive the
        # tiling budget against 64 MiB on v7x.
        compiler_params=pltpu.CompilerParams(
            dimension_semantics=("parallel", "arbitrary")),
    )(x_tmajor, h0, wx_zr_t, b_zr, wh_zr_t)
    return y, h_t


# ---------------------------------------------------------------------------
# Parameter init (PyTorch-Linear-style uniform), raw layout matching the module
# ---------------------------------------------------------------------------
def init_params(key, in_dim, h_dim, out_dim, n_layers):
    def lin(k, fan_in, shape):
        bound = 1.0 / np.sqrt(fan_in)
        return jax.random.uniform(k, shape, jnp.float32, -bound, bound)

    layers = []
    d = in_dim
    for i in range(n_layers):
        ks = jax.random.split(jax.random.fold_in(key, i), 10)
        layers.append(dict(
            wxz=lin(ks[0], d, (h_dim, d)),
            wxr=lin(ks[1], d, (h_dim, d)),
            wxg=lin(ks[2], d, (h_dim, d)),          # present but unused (parity)
            whz=lin(ks[3], h_dim, (h_dim, h_dim)),
            bhz=lin(ks[4], h_dim, (h_dim,)),
            whr=lin(ks[5], h_dim, (h_dim, h_dim)),
            bhr=lin(ks[6], h_dim, (h_dim,)),
            whg=lin(ks[7], h_dim, (h_dim, h_dim)),  # present but unused (parity)
            bhg=lin(ks[8], h_dim, (h_dim,)),        # present but unused (parity)
        ))
        d = h_dim
    kw, kb = jax.random.split(jax.random.fold_in(key, 10_000))
    bound = 1.0 / np.sqrt(h_dim)
    why = jax.random.uniform(kw, (out_dim, h_dim), jnp.float32, -bound, bound)
    bhy = jax.random.uniform(kb, (out_dim,), jnp.float32, -bound, bound)
    return layers, why, bhy


# One-time layout plumbing: fuse / pre-transpose weights, fold biases, pad fc_hy
# columns to a lane-dense multiple of 128. weight_dtype=bf16 for v6e/v7x.
def pack_params(raw_layers, why, bhy, *, weight_dtype=jnp.float32):
    packed = []
    for p in raw_layers:
        packed.append(dict(
            wx_zr_t=jnp.concatenate([p["wxz"], p["wxr"]], 0).T.astype(weight_dtype),
            b_zr=jnp.concatenate([p["bhz"], p["bhr"]], 0).reshape(1, -1)
                   .astype(jnp.float32),
            wh_zr_t=jnp.concatenate([p["whz"], p["whr"]], 0).T.astype(weight_dtype),
        ))
    out_dim, h_dim = why.shape
    o_pad = ((out_dim + 127) // 128) * 128
    why_p = jnp.zeros((o_pad, h_dim), jnp.float32).at[:out_dim].set(why)
    bhy_p = jnp.zeros((o_pad,), jnp.float32).at[:out_dim].set(bhy)
    head = dict(why_t=why_p.T.astype(weight_dtype),   # (H, O_pad)
                bhy=bhy_p.reshape(1, -1), out_dim=out_dim)
    return packed, head


# ---------------------------------------------------------------------------
# Forward pass (hot path in Pallas; only transposes/reshapes/stacks in JAX glue)
# ---------------------------------------------------------------------------
def multilayer_gru_forward(packed_layers, head, x_bsi, hidden_state=None, *,
                           max_time_chunk=32):
    B, S, _ = x_bsi.shape
    H = head["why_t"].shape[0]
    layer_in = jnp.transpose(x_bsi, (1, 0, 2)).astype(jnp.float32)  # (S, B, I)
    finals = []
    for k, p in enumerate(packed_layers):
        h0 = (jnp.zeros((B, H), jnp.float32) if hidden_state is None
              else hidden_state[:, k, :].astype(jnp.float32))
        layer_in, h_t = gru_layer(layer_in, h0, p["wx_zr_t"], p["b_zr"],
                                  p["wh_zr_t"], max_time_chunk=max_time_chunk)
        finals.append(h_t)
    y = linear_rows(layer_in.reshape(S * B, H), head["why_t"], head["bhy"])
    y = y.reshape(S, B, -1)[:, :, :head["out_dim"]]      # strip lane padding
    layer_output = jnp.transpose(y, (1, 0, 2))           # (B, S, O)
    hidden_out = jnp.stack(finals, axis=1)               # (B, L, H)
    return layer_output, hidden_out


# ---------------------------------------------------------------------------
# Pure-JAX reference (mirrors the PyTorch forward exactly) for validation.
# weight_dtype=bf16 mirrors the kernel's bf16-MXU-operand scheme for comparison.
# ---------------------------------------------------------------------------
def reference_forward(raw_layers, why, bhy, x, hidden_state=None,
                      weight_dtype=jnp.float32):
    f32 = weight_dtype == jnp.float32
    hp = jax.lax.Precision.HIGHEST if f32 else None
    wd = lambda w: w.astype(weight_dtype)
    cast = lambda a: a.astype(weight_dtype)
    dot = lambda a, b: jnp.dot(cast(a), wd(b).T, precision=hp,
                               preferred_element_type=jnp.float32)
    B, S, _ = x.shape
    H = why.shape[1]
    states = [jnp.zeros((B, H), jnp.float32) if hidden_state is None
              else hidden_state[:, k, :] for k in range(len(raw_layers))]
    layer_in = x
    for k, p in enumerate(raw_layers):
        h = states[k]
        outs = []
        for t in range(S):
            xt = layer_in[:, t, :]
            zt = jax.nn.sigmoid(dot(xt, p["wxz"]) + dot(h, p["whz"]) + p["bhz"])
            rt = jax.nn.sigmoid(dot(xt, p["wxr"]) + dot(h, p["whr"]) + p["bhr"])
            gt = jnp.tanh(dot(xt, p["wxr"]) + dot(rt * h, p["whr"]) + p["bhr"])
            h = zt * h + (0.0 - zt) * gt
            outs.append(h)
        layer_in = jnp.stack(outs, axis=1)
        states[k] = h
    y = jnp.einsum("bsh,oh->bso", cast(layer_in), wd(why), precision=hp,
                   preferred_element_type=jnp.float32) + bhy
    return y, jnp.stack(states, axis=1)


if __name__ == "__main__":
    # Small but lane/sublane-friendly demo shapes (H multiple of 128 keeps the
    # fused-gate slices aligned and the output stores lane-dense).
    B, S = 8, 16
    in_dim, h_dim, out_dim, n_layers = 64, 128, 64, 2

    key = jax.random.PRNGKey(0)
    k_param, k_x, k_h = jax.random.split(key, 3)
    raw_layers, why, bhy = init_params(k_param, in_dim, h_dim, out_dim, n_layers)

    x = jax.random.normal(k_x, (B, S, in_dim), jnp.float32)
    h0 = jax.random.normal(k_h, (B, n_layers, h_dim), jnp.float32)

    # --- f32 weights: tight check against the HIGHEST-precision reference -----
    packed, head = pack_params(raw_layers, why, bhy, weight_dtype=jnp.float32)
    out, h_final = multilayer_gru_forward(packed, head, x, h0)
    out = jax.block_until_ready(out)
    h_final = jax.block_until_ready(h_final)
    assert out.shape == (B, S, out_dim) and h_final.shape == (B, n_layers, h_dim)

    out_ref, h_ref = reference_forward(raw_layers, why, bhy, x, h0)
    np.testing.assert_allclose(np.asarray(out), np.asarray(out_ref),
                               atol=2e-3, rtol=2e-3)
    np.testing.assert_allclose(np.asarray(h_final), np.asarray(h_ref),
                               atol=2e-3, rtol=2e-3)

    # --- bf16 weights (v6e/v7x MXU-native, halves weight VMEM/DMA) ------------
    packed16, head16 = pack_params(raw_layers, why, bhy, weight_dtype=jnp.bfloat16)
    out16, h16 = multilayer_gru_forward(packed16, head16, x, h0)
    out16 = jax.block_until_ready(out16)
    h16 = jax.block_until_ready(h16)
    out_ref16, h_ref16 = reference_forward(raw_layers, why, bhy, x, h0,
                                           weight_dtype=jnp.bfloat16)
    np.testing.assert_allclose(np.asarray(out16), np.asarray(out_ref16),
                               atol=2e-2, rtol=2e-2)
    np.testing.assert_allclose(np.asarray(h16), np.asarray(h_ref16),
                               atol=2e-2, rtol=2e-2)

    print("KERNEL_OK")
</pallas_src>

<mosaic_0001>
module attributes {stable_mosaic.version = 11 : i64} {
  func.func @_copy(%arg0: i32, %arg1: memref<8x128xf32, #tpu.memory_space<vmem>>, %arg2: memref<8x128xf32, #tpu.memory_space<vmem>>) attributes {dimension_semantics = [#tpu.dimension_semantics<arbitrary>], iteration_bounds = array<i64: 1>, scalar_prefetch = 0 : i64, scratch_operands = 0 : i64, tpu.core_type = #tpu.core_type<tc>, window_params = [{pipeline_mode = #tpu.pipeline_mode<synchronous>, transform_indices = @transform_0, window_bounds = array<i64: 8, 128>}, {pipeline_mode = #tpu.pipeline_mode<synchronous>, transform_indices = @transform_1, window_bounds = array<i64: 8, 128>}]} {
    %c0 = arith.constant 0 : index
    %c0_0 = arith.constant 0 : index
    %0 = vector.load %arg1[%c0, %c0_0] : memref<8x128xf32, #tpu.memory_space<vmem>>, vector<8x128xf32>
    %c0_1 = arith.constant 0 : index
    %c0_2 = arith.constant 0 : index
    %1 = vector.load %arg2[%c0_1, %c0_2] : memref<8x128xf32, #tpu.memory_space<vmem>>, vector<8x128xf32>
    tpu.vector_store %arg2[%c0_1, %c0_2], %0 {strides = array<i32>} : memref<8x128xf32, #tpu.memory_space<vmem>>, vector<8x128xf32>,
    return
  }
  func.func @transform_0(%arg0: i32) -> (i32, i32) {
    %c0_i32 = arith.constant 0 : i32
    %c0_i32_0 = arith.constant 0 : i32
    %c0_i32_1 = arith.constant 0 : i32
    return %c0_i32, %c0_i32_0 : i32, i32
  }
  func.func @transform_1(%arg0: i32) -> (i32, i32) {
    %c0_i32 = arith.constant 0 : i32
    %c0_i32_0 = arith.constant 0 : i32
    %c0_i32_1 = arith.constant 0 : i32
    return %c0_i32, %c0_i32_0 : i32, i32
  }
}

module attributes {stable_mosaic.version = 11 : i64} {
  func.func @_gru_recurrent_kernel(%arg0: i32, %arg1: i32, %arg2: memref<16x8x64xf32, #tpu.memory_space<vmem>>, %arg3: memref<8x128xf32, #tpu.memory_space<vmem>>, %arg4: memref<64x256xf32, #tpu.memory_space<vmem>>, %arg5: memref<1x256xf32, #tpu.memory_space<vmem>>, %arg6: memref<128x256xf32, #tpu.memory_space<vmem>>, %arg7: memref<16x8x128xf32, #tpu.memory_space<vmem>>, %arg8: memref<8x128xf32, #tpu.memory_space<vmem>>, %arg9: memref<16x8x256xf32, #tpu.memory_space<vmem>>, %arg10: memref<8x128xf32, #tpu.memory_space<vmem>>) attributes {dimension_semantics = [#tpu.dimension_semantics<parallel>, #tpu.dimension_semantics<arbitrary>], iteration_bounds = array<i64: 1, 1>, scalar_prefetch = 0 : i64, scratch_operands = 2 : i64, tpu.core_type = #tpu.core_type<tc>, window_params = [{transform_indices = @transform_0, window_bounds = array<i64: 16, 8, 64>}, {transform_indices = @transform_1, window_bounds = array<i64: 8, 128>}, {pipeline_mode = #tpu.pipeline_mode<synchronous>, transform_indices = @transform_2, window_bounds = array<i64: 64, 256>}, {pipeline_mode = #tpu.pipeline_mode<synchronous>, transform_indices = @transform_3, window_bounds = array<i64: 1, 256>}, {pipeline_mode = #tpu.pipeline_mode<synchronous>, transform_indices = @transform_4, window_bounds = array<i64: 128, 256>}, {transform_indices = @transform_5, window_bounds = array<i64: 16, 8, 128>}, {transform_indices = @transform_6, window_bounds = array<i64: 8, 128>}]} {
    %c0_i32 = arith.constant 0 : i32
    %0 = arith.cmpi eq, %arg1, %c0_i32 : i32
    %1 = arith.extui %0 : i1 to i32
    %c0_i32_0 = arith.constant 0 : i32
    %2 = arith.cmpi ne, %1, %c0_i32_0 : i32
    scf.if %2 {
      %c0_132 = arith.constant 0 : index
      %c0_133 = arith.constant 0 : index
      %387 = vector.load %arg3[%c0_132, %c0_133] : memref<8x128xf32, #tpu.memory_space<vmem>>, vector<8x128xf32>
      %c0_134 = arith.constant 0 : index
      %c0_135 = arith.constant 0 : index
      %388 = vector.load %arg10[%c0_134, %c0_135] : memref<8x128xf32, #tpu.memory_space<vmem>>, vector<8x128xf32>
      tpu.vector_store %arg10[%c0_134, %c0_135], %387 {strides = array<i32>} : memref<8x128xf32, #tpu.memory_space<vmem>>, vector<8x128xf32>,
    } else {
    }
    %c0 = arith.constant 0 : index
    %c0_1 = arith.constant 0 : index
    %c0_2 = arith.constant 0 : index
    %3 = vector.load %arg2[%c0, %c0_1, %c0_2] : memref<16x8x64xf32, #tpu.memory_space<vmem>>, vector<16x8x64xf32>
    %4 = vector.shape_cast %3 : vector<16x8x64xf32> to vector<128x64xf32>
    %c0_3 = arith.constant 0 : index
    %c0_4 = arith.constant 0 : index
    %5 = vector.load %arg4[%c0_3, %c0_4] : memref<64x256xf32, #tpu.memory_space<vmem>>, vector<64x256xf32>
    %cst = arith.constant dense<0.000000e+00> : vector<128x256xf32>
    %6 = tpu.matmul %4, %5, %cst {dimension_numbers = #tpu.dot_dimension_numbers<[1], [0], [0], [1], [0, 0, 1, 1], [], []>} : vector<128x64xf32>, vector<64x256xf32>, vector<128x256xf32> -> vector<128x256xf32>
    %c0_5 = arith.constant 0 : index
    %c0_6 = arith.constant 0 : index
    %7 = vector.load %arg5[%c0_5, %c0_6] : memref<1x256xf32, #tpu.memory_space<vmem>>, vector<1x256xf32>
    %8 = vector.broadcast %7 : vector<1x256xf32> to vector<128x256xf32>
    %9 = arith.addf %6, %8 : vector<128x256xf32>
    %10 = vector.shape_cast %9 : vector<128x256xf32> to vector<16x8x256xf32>
    %c0_7 = arith.constant 0 : index
    %c0_8 = arith.constant 0 : index
    %c0_9 = arith.constant 0 : index
    %11 = vector.load %arg9[%c0_7, %c0_8, %c0_9] : memref<16x8x256xf32, #tpu.memory_space<vmem>>, vector<16x8x256xf32>
    tpu.vector_store %arg9[%c0_7, %c0_8, %c0_9], %10 {strides = array<i32>} : memref<16x8x256xf32, #tpu.memory_space<vmem>>, vector<16x8x256xf32>,
    %c0_10 = arith.constant 0 : index
    %c0_11 = arith.constant 0 : index
    %12 = vector.load %arg6[%c0_10, %c0_11] : memref<128x256xf32, #tpu.memory_space<vmem>>, vector<128x256xf32>
    %c0_12 = arith.constant 0 : index
    %c128 = arith.constant 128 : index
    %13 = vector.load %arg6[%c0_12, %c128] : memref<128x256xf32, #tpu.memory_space<vmem>>, vector<128x128xf32>
    %c0_13 = arith.constant 0 : index
    %c0_14 = arith.constant 0 : index
    %14 = vector.load %arg10[%c0_13, %c0_14] : memref<8x128xf32, #tpu.memory_space<vmem>>, vector<8x128xf32>
    %c0_i32_15 = arith.constant 0 : i32
    %15 = arith.index_cast %c0_i32_15 : i32 to index
    %c0_16 = arith.constant 0 : index
    %c0_17 = arith.constant 0 : index
    %16 = vector.load %arg9[%15, %c0_16, %c0_17] : memref<16x8x256xf32, #tpu.memory_space<vmem>>, vector<1x8x256xf32>
    %17 = vector.shape_cast %16 : vector<1x8x256xf32> to vector<8x256xf32>
    %cst_18 = arith.constant dense<0.000000e+00> : vector<8x256xf32>
    %18 = tpu.matmul %14, %12, %cst_18 {dimension_numbers = #tpu.dot_dimension_numbers<[1], [0], [0], [1], [0, 0, 1, 1], [], []>} : vector<8x128xf32>, vector<128x256xf32>, vector<8x256xf32> -> vector<8x256xf32>
    %19 = arith.addf %17, %18 : vector<8x256xf32>
    %20 = arith.negf %19 : vector<8x256xf32>
    %21 = math.exp %20 : vector<8x256xf32>
    %cst_19 = arith.constant 1.000000e+00 : f32
    %22 = vector.broadcast %cst_19 : f32 to vector<8x256xf32>
    %23 = arith.addf %22, %21 : vector<8x256xf32>
    %24 = arith.divf %22, %23 : vector<8x256xf32>
    %25 = vector.extract_strided_slice %24 {offsets = [0, 0], sizes = [8, 128], strides = [1, 1]} : vector<8x256xf32> to vector<8x128xf32>
    %26 = vector.extract_strided_slice %24 {offsets = [0, 128], sizes = [8, 128], strides = [1, 1]} : vector<8x256xf32> to vector<8x128xf32>
    %27 = vector.extract_strided_slice %17 {offsets = [0, 128], sizes = [8, 128], strides = [1, 1]} : vector<8x256xf32> to vector<8x128xf32>
    %28 = arith.mulf %26, %14 : vector<8x128xf32>
    %cst_20 = arith.constant dense<0.000000e+00> : vector<8x128xf32>
    %29 = tpu.matmul %28, %13, %cst_20 {dimension_numbers = #tpu.dot_dimension_numbers<[1], [0], [0], [1], [0, 0, 1, 1], [], []>} : vector<8x128xf32>, vector<128x128xf32>, vector<8x128xf32> -> vector<8x128xf32>
    %30 = arith.addf %27, %29 : vector<8x128xf32>
    %31 = math.tanh %30 : vector<8x128xf32>
    %32 = arith.subf %14, %31 : vector<8x128xf32>
    %33 = arith.mulf %25, %32 : vector<8x128xf32>
    %34 = arith.index_cast %c0_i32_15 : i32 to index
    %c0_21 = arith.constant 0 : index
    %c0_22 = arith.constant 0 : index
    %35 = vector.load %arg7[%34, %c0_21, %c0_22] : memref<16x8x128xf32, #tpu.memory_space<vmem>>, vector<1x8x128xf32>
    %36 = vector.shape_cast %35 : vector<1x8x128xf32> to vector<8x128xf32>
    %37 = vector.shape_cast %33 : vector<8x128xf32> to vector<1x8x128xf32>
    tpu.vector_store %arg7[%34, %c0_21, %c0_22], %37 {strides = array<i32>} : memref<16x8x128xf32, #tpu.memory_space<vmem>>, vector<1x8x128xf32>,
    %c1_i32 = arith.constant 1 : i32
    %38 = arith.index_cast %c1_i32 : i32 to index
    %c0_23 = arith.constant 0 : index
    %c0_24 = arith.constant 0 : index
    %39 = vector.load %arg9[%38, %c0_23, %c0_24] : memref<16x8x256xf32, #tpu.memory_space<vmem>>, vector<1x8x256xf32>
    %40 = vector.shape_cast %39 : vector<1x8x256xf32> to vector<8x256xf32>
    %cst_25 = arith.constant dense<0.000000e+00> : vector<8x256xf32>
    %41 = tpu.matmul %33, %12, %cst_25 {dimension_numbers = #tpu.dot_dimension_numbers<[1], [0], [0], [1], [0, 0, 1, 1], [], []>} : vector<8x128xf32>, vector<128x256xf32>, vector<8x256xf32> -> vector<8x256xf32>
    %42 = arith.addf %40, %41 : vector<8x256xf32>
    %43 = arith.negf %42 : vector<8x256xf32>
    %44 = math.exp %43 : vector<8x256xf32>
    %cst_26 = arith.constant 1.000000e+00 : f32
    %45 = vector.broadcast %cst_26 : f32 to vector<8x256xf32>
    %46 = arith.addf %45, %44 : vector<8x256xf32>
    %47 = arith.divf %45, %46 : vector<8x256xf32>
    %48 = vector.extract_strided_slice %47 {offsets = [0, 0], sizes = [8, 128], strides = [1, 1]} : vector<8x256xf32> to vector<8x128xf32>
    %49 = vector.extract_strided_slice %47 {offsets = [0, 128], sizes = [8, 128], strides = [1, 1]} : vector<8x256xf32> to vector<8x128xf32>
    %50 = vector.extract_strided_slice %40 {offsets = [0, 128], sizes = [8, 128], strides = [1, 1]} : vector<8x256xf32> to vector<8x128xf32>
    %51 = arith.mulf %49, %33 : vector<8x128xf32>
    %cst_27 = arith.constant dense<0.000000e+00> : vector<8x128xf32>
    %52 = tpu.matmul %51, %13, %cst_27 {dimension_numbers = #tpu.dot_dimension_numbers<[1], [0], [0], [1], [0, 0, 1, 1], [], []>} : vector<8x128xf32>, vector<128x128xf32>, vector<8x128xf32> -> vector<8x128xf32>
    %53 = arith.addf %50, %52 : vector<8x128xf32>
    %54 = math.tanh %53 : vector<8x128xf32>
    %55 = arith.subf %33, %54 : vector<8x128xf32>
    %56 = arith.mulf %48, %55 : vector<8x128xf32>
    %57 = arith.index_cast %c1_i32 : i32 to index
    %c0_28 = arith.constant 0 : index
    %c0_29 = arith.constant 0 : index
    %58 = vector.load %arg7[%57, %c0_28, %c0_29] : memref<16x8x128xf32, #tpu.memory_space<vmem>>, vector<1x8x128xf32>
    %59 = vector.shape_cast %58 : vector<1x8x128xf32> to vector<8x128xf32>
    %60 = vector.shape_cast %56 : vector<8x128xf32> to vector<1x8x128xf32>
    tpu.vector_store %arg7[%57, %c0_28, %c0_29], %60 {strides = array<i32>} : memref<16x8x128xf32, #tpu.memory_space<vmem>>, vector<1x8x128xf32>,
    %c2_i32 = arith.constant 2 : i32
    %61 = arith.index_cast %c2_i32 : i32 to index
    %c0_30 = arith.constant 0 : index
    %c0_31 = arith.constant 0 : index
    %62 = vector.load %arg9[%61, %c0_30, %c0_31] : memref<16x8x256xf32, #tpu.memory_space<vmem>>, vector<1x8x256xf32>
    %63 = vector.shape_cast %62 : vector<1x8x256xf32> to vector<8x256xf32>
    %cst_32 = arith.constant dense<0.000000e+00> : vector<8x256xf32>
    %64 = tpu.matmul %56, %12, %cst_32 {dimension_numbers = #tpu.dot_dimension_numbers<[1], [0], [0], [1], [0, 0, 1, 1], [], []>} : vector<8x128xf32>, vector<128x256xf32>, vector<8x256xf32> -> vector<8x256xf32>
    %65 = arith.addf %63, %64 : vector<8x256xf32>
    %66 = arith.negf %65 : vector<8x256xf32>
    %67 = math.exp %66 : vector<8x256xf32>
    %cst_33 = arith.constant 1.000000e+00 : f32
    %68 = vector.broadcast %cst_33 : f32 to vector<8x256xf32>
    %69 = arith.addf %68, %67 : vector<8x256xf32>
    %70 = arith.divf %68, %69 : vector<8x256xf32>
    %71 = vector.extract_strided_slice %70 {offsets = [0, 0], sizes = [8, 128], strides = [1, 1]} : vector<8x256xf32> to vector<8x128xf32>
    %72 = vector.extract_strided_slice %70 {offsets = [0, 128], sizes = [8, 128], strides = [1, 1]} : vector<8x256xf32> to vector<8x128xf32>
    %73 = vector.extract_strided_slice %63 {offsets = [0, 128], sizes = [8, 128], strides = [1, 1]} : vector<8x256xf32> to vector<8x128xf32>
    %74 = arith.mulf %72, %56 : vector<8x128xf32>
    %cst_34 = arith.constant dense<0.000000e+00> : vector<8x128xf32>
    %75 = tpu.matmul %74, %13, %cst_34 {dimension_numbers = #tpu.dot_dimension_numbers<[1], [0], [0], [1], [0, 0, 1, 1], [], []>} : vector<8x128xf32>, vector<128x128xf32>, vector<8x128xf32> -> vector<8x128xf32>
    %76 = arith.addf %73, %75 : vector<8x128xf32>
    %77 = math.tanh %76 : vector<8x128xf32>
    %78 = arith.subf %56, %77 : vector<8x128xf32>
    %79 = arith.mulf %71, %78 : vector<8x128xf32>
    %80 = arith.index_cast %c2_i32 : i32 to index
    %c0_35 = arith.constant 0 : index
    %c0_36 = arith.constant 0 : index
    %81 = vector.load %arg7[%80, %c0_35, %c0_36] : memref<16x8x128xf32, #tpu.memory_space<vmem>>, vector<1x8x128xf32>
    %82 = vector.shape_cast %81 : vector<1x8x128xf32> to vector<8x128xf32>
    %83 = vector.shape_cast %79 : vector<8x128xf32> to vector<1x8x128xf32>
    tpu.vector_store %arg7[%80, %c0_35, %c0_36], %83 {strides = array<i32>} : memref<16x8x128xf32, #tpu.memory_space<vmem>>, vector<1x8x128xf32>,
    %c3_i32 = arith.constant 3 : i32
    %84 = arith.index_cast %c3_i32 : i32 to index
    %c0_37 = arith.constant 0 : index
    %c0_38 = arith.constant 0 : index
    %85 = vector.load %arg9[%84, %c0_37, %c0_38] : memref<16x8x256xf32, #tpu.memory_space<vmem>>, vector<1x8x256xf32>
    %86 = vector.shape_cast %85 : vector<1x8x256xf32> to vector<8x256xf32>
    %cst_39 = arith.constant dense<0.000000e+00> : vector<8x256xf32>
    %87 = tpu.matmul %79, %12, %cst_39 {dimension_numbers = #tpu.dot_dimension_numbers<[1], [0], [0], [1], [0, 0, 1, 1], [], []>} : vector<8x128xf32>, vector<128x256xf32>, vector<8x256xf32> -> vector<8x256xf32>
    %88 = arith.addf %86, %87 : vector<8x256xf32>
    %89 = arith.negf %88 : vector<8x256xf32>
    %90 = math.exp %89 : vector<8x256xf32>
    %cst_40 = arith.constant 1.000000e+00 : f32
    %91 = vector.broadcast %cst_40 : f32 to vector<8x256xf32>
    %92 = arith.addf %91, %90 : vector<8x256xf32>
    %93 = arith.divf %91, %92 : vector<8x256xf32>
    %94 = vector.extract_strided_slice %93 {offsets = [0, 0], sizes = [8, 128], strides = [1, 1]} : vector<8x256xf32> to vector<8x128xf32>
    %95 = vector.extract_strided_slice %93 {offsets = [0, 128], sizes = [8, 128], strides = [1, 1]} : vector<8x256xf32> to vector<8x128xf32>
    %96 = vector.extract_strided_slice %86 {offsets = [0, 128], sizes = [8, 128], strides = [1, 1]} : vector<8x256xf32> to vector<8x128xf32>
    %97 = arith.mulf %95, %79 : vector<8x128xf32>
    %cst_41 = arith.constant dense<0.000000e+00> : vector<8x128xf32>
    %98 = tpu.matmul %97, %13, %cst_41 {dimension_numbers = #tpu.dot_dimension_numbers<[1], [0], [0], [1], [0, 0, 1, 1], [], []>} : vector<8x128xf32>, vector<128x128xf32>, vector<8x128xf32> -> vector<8x128xf32>
    %99 = arith.addf %96, %98 : vector<8x128xf32>
    %100 = math.tanh %99 : vector<8x128xf32>
    %101 = arith.subf %79, %100 : vector<8x128xf32>
    %102 = arith.mulf %94, %101 : vector<8x128xf32>
    %103 = arith.index_cast %c3_i32 : i32 to index
    %c0_42 = arith.constant 0 : index
    %c0_43 = arith.constant 0 : index
    %104 = vector.load %arg7[%103, %c0_42, %c0_43] : memref<16x8x128xf32, #tpu.memory_space<vmem>>, vector<1x8x128xf32>
    %105 = vector.shape_cast %104 : vector<1x8x128xf32> to vector<8x128xf32>
    %106 = vector.shape_cast %102 : vector<8x128xf32> to vector<1x8x128xf32>
    tpu.vector_store %arg7[%103, %c0_42, %c0_43], %106 {strides = array<i32>} : memref<16x8x128xf32, #tpu.memory_space<vmem>>, vector<1x8x128xf32>,
    %c4_i32 = arith.constant 4 : i32
    %107 = arith.index_cast %c4_i32 : i32 to index
    %c0_44 = arith.constant 0 : index
    %c0_45 = arith.constant 0 : index
    %108 = vector.load %arg9[%107, %c0_44, %c0_45] : memref<16x8x256xf32, #tpu.memory_space<vmem>>, vector<1x8x256xf32>
    %109 = vector.shape_cast %108 : vector<1x8x256xf32> to vector<8x256xf32>
    %cst_46 = arith.constant dense<0.000000e+00> : vector<8x256xf32>
    %110 = tpu.matmul %102, %12, %cst_46 {dimension_numbers = #tpu.dot_dimension_numbers<[1], [0], [0], [1], [0, 0, 1, 1], [], []>} : vector<8x128xf32>, vector<128x256xf32>, vector<8x256xf32> -> vector<8x256xf32>
    %111 = arith.addf %109, %110 : vector<8x256xf32>
    %112 = arith.negf %111 : vector<8x256xf32>
    %113 = math.exp %112 : vector<8x256xf32>
    %cst_47 = arith.constant 1.000000e+00 : f32
    %114 = vector.broadcast %cst_47 : f32 to vector<8x256xf32>
    %115 = arith.addf %114, %113 : vector<8x256xf32>
    %116 = arith.divf %114, %115 : vector<8x256xf32>
    %117 = vector.extract_strided_slice %116 {offsets = [0, 0], sizes = [8, 128], strides = [1, 1]} : vector<8x256xf32> to vector<8x128xf32>
    %118 = vector.extract_strided_slice %116 {offsets = [0, 128], sizes = [8, 128], strides = [1, 1]} : vector<8x256xf32> to vector<8x128xf32>
    %119 = vector.extract_strided_slice %109 {offsets = [0, 128], sizes = [8, 128], strides = [1, 1]} : vector<8x256xf32> to vector<8x128xf32>
    %120 = arith.mulf %118, %102 : vector<8x128xf32>
    %cst_48 = arith.constant dense<0.000000e+00> : vector<8x128xf32>
    %121 = tpu.matmul %120, %13, %cst_48 {dimension_numbers = #tpu.dot_dimension_numbers<[1], [0], [0], [1], [0, 0, 1, 1], [], []>} : vector<8x128xf32>, vector<128x128xf32>, vector<8x128xf32> -> vector<8x128xf32>
    %122 = arith.addf %119, %121 : vector<8x128xf32>
    %123 = math.tanh %122 : vector<8x128xf32>
    %124 = arith.subf %102, %123 : vector<8x128xf32>
    %125 = arith.mulf %117, %124 : vector<8x128xf32>
    %126 = arith.index_cast %c4_i32 : i32 to index
    %c0_49 = arith.constant 0 : index
    %c0_50 = arith.constant 0 : index
    %127 = vector.load %arg7[%126, %c0_49, %c0_50] : memref<16x8x128xf32, #tpu.memory_space<vmem>>, vector<1x8x128xf32>
    %128 = vector.shape_cast %127 : vector<1x8x128xf32> to vector<8x128xf32>
    %129 = vector.shape_cast %125 : vector<8x128xf32> to vector<1x8x128xf32>
    tpu.vector_store %arg7[%126, %c0_49, %c0_50], %129 {strides = array<i32>} : memref<16x8x128xf32, #tpu.memory_space<vmem>>, vector<1x8x128xf32>,
    %c5_i32 = arith.constant 5 : i32
    %130 = arith.index_cast %c5_i32 : i32 to index
    %c0_51 = arith.constant 0 : index
    %c0_52 = arith.constant 0 : index
    %131 = vector.load %arg9[%130, %c0_51, %c0_52] : memref<16x8x256xf32, #tpu.memory_space<vmem>>, vector<1x8x256xf32>
    %132 = vector.shape_cast %131 : vector<1x8x256xf32> to vector<8x256xf32>
    %cst_53 = arith.constant dense<0.000000e+00> : vector<8x256xf32>
    %133 = tpu.matmul %125, %12, %cst_53 {dimension_numbers = #tpu.dot_dimension_numbers<[1], [0], [0], [1], [0, 0, 1, 1], [], []>} : vector<8x128xf32>, vector<128x256xf32>, vector<8x256xf32> -> vector<8x256xf32>
    %134 = arith.addf %132, %133 : vector<8x256xf32>
    %135 = arith.negf %134 : vector<8x256xf32>
    %136 = math.exp %135 : vector<8x256xf32>
    %cst_54 = arith.constant 1.000000e+00 : f32
    %137 = vector.broadcast %cst_54 : f32 to vector<8x256xf32>
    %138 = arith.addf %137, %136 : vector<8x256xf32>
    %139 = arith.divf %137, %138 : vector<8x256xf32>
    %140 = vector.extract_strided_slice %139 {offsets = [0, 0], sizes = [8, 128], strides = [1, 1]} : vector<8x256xf32> to vector<8x128xf32>
    %141 = vector.extract_strided_slice %139 {offsets = [0, 128], sizes = [8, 128], strides = [1, 1]} : vector<8x256xf32> to vector<8x128xf32>
    %142 = vector.extract_strided_slice %132 {offsets = [0, 128], sizes = [8, 128], strides = [1, 1]} : vector<8x256xf32> to vector<8x128xf32>
    %143 = arith.mulf %141, %125 : vector<8x128xf32>
    %cst_55 = arith.constant dense<0.000000e+00> : vector<8x128xf32>
    %144 = tpu.matmul %143, %13, %cst_55 {dimension_numbers = #tpu.dot_dimension_numbers<[1], [0], [0], [1], [0, 0, 1, 1], [], []>} : vector<8x128xf32>, vector<128x128xf32>, vector<8x128xf32> -> vector<8x128xf32>
    %145 = arith.addf %142, %144 : vector<8x128xf32>
    %146 = math.tanh %145 : vector<8x128xf32>
    %147 = arith.subf %125, %146 : vector<8x128xf32>
    %148 = arith.mulf %140, %147 : vector<8x128xf32>
    %149 = arith.index_cast %c5_i32 : i32 to index
    %c0_56 = arith.constant 0 : index
    %c0_57 = arith.constant 0 : index
    %150 = vector.load %arg7[%149, %c0_56, %c0_57] : memref<16x8x128xf32, #tpu.memory_space<vmem>>, vector<1x8x128xf32>
    %151 = vector.shape_cast %150 : vector<1x8x128xf32> to vector<8x128xf32>
    %152 = vector.shape_cast %148 : vector<8x128xf32> to vector<1x8x128xf32>
    tpu.vector_store %arg7[%149, %c0_56, %c0_57], %152 {strides = array<i32>} : memref<16x8x128xf32, #tpu.memory_space<vmem>>, vector<1x8x128xf32>,
    %c6_i32 = arith.constant 6 : i32
    %153 = arith.index_cast %c6_i32 : i32 to index
    %c0_58 = arith.constant 0 : index
    %c0_59 = arith.constant 0 : index
    %154 = vector.load %arg9[%153, %c0_58, %c0_59] : memref<16x8x256xf32, #tpu.memory_space<vmem>>, vector<1x8x256xf32>
    %155 = vector.shape_cast %154 : vector<1x8x256xf32> to vector<8x256xf32>
    %cst_60 = arith.constant dense<0.000000e+00> : vector<8x256xf32>
    %156 = tpu.matmul %148, %12, %cst_60 {dimension_numbers = #tpu.dot_dimension_numbers<[1], [0], [0], [1], [0, 0, 1, 1], [], []>} : vector<8x128xf32>, vector<128x256xf32>, vector<8x256xf32> -> vector<8x256xf32>
    %157 = arith.addf %155, %156 : vector<8x256xf32>
    %158 = arith.negf %157 : vector<8x256xf32>
    %159 = math.exp %158 : vector<8x256xf32>
    %cst_61 = arith.constant 1.000000e+00 : f32
    %160 = vector.broadcast %cst_61 : f32 to vector<8x256xf32>
    %161 = arith.addf %160, %159 : vector<8x256xf32>
    %162 = arith.divf %160, %161 : vector<8x256xf32>
    %163 = vector.extract_strided_slice %162 {offsets = [0, 0], sizes = [8, 128], strides = [1, 1]} : vector<8x256xf32> to vector<8x128xf32>
    %164 = vector.extract_strided_slice %162 {offsets = [0, 128], sizes = [8, 128], strides = [1, 1]} : vector<8x256xf32> to vector<8x128xf32>
    %165 = vector.extract_strided_slice %155 {offsets = [0, 128], sizes = [8, 128], strides = [1, 1]} : vector<8x256xf32> to vector<8x128xf32>
    %166 = arith.mulf %164, %148 : vector<8x128xf32>
    %cst_62 = arith.constant dense<0.000000e+00> : vector<8x128xf32>
    %167 = tpu.matmul %166, %13, %cst_62 {dimension_numbers = #tpu.dot_dimension_numbers<[1], [0], [0], [1], [0, 0, 1, 1], [], []>} : vector<8x128xf32>, vector<128x128xf32>, vector<8x128xf32> -> vector<8x128xf32>
    %168 = arith.addf %165, %167 : vector<8x128xf32>
    %169 = math.tanh %168 : vector<8x128xf32>
    %170 = arith.subf %148, %169 : vector<8x128xf32>
    %171 = arith.mulf %163, %170 : vector<8x128xf32>
    %172 = arith.index_cast %c6_i32 : i32 to index
    %c0_63 = arith.constant 0 : index
    %c0_64 = arith.constant 0 : index
    %173 = vector.load %arg7[%172, %c0_63, %c0_64] : memref<16x8x128xf32, #tpu.memory_space<vmem>>, vector<1x8x128xf32>
    %174 = vector.shape_cast %173 : vector<1x8x128xf32> to vector<8x128xf32>
    %175 = vector.shape_cast %171 : vector<8x128xf32> to vector<1x8x128xf32>
    tpu.vector_store %arg7[%172, %c0_63, %c0_64], %175 {strides = array<i32>} : memref<16x8x128xf32, #tpu.memory_space<vmem>>, vector<1x8x128xf32>,
    %c7_i32 = arith.constant 7 : i32
    %176 = arith.index_cast %c7_i32 : i32 to index
    %c0_65 = arith.constant 0 : index
    %c0_66 = arith.constant 0 : index
    %177 = vector.load %arg9[%176, %c0_65, %c0_66] : memref<16x8x256xf32, #tpu.memory_space<vmem>>, vector<1x8x256xf32>
    %178 = vector.shape_cast %177 : vector<1x8x256xf32> to vector<8x256xf32>
    %cst_67 = arith.constant dense<0.000000e+00> : vector<8x256xf32>
    %179 = tpu.matmul %171, %12, %cst_67 {dimension_numbers = #tpu.dot_dimension_numbers<[1], [0], [0], [1], [0, 0, 1, 1], [], []>} : vector<8x128xf32>, vector<128x256xf32>, vector<8x256xf32> -> vector<8x256xf32>
    %180 = arith.addf %178, %179 : vector<8x256xf32>
    %181 = arith.negf %180 : vector<8x256xf32>
    %182 = math.exp %181 : vector<8x256xf32>
    %cst_68 = arith.constant 1.000000e+00 : f32
    %183 = vector.broadcast %cst_68 : f32 to vector<8x256xf32>
    %184 = arith.addf %183, %182 : vector<8x256xf32>
    %185 = arith.divf %183, %184 : vector<8x256xf32>
    %186 = vector.extract_strided_slice %185 {offsets = [0, 0], sizes = [8, 128], strides = [1, 1]} : vector<8x256xf32> to vector<8x128xf32>
    %187 = vector.extract_strided_slice %185 {offsets = [0, 128], sizes = [8, 128], strides = [1, 1]} : vector<8x256xf32> to vector<8x128xf32>
    %188 = vector.extract_strided_slice %178 {offsets = [0, 128], sizes = [8, 128], strides = [1, 1]} : vector<8x256xf32> to vector<8x128xf32>
    %189 = arith.mulf %187, %171 : vector<8x128xf32>
    %cst_69 = arith.constant dense<0.000000e+00> : vector<8x128xf32>
    %190 = tpu.matmul %189, %13, %cst_69 {dimension_numbers = #tpu.dot_dimension_numbers<[1], [0], [0], [1], [0, 0, 1, 1], [], []>} : vector<8x128xf32>, vector<128x128xf32>, vector<8x128xf32> -> vector<8x128xf32>
    %191 = arith.addf %188, %190 : vector<8x128xf32>
    %192 = math.tanh %191 : vector<8x128xf32>
    %193 = arith.subf %171, %192 : vector<8x128xf32>
    %194 = arith.mulf %186, %193 : vector<8x128xf32>
    %195 = arith.index_cast %c7_i32 : i32 to index
    %c0_70 = arith.constant 0 : index
    %c0_71 = arith.constant 0 : index
    %196 = vector.load %arg7[%195, %c0_70, %c0_71] : memref<16x8x128xf32, #tpu.memory_space<vmem>>, vector<1x8x128xf32>
    %197 = vector.shape_cast %196 : vector<1x8x128xf32> to vector<8x128xf32>
    %198 = vector.shape_cast %194 : vector<8x128xf32> to vector<1x8x128xf32>
    tpu.vector_store %arg7[%195, %c0_70, %c0_71], %198 {strides = array<i32>} : memref<16x8x128xf32, #tpu.memory_space<vmem>>, vector<1x8x128xf32>,
    %c8_i32 = arith.constant 8 : i32
    %199 = arith.index_cast %c8_i32 : i32 to index
    %c0_72 = arith.constant 0 : index
    %c0_73 = arith.constant 0 : index
    %200 = vector.load %arg9[%199, %c0_72, %c0_73] : memref<16x8x256xf32, #tpu.memory_space<vmem>>, vector<1x8x256xf32>
    %201 = vector.shape_cast %200 : vector<1x8x256xf32> to vector<8x256xf32>
    %cst_74 = arith.constant dense<0.000000e+00> : vector<8x256xf32>
    %202 = tpu.matmul %194, %12, %cst_74 {dimension_numbers = #tpu.dot_dimension_numbers<[1], [0], [0], [1], [0, 0, 1, 1], [], []>} : vector<8x128xf32>, vector<128x256xf32>, vector<8x256xf32> -> vector<8x256xf32>
    %203 = arith.addf %201, %202 : vector<8x256xf32>
    %204 = arith.negf %203 : vector<8x256xf32>
    %205 = math.exp %204 : vector<8x256xf32>
    %cst_75 = arith.constant 1.000000e+00 : f32
    %206 = vector.broadcast %cst_75 : f32 to vector<8x256xf32>
    %207 = arith.addf %206, %205 : vector<8x256xf32>
    %208 = arith.divf %206, %207 : vector<8x256xf32>
    %209 = vector.extract_strided_slice %208 {offsets = [0, 0], sizes = [8, 128], strides = [1, 1]} : vector<8x256xf32> to vector<8x128xf32>
    %210 = vector.extract_strided_slice %208 {offsets = [0, 128], sizes = [8, 128], strides = [1, 1]} : vector<8x256xf32> to vector<8x128xf32>
    %211 = vector.extract_strided_slice %201 {offsets = [0, 128], sizes = [8, 128], strides = [1, 1]} : vector<8x256xf32> to vector<8x128xf32>
    %212 = arith.mulf %210, %194 : vector<8x128xf32>
    %cst_76 = arith.constant dense<0.000000e+00> : vector<8x128xf32>
    %213 = tpu.matmul %212, %13, %cst_76 {dimension_numbers = #tpu.dot_dimension_numbers<[1], [0], [0], [1], [0, 0, 1, 1], [], []>} : vector<8x128xf32>, vector<128x128xf32>, vector<8x128xf32> -> vector<8x128xf32>
    %214 = arith.addf %211, %213 : vector<8x128xf32>
    %215 = math.tanh %214 : vector<8x128xf32>
    %216 = arith.subf %194, %215 : vector<8x128xf32>
    %217 = arith.mulf %209, %216 : vector<8x128xf32>
    %218 = arith.index_cast %c8_i32 : i32 to index
    %c0_77 = arith.constant 0 : index
    %c0_78 = arith.constant 0 : index
    %219 = vector.load %arg7[%218, %c0_77, %c0_78] : memref<16x8x128xf32, #tpu.memory_space<vmem>>, vector<1x8x128xf32>
    %220 = vector.shape_cast %219 : vector<1x8x128xf32> to vector<8x128xf32>
    %221 = vector.shape_cast %217 : vector<8x128xf32> to vector<1x8x128xf32>
    tpu.vector_store %arg7[%218, %c0_77, %c0_78], %221 {strides = array<i32>} : memref<16x8x128xf32, #tpu.memory_space<vmem>>, vector<1x8x128xf32>,
    %c9_i32 = arith.constant 9 : i32
    %222 = arith.index_cast %c9_i32 : i32 to index
    %c0_79 = arith.constant 0 : index
    %c0_80 = arith.constant 0 : index
    %223 = vector.load %arg9[%222, %c0_79, %c0_80] : memref<16x8x256xf32, #tpu.memory_space<vmem>>, vector<1x8x256xf32>
    %224 = vector.shape_cast %223 : vector<1x8x256xf32> to vector<8x256xf32>
    %cst_81 = arith.constant dense<0.000000e+00> : vector<8x256xf32>
    %225 = tpu.matmul %217, %12, %cst_81 {dimension_numbers = #tpu.dot_dimension_numbers<[1], [0], [0], [1], [0, 0, 1, 1], [], []>} : vector<8x128xf32>, vector<128x256xf32>, vector<8x256xf32> -> vector<8x256xf32>
    %226 = arith.addf %224, %225 : vector<8x256xf32>
    %227 = arith.negf %226 : vector<8x256xf32>
    %228 = math.exp %227 : vector<8x256xf32>
    %cst_82 = arith.constant 1.000000e+00 : f32
    %229 = vector.broadcast %cst_82 : f32 to vector<8x256xf32>
    %230 = arith.addf %229, %228 : vector<8x256xf32>
    %231 = arith.divf %229, %230 : vector<8x256xf32>
    %232 = vector.extract_strided_slice %231 {offsets = [0, 0], sizes = [8, 128], strides = [1, 1]} : vector<8x256xf32> to vector<8x128xf32>
    %233 = vector.extract_strided_slice %231 {offsets = [0, 128], sizes = [8, 128], strides = [1, 1]} : vector<8x256xf32> to vector<8x128xf32>
    %234 = vector.extract_strided_slice %224 {offsets = [0, 128], sizes = [8, 128], strides = [1, 1]} : vector<8x256xf32> to vector<8x128xf32>
    %235 = arith.mulf %233, %217 : vector<8x128xf32>
    %cst_83 = arith.constant dense<0.000000e+00> : vector<8x128xf32>
    %236 = tpu.matmul %235, %13, %cst_83 {dimension_numbers = #tpu.dot_dimension_numbers<[1], [0], [0], [1], [0, 0, 1, 1], [], []>} : vector<8x128xf32>, vector<128x128xf32>, vector<8x128xf32> -> vector<8x128xf32>
    %237 = arith.addf %234, %236 : vector<8x128xf32>
    %238 = math.tanh %237 : vector<8x128xf32>
    %239 = arith.subf %217, %238 : vector<8x128xf32>
    %240 = arith.mulf %232, %239 : vector<8x128xf32>
    %241 = arith.index_cast %c9_i32 : i32 to index
    %c0_84 = arith.constant 0 : index
    %c0_85 = arith.constant 0 : index
    %242 = vector.load %arg7[%241, %c0_84, %c0_85] : memref<16x8x128xf32, #tpu.memory_space<vmem>>, vector<1x8x128xf32>
    %243 = vector.shape_cast %242 : vector<1x8x128xf32> to vector<8x128xf32>
    %244 = vector.shape_cast %240 : vector<8x128xf32> to vector<1x8x128xf32>
    tpu.vector_store %arg7[%241, %c0_84, %c0_85], %244 {strides = array<i32>} : memref<16x8x128xf32, #tpu.memory_space<vmem>>, vector<1x8x128xf32>,
    %c10_i32 = arith.constant 10 : i32
    %245 = arith.index_cast %c10_i32 : i32 to index
    %c0_86 = arith.constant 0 : index
    %c0_87 = arith.constant 0 : index
    %246 = vector.load %arg9[%245, %c0_86, %c0_87] : memref<16x8x256xf32, #tpu.memory_space<vmem>>, vector<1x8x256xf32>
    %247 = vector.shape_cast %246 : vector<1x8x256xf32> to vector<8x256xf32>
    %cst_88 = arith.constant dense<0.000000e+00> : vector<8x256xf32>
    %248 = tpu.matmul %240, %12, %cst_88 {dimension_numbers = #tpu.dot_dimension_numbers<[1], [0], [0], [1], [0, 0, 1, 1], [], []>} : vector<8x128xf32>, vector<128x256xf32>, vector<8x256xf32> -> vector<8x256xf32>
    %249 = arith.addf %247, %248 : vector<8x256xf32>
    %250 = arith.negf %249 : vector<8x256xf32>
    %251 = math.exp %250 : vector<8x256xf32>
    %cst_89 = arith.constant 1.000000e+00 : f32
    %252 = vector.broadcast %cst_89 : f32 to vector<8x256xf32>
    %253 = arith.addf %252, %251 : vector<8x256xf32>
    %254 = arith.divf %252, %253 : vector<8x256xf32>
    %255 = vector.extract_strided_slice %254 {offsets = [0, 0], sizes = [8, 128], strides = [1, 1]} : vector<8x256xf32> to vector<8x128xf32>
    %256 = vector.extract_strided_slice %254 {offsets = [0, 128], sizes = [8, 128], strides = [1, 1]} : vector<8x256xf32> to vector<8x128xf32>
    %257 = vector.extract_strided_slice %247 {offsets = [0, 128], sizes = [8, 128], strides = [1, 1]} : vector<8x256xf32> to vector<8x128xf32>
    %258 = arith.mulf %256, %240 : vector<8x128xf32>
    %cst_90 = arith.constant dense<0.000000e+00> : vector<8x128xf32>
    %259 = tpu.matmul %258, %13, %cst_90 {dimension_numbers = #tpu.dot_dimension_numbers<[1], [0], [0], [1], [0, 0, 1, 1], [], []>} : vector<8x128xf32>, vector<128x128xf32>, vector<8x128xf32> -> vector<8x128xf32>
    %260 = arith.addf %257, %259 : vector<8x128xf32>
    %261 = math.tanh %260 : vector<8x128xf32>
    %262 = arith.subf %240, %261 : vector<8x128xf32>
    %263 = arith.mulf %255, %262 : vector<8x128xf32>
    %264 = arith.index_cast %c10_i32 : i32 to index
    %c0_91 = arith.constant 0 : index
    %c0_92 = arith.constant 0 : index
    %265 = vector.load %arg7[%264, %c0_91, %c0_92] : memref<16x8x128xf32, #tpu.memory_space<vmem>>, vector<1x8x128xf32>
    %266 = vector.shape_cast %265 : vector<1x8x128xf32> to vector<8x128xf32>
    %267 = vector.shape_cast %263 : vector<8x128xf32> to vector<1x8x128xf32>
    tpu.vector_store %arg7[%264, %c0_91, %c0_92], %267 {strides = array<i32>} : memref<16x8x128xf32, #tpu.memory_space<vmem>>, vector<1x8x128xf32>,
    %c11_i32 = arith.constant 11 : i32
    %268 = arith.index_cast %c11_i32 : i32 to index
    %c0_93 = arith.constant 0 : index
    %c0_94 = arith.constant 0 : index
    %269 = vector.load %arg9[%268, %c0_93, %c0_94] : memref<16x8x256xf32, #tpu.memory_space<vmem>>, vector<1x8x256xf32>
    %270 = vector.shape_cast %269 : vector<1x8x256xf32> to vector<8x256xf32>
    %cst_95 = arith.constant dense<0.000000e+00> : vector<8x256xf32>
    %271 = tpu.matmul %263, %12, %cst_95 {dimension_numbers = #tpu.dot_dimension_numbers<[1], [0], [0], [1], [0, 0, 1, 1], [], []>} : vector<8x128xf32>, vector<128x256xf32>, vector<8x256xf32> -> vector<8x256xf32>
    %272 = arith.addf %270, %271 : vector<8x256xf32>
    %273 = arith.negf %272 : vector<8x256xf32>
    %274 = math.exp %273 : vector<8x256xf32>
    %cst_96 = arith.constant 1.000000e+00 : f32
    %275 = vector.broadcast %cst_96 : f32 to vector<8x256xf32>
    %276 = arith.addf %275, %274 : vector<8x256xf32>
    %277 = arith.divf %275, %276 : vector<8x256xf32>
    %278 = vector.extract_strided_slice %277 {offsets = [0, 0], sizes = [8, 128], strides = [1, 1]} : vector<8x256xf32> to vector<8x128xf32>
    %279 = vector.extract_strided_slice %277 {offsets = [0, 128], sizes = [8, 128], strides = [1, 1]} : vector<8x256xf32> to vector<8x128xf32>
    %280 = vector.extract_strided_slice %270 {offsets = [0, 128], sizes = [8, 128], strides = [1, 1]} : vector<8x256xf32> to vector<8x128xf32>
    %281 = arith.mulf %279, %263 : vector<8x128xf32>
    %cst_97 = arith.constant dense<0.000000e+00> : vector<8x128xf32>
    %282 = tpu.matmul %281, %13, %cst_97 {dimension_numbers = #tpu.dot_dimension_numbers<[1], [0], [0], [1], [0, 0, 1, 1], [], []>} : vector<8x128xf32>, vector<128x128xf32>, vector<8x128xf32> -> vector<8x128xf32>
    %283 = arith.addf %280, %282 : vector<8x128xf32>
    %284 = math.tanh %283 : vector<8x128xf32>
    %285 = arith.subf %263, %284 : vector<8x128xf32>
    %286 = arith.mulf %278, %285 : vector<8x128xf32>
    %287 = arith.index_cast %c11_i32 : i32 to index
    %c0_98 = arith.constant 0 : index
    %c0_99 = arith.constant 0 : index
    %288 = vector.load %arg7[%287, %c0_98, %c0_99] : memref<16x8x128xf32, #tpu.memory_space<vmem>>, vector<1x8x128xf32>
    %289 = vector.shape_cast %288 : vector<1x8x128xf32> to vector<8x128xf32>
    %290 = vector.shape_cast %286 : vector<8x128xf32> to vector<1x8x128xf32>
    tpu.vector_store %arg7[%287, %c0_98, %c0_99], %290 {strides = array<i32>} : memref<16x8x128xf32, #tpu.memory_space<vmem>>, vector<1x8x128xf32>,
    %c12_i32 = arith.constant 12 : i32
    %291 = arith.index_cast %c12_i32 : i32 to index
    %c0_100 = arith.constant 0 : index
    %c0_101 = arith.constant 0 : index
    %292 = vector.load %arg9[%291, %c0_100, %c0_101] : memref<16x8x256xf32, #tpu.memory_space<vmem>>, vector<1x8x256xf32>
    %293 = vector.shape_cast %292 : vector<1x8x256xf32> to vector<8x256xf32>
    %cst_102 = arith.constant dense<0.000000e+00> : vector<8x256xf32>
    %294 = tpu.matmul %286, %12, %cst_102 {dimension_numbers = #tpu.dot_dimension_numbers<[1], [0], [0], [1], [0, 0, 1, 1], [], []>} : vector<8x128xf32>, vector<128x256xf32>, vector<8x256xf32> -> vector<8x256xf32>
    %295 = arith.addf %293, %294 : vector<8x256xf32>
    %296 = arith.negf %295 : vector<8x256xf32>
    %297 = math.exp %296 : vector<8x256xf32>
    %cst_103 = arith.constant 1.000000e+00 : f32
    %298 = vector.broadcast %cst_103 : f32 to vector<8x256xf32>
    %299 = arith.addf %298, %297 : vector<8x256xf32>
    %300 = arith.divf %298, %299 : vector<8x256xf32>
    %301 = vector.extract_strided_slice %300 {offsets = [0, 0], sizes = [8, 128], strides = [1, 1]} : vector<8x256xf32> to vector<8x128xf32>
    %302 = vector.extract_strided_slice %300 {offsets = [0, 128], sizes = [8, 128], strides = [1, 1]} : vector<8x256xf32> to vector<8x128xf32>
    %303 = vector.extract_strided_slice %293 {offsets = [0, 128], sizes = [8, 128], strides = [1, 1]} : vector<8x256xf32> to vector<8x128xf32>
    %304 = arith.mulf %302, %286 : vector<8x128xf32>
    %cst_104 = arith.constant dense<0.000000e+00> : vector<8x128xf32>
    %305 = tpu.matmul %304, %13, %cst_104 {dimension_numbers = #tpu.dot_dimension_numbers<[1], [0], [0], [1], [0, 0, 1, 1], [], []>} : vector<8x128xf32>, vector<128x128xf32>, vector<8x128xf32> -> vector<8x128xf32>
    %306 = arith.addf %303, %305 : vector<8x128xf32>
    %307 = math.tanh %306 : vector<8x128xf32>
    %308 = arith.subf %286, %307 : vector<8x128xf32>
    %309 = arith.mulf %301, %308 : vector<8x128xf32>
    %310 = arith.index_cast %c12_i32 : i32 to index
    %c0_105 = arith.constant 0 : index
    %c0_106 = arith.constant 0 : index
    %311 = vector.load %arg7[%310, %c0_105, %c0_106] : memref<16x8x128xf32, #tpu.memory_space<vmem>>, vector<1x8x128xf32>
    %312 = vector.shape_cast %311 : vector<1x8x128xf32> to vector<8x128xf32>
    %313 = vector.shape_cast %309 : vector<8x128xf32> to vector<1x8x128xf32>
    tpu.vector_store %arg7[%310, %c0_105, %c0_106], %313 {strides = array<i32>} : memref<16x8x128xf32, #tpu.memory_space<vmem>>, vector<1x8x128xf32>,
    %c13_i32 = arith.constant 13 : i32
    %314 = arith.index_cast %c13_i32 : i32 to index
    %c0_107 = arith.constant 0 : index
    %c0_108 = arith.constant 0 : index
    %315 = vector.load %arg9[%314, %c0_107, %c0_108] : memref<16x8x256xf32, #tpu.memory_space<vmem>>, vector<1x8x256xf32>
    %316 = vector.shape_cast %315 : vector<1x8x256xf32> to vector<8x256xf32>
    %cst_109 = arith.constant dense<0.000000e+00> : vector<8x256xf32>
    %317 = tpu.matmul %309, %12, %cst_109 {dimension_numbers = #tpu.dot_dimension_numbers<[1], [0], [0], [1], [0, 0, 1, 1], [], []>} : vector<8x128xf32>, vector<128x256xf32>, vector<8x256xf32> -> vector<8x256xf32>
    %318 = arith.addf %316, %317 : vector<8x256xf32>
    %319 = arith.negf %318 : vector<8x256xf32>
    %320 = math.exp %319 : vector<8x256xf32>
    %cst_110 = arith.constant 1.000000e+00 : f32
    %321 = vector.broadcast %cst_110 : f32 to vector<8x256xf32>
    %322 = arith.addf %321, %320 : vector<8x256xf32>
    %323 = arith.divf %321, %322 : vector<8x256xf32>
    %324 = vector.extract_strided_slice %323 {offsets = [0, 0], sizes = [8, 128], strides = [1, 1]} : vector<8x256xf32> to vector<8x128xf32>
    %325 = vector.extract_strided_slice %323 {offsets = [0, 128], sizes = [8, 128], strides = [1, 1]} : vector<8x256xf32> to vector<8x128xf32>
    %326 = vector.extract_strided_slice %316 {offsets = [0, 128], sizes = [8, 128], strides = [1, 1]} : vector<8x256xf32> to vector<8x128xf32>
    %327 = arith.mulf %325, %309 : vector<8x128xf32>
    %cst_111 = arith.constant dense<0.000000e+00> : vector<8x128xf32>
    %328 = tpu.matmul %327, %13, %cst_111 {dimension_numbers = #tpu.dot_dimension_numbers<[1], [0], [0], [1], [0, 0, 1, 1], [], []>} : vector<8x128xf32>, vector<128x128xf32>, vector<8x128xf32> -> vector<8x128xf32>
    %329 = arith.addf %326, %328 : vector<8x128xf32>
    %330 = math.tanh %329 : vector<8x128xf32>
    %331 = arith.subf %309, %330 : vector<8x128xf32>
    %332 = arith.mulf %324, %331 : vector<8x128xf32>
    %333 = arith.index_cast %c13_i32 : i32 to index
    %c0_112 = arith.constant 0 : index
    %c0_113 = arith.constant 0 : index
    %334 = vector.load %arg7[%333, %c0_112, %c0_113] : memref<16x8x128xf32, #tpu.memory_space<vmem>>, vector<1x8x128xf32>
    %335 = vector.shape_cast %334 : vector<1x8x128xf32> to vector<8x128xf32>
    %336 = vector.shape_cast %332 : vector<8x128xf32> to vector<1x8x128xf32>
    tpu.vector_store %arg7[%333, %c0_112, %c0_113], %336 {strides = array<i32>} : memref<16x8x128xf32, #tpu.memory_space<vmem>>, vector<1x8x128xf32>,
    %c14_i32 = arith.constant 14 : i32
    %337 = arith.index_cast %c14_i32 : i32 to index
    %c0_114 = arith.constant 0 : index
    %c0_115 = arith.constant 0 : index
    %338 = vector.load %arg9[%337, %c0_114, %c0_115] : memref<16x8x256xf32, #tpu.memory_space<vmem>>, vector<1x8x256xf32>
    %339 = vector.shape_cast %338 : vector<1x8x256xf32> to vector<8x256xf32>
    %cst_116 = arith.constant dense<0.000000e+00> : vector<8x256xf32>
    %340 = tpu.matmul %332, %12, %cst_116 {dimension_numbers = #tpu.dot_dimension_numbers<[1], [0], [0], [1], [0, 0, 1, 1], [], []>} : vector<8x128xf32>, vector<128x256xf32>, vector<8x256xf32> -> vector<8x256xf32>
    %341 = arith.addf %339, %340 : vector<8x256xf32>
    %342 = arith.negf %341 : vector<8x256xf32>
    %343 = math.exp %342 : vector<8x256xf32>
    %cst_117 = arith.constant 1.000000e+00 : f32
    %344 = vector.broadcast %cst_117 : f32 to vector<8x256xf32>
    %345 = arith.addf %344, %343 : vector<8x256xf32>
    %346 = arith.divf %344, %345 : vector<8x256xf32>
    %347 = vector.extract_strided_slice %346 {offsets = [0, 0], sizes = [8, 128], strides = [1, 1]} : vector<8x256xf32> to vector<8x128xf32>
    %348 = vector.extract_strided_slice %346 {offsets = [0, 128], sizes = [8, 128], strides = [1, 1]} : vector<8x256xf32> to vector<8x128xf32>
    %349 = vector.extract_strided_slice %339 {offsets = [0, 128], sizes = [8, 128], strides = [1, 1]} : vector<8x256xf32> to vector<8x128xf32>
    %350 = arith.mulf %348, %332 : vector<8x128xf32>
    %cst_118 = arith.constant dense<0.000000e+00> : vector<8x128xf32>
    %351 = tpu.matmul %350, %13, %cst_118 {dimension_numbers = #tpu.dot_dimension_numbers<[1], [0], [0], [1], [0, 0, 1, 1], [], []>} : vector<8x128xf32>, vector<128x128xf32>, vector<8x128xf32> -> vector<8x128xf32>
    %352 = arith.addf %349, %351 : vector<8x128xf32>
    %353 = math.tanh %352 : vector<8x128xf32>
    %354 = arith.subf %332, %353 : vector<8x128xf32>
    %355 = arith.mulf %347, %354 : vector<8x128xf32>
    %356 = arith.index_cast %c14_i32 : i32 to index
    %c0_119 = arith.constant 0 : index
    %c0_120 = arith.constant 0 : index
    %357 = vector.load %arg7[%356, %c0_119, %c0_120] : memref<16x8x128xf32, #tpu.memory_space<vmem>>, vector<1x8x128xf32>
    %358 = vector.shape_cast %357 : vector<1x8x128xf32> to vector<8x128xf32>
    %359 = vector.shape_cast %355 : vector<8x128xf32> to vector<1x8x128xf32>
    tpu.vector_store %arg7[%356, %c0_119, %c0_120], %359 {strides = array<i32>} : memref<16x8x128xf32, #tpu.memory_space<vmem>>, vector<1x8x128xf32>,
    %c15_i32 = arith.constant 15 : i32
    %360 = arith.index_cast %c15_i32 : i32 to index
    %c0_121 = arith.constant 0 : index
    %c0_122 = arith.constant 0 : index
    %361 = vector.load %arg9[%360, %c0_121, %c0_122] : memref<16x8x256xf32, #tpu.memory_space<vmem>>, vector<1x8x256xf32>
    %362 = vector.shape_cast %361 : vector<1x8x256xf32> to vector<8x256xf32>
    %cst_123 = arith.constant dense<0.000000e+00> : vector<8x256xf32>
    %363 = tpu.matmul %355, %12, %cst_123 {dimension_numbers = #tpu.dot_dimension_numbers<[1], [0], [0], [1], [0, 0, 1, 1], [], []>} : vector<8x128xf32>, vector<128x256xf32>, vector<8x256xf32> -> vector<8x256xf32>
    %364 = arith.addf %362, %363 : vector<8x256xf32>
    %365 = arith.negf %364 : vector<8x256xf32>
    %366 = math.exp %365 : vector<8x256xf32>
    %cst_124 = arith.constant 1.000000e+00 : f32
    %367 = vector.broadcast %cst_124 : f32 to vector<8x256xf32>
    %368 = arith.addf %367, %366 : vector<8x256xf32>
    %369 = arith.divf %367, %368 : vector<8x256xf32>
    %370 = vector.extract_strided_slice %369 {offsets = [0, 0], sizes = [8, 128], strides = [1, 1]} : vector<8x256xf32> to vector<8x128xf32>
    %371 = vector.extract_strided_slice %369 {offsets = [0, 128], sizes = [8, 128], strides = [1, 1]} : vector<8x256xf32> to vector<8x128xf32>
    %372 = vector.extract_strided_slice %362 {offsets = [0, 128], sizes = [8, 128], strides = [1, 1]} : vector<8x256xf32> to vector<8x128xf32>
    %373 = arith.mulf %371, %355 : vector<8x128xf32>
    %cst_125 = arith.constant dense<0.000000e+00> : vector<8x128xf32>
    %374 = tpu.matmul %373, %13, %cst_125 {dimension_numbers = #tpu.dot_dimension_numbers<[1], [0], [0], [1], [0, 0, 1, 1], [], []>} : vector<8x128xf32>, vector<128x128xf32>, vector<8x128xf32> -> vector<8x128xf32>
    %375 = arith.addf %372, %374 : vector<8x128xf32>
    %376 = math.tanh %375 : vector<8x128xf32>
    %377 = arith.subf %355, %376 : vector<8x128xf32>
    %378 = arith.mulf %370, %377 : vector<8x128xf32>
    %379 = arith.index_cast %c15_i32 : i32 to index
    %c0_126 = arith.constant 0 : index
    %c0_127 = arith.constant 0 : index
    %380 = vector.load %arg7[%379, %c0_126, %c0_127] : memref<16x8x128xf32, #tpu.memory_space<vmem>>, vector<1x8x128xf32>
    %381 = vector.shape_cast %380 : vector<1x8x128xf32> to vector<8x128xf32>
    %382 = vector.shape_cast %378 : vector<8x128xf32> to vector<1x8x128xf32>
    tpu.vector_store %arg7[%379, %c0_126, %c0_127], %382 {strides = array<i32>} : memref<16x8x128xf32, #tpu.memory_space<vmem>>, vector<1x8x128xf32>,
    %c16_i32 = arith.constant 16 : i32
    %c0_128 = arith.constant 0 : index
    %c0_129 = arith.constant 0 : index
    %383 = vector.load %arg10[%c0_128, %c0_129] : memref<8x128xf32, #tpu.memory_space<vmem>>, vector<8x128xf32>
    tpu.vector_store %arg10[%c0_128, %c0_129], %378 {strides = array<i32>} : memref<8x128xf32, #tpu.memory_space<vmem>>, vector<8x128xf32>,
    %c0_i32_130 = arith.constant 0 : i32
    %384 = arith.cmpi eq, %arg1, %c0_i32_130 : i32
    %385 = arith.extui %384 : i1 to i32
    %c0_i32_131 = arith.constant 0 : i32
    %386 = arith.cmpi ne, %385, %c0_i32_131 : i32
    scf.if %386 {
      %c0_132 = arith.constant 0 : index
      %c0_133 = arith.constant 0 : index
      %387 = vector.load %arg8[%c0_132, %c0_133] : memref<8x128xf32, #tpu.memory_space<vmem>>, vector<8x128xf32>
      tpu.vector_store %arg8[%c0_132, %c0_133], %378 {strides = array<i32>} : memref<8x128xf32, #tpu.memory_space<vmem>>, vector<8x128xf32>,
    } else {
    }
    return
  }
  func.func @transform_0(%arg0: i32, %arg1: i32) -> (i32, i32, i32) {
    %c0_i32 = arith.constant 0 : i32
    %c0_i32_0 = arith.constant 0 : i32
    return %arg1, %arg0, %c0_i32 : i32, i32, i32
  }
  func.func @transform_1(%arg0: i32, %arg1: i32) -> (i32, i32) {
    %c0_i32 = arith.constant 0 : i32
    %c0_i32_0 = arith.constant 0 : i32
    return %arg0, %c0_i32 : i32, i32
  }
  func.func @transform_2(%arg0: i32, %arg1: i32) -> (i32, i32) {
    %c0_i32 = arith.constant 0 : i32
    %c0_i32_0 = arith.constant 0 : i32
    %c0_i32_1 = arith.constant 0 : i32
    return %c0_i32, %c0_i32_0 : i32, i32
  }
  func.func @transform_3(%arg0: i32, %arg1: i32) -> (i32, i32) {
    %c0_i32 = arith.constant 0 : i32
    %c0_i32_0 = arith.constant 0 : i32
    %c0_i32_1 = arith.constant 0 : i32
    return %c0_i32, %c0_i32_0 : i32, i32
  }
  func.func @transform_4(%arg0: i32, %arg1: i32) -> (i32, i32) {
    %c0_i32 = arith.constant 0 : i32
    %c0_i32_0 = arith.constant 0 : i32
    %c0_i32_1 = arith.constant 0 : i32
    return %c0_i32, %c0_i32_0 : i32, i32
  }
  func.func @transform_5(%arg0: i32, %arg1: i32) -> (i32, i32, i32) {
    %c0_i32 = arith.constant 0 : i32
    %c0_i32_0 = arith.constant 0 : i32
    return %arg1, %arg0, %c0_i32 : i32, i32, i32
  }
  func.func @transform_6(%arg0: i32, %arg1: i32) -> (i32, i32) {
    %c0_i32 = arith.constant 0 : i32
    %c0_i32_0 = arith.constant 0 : i32
    return %arg0, %c0_i32 : i32, i32
  }
}

</mosaic_0001>

<bundles_post_ra>
// kernel: tpu_custom_call.1
= control target key start
LH: loop header
LB: loop body
LE: loop exit
PB: predicated region body
PF: predicated region fallthrough
CT: control target
= control target key end

     0   :  { %6 = vsyncpa [#allocation3], 0  ;;  %s124_s0 = inlined_call_operand.hbm [shape: f32[8,128], index: 0, kind: input, shape index: {}]   ;;  %s125_s1 = inlined_call_operand.hbm [shape: f32[8,128], index: 1, kind: output, shape index: {}]  }
   0x1   :  { %7 = vsyncpa [#allocation4], 0  ;;  %s88_s6 = smov [#allocation2]   ;;  %s40_s10 = scalar_lea.hbm %s124_s0, 128 }
   0x2   :  { %s14_s7 = sshll.u32 %s88_s6, 4  ;;  %p41_p0 = scmp.ne.s32.totalorder %s124_s0, %s40_s10  ;;  %s15_s7 = int_to_ptr.vmem [resolvable:$true] %s14_s7 }
   0x3   :  { %p44_p1 = scmp.lt.u32.totalorder %s40_s10, %s124_s0 }
   0x5   :  { %p46_p2 = pnand %p44_p1, %p41_p0 }
   0x7   :  { %49 = shalt.err (!%p46_p2)
}
   0x8   :  { %s50_s15 = scalar_lea.vmem %s15_s7, 128  ;;  %p55_p4 = scmp.lt.s32.totalorder %s15_s7, %s15_s7 }
   0x9   :  { %p51_p3 = scmp.ne.s32.totalorder %s15_s7, %s50_s15  ;;  %p56_p5 = scmp.lt.s32.totalorder %s50_s15, %s50_s15 }
   0xb   :  { %p57_p6 = por %p56_p5, %p55_p4 }
   0xd   :  { %p58_p7 = pnand %p57_p6, %p51_p3 }
   0xf   :  { %61 = shalt.err (!%p58_p7)
}
  0x10   :  { %17 = dma.hbm_to_vmem [thread:$0]  %s124_s0, 128, %s15_s7, [#allocation3]  }
  0x11   :  { %84 = dma.done.wait [#allocation3], 128  }
  0x12   :  { %85 = vsyncadd [#allocation3], 4294967168  ;;  %s89_s18 = smov [#allocation5]   ;;  %v21_v0 = vld [vmem:[#allocation2] sm:$0xff] }
  0x13   :  { %s29_s19 = sshll.u32 %s89_s18, 4  ;;  %22 = vst [vmem:[#allocation5] sm:$0xff] %v21_v0  ;;  %s30_s19 = int_to_ptr.vmem [resolvable:$true] %s29_s19 }
  0x14   :  { %s62_s20 = scalar_lea.vmem %s30_s19, 128  ;;  %p67_p9 = scmp.lt.s32.totalorder %s30_s19, %s30_s19 }
  0x15   :  { %p63_p8 = scmp.ne.s32.totalorder %s30_s19, %s62_s20  ;;  %p68_p10 = scmp.lt.s32.totalorder %s62_s20, %s62_s20 }
  0x17   :  { %p69_p11 = por %p68_p10, %p67_p9 }
  0x19   :  { %p70_p12 = pnand %p69_p11, %p63_p8 }
  0x1b   :  { %73 = shalt.err (!%p70_p12)
}
  0x1c   :  { %s74_s23 = scalar_lea.hbm %s125_s1, 128 }
  0x1d   :  { %p75_p13 = scmp.ne.s32.totalorder %s125_s1, %s74_s23  ;;  %p78_p0 = scmp.lt.u32.totalorder %s74_s23, %s125_s1 }
  0x1f   :  { %p80_p1 = pnand %p78_p0, %p75_p13 }
  0x21   :  { %83 = shalt.err (!%p80_p1)
}
  0x22   :  { %32 = dma.vmem_to_hbm [thread:$0]  %s30_s19, 128, %s125_s1, [#allocation4]  }
  0x23   :  { %86 = dma.done.wait [#allocation4], 128  }
  0x24   :  { %87 = vsyncadd [#allocation4], 4294967168 }
  0x25   :  { %36 = vsyncpa [#allocation3], 1 }
  0x26   :  { %37 = vsyncpa [#allocation4], 1 }

// kernel: tpu_custom_call.1
= control target key start
LH: loop header
LB: loop body
LE: loop exit
PB: predicated region body
PF: predicated region fallthrough
CT: control target
= control target key end

     0   :  { %12 = vsyncpa [#allocation5], 0  ;;  %s6152_s0 = inlined_call_operand.hbm [shape: f32[16,8,64], index: 0, kind: input, shape index: {}]   ;;  %s6153_s1 = inlined_call_operand.hbm [shape: f32[8,128], index: 1, kind: input, shape index: {}]   ;;  %s6154_s2 = inlined_call_operand.hbm [shape: f32[64,256], index: 2, kind: input, shape index: {}]   ;;  %s6155_s3 = inlined_call_operand.vmem [shape: f32[1,256], index: 3, kind: input, shape index: {}]   ;;  %s6156_s4 = inlined_call_operand.hbm [shape: f32[128,256], index: 4, kind: input, shape index: {}]   ;;  %s6157_s5 = inlined_call_operand.hbm [shape: f32[16,8,128], index: 5, kind: output, shape index: {0}]   ;;  %s6158_s6 = inlined_call_operand.hbm [shape: f32[8,128], index: 6, kind: output, shape index: {1}]  }
   0x1   :  { %13 = vsyncpa [#allocation8], 0 }
   0x2   :  { %14 = vsyncpa [#allocation11], 0 }
   0x3   :  { %15 = vsyncpa [#allocation6], 0 }
   0x4   :  { %16 = vsyncpa [#allocation14], 0  ;;  %s5185_s21 = smov [#allocation7]   ;;  %s5186_s23 = smov [#allocation4]  }
   0x5   :  { %s35_s22 = sshll.u32 %s5185_s21, 4  ;;  %s22_s24 = sshll.u32 %s5186_s23, 4  ;;  %s36_s22 = int_to_ptr.vmem [resolvable:$true] %s35_s22  ;;  %s5233_s24 = int_to_ptr.vmem [resolvable:$true] %s22_s24 }
   0x6   :  { %s5043_s27 = scalar_lea.hbm %s6153_s1, 128 }
   0x7   :  { %p5044_p0 = scmp.ne.s32.totalorder %s6153_s1, %s5043_s27  ;;  %p5047_p1 = scmp.lt.u32.totalorder %s5043_s27, %s6153_s1 }
   0x9   :  { %p5049_p2 = pnand %p5047_p1, %p5044_p0 }
   0xb   :  { %5052 = shalt.err (!%p5049_p2)
}
   0xc   :  { %s5053_s8 = scalar_lea.vmem %s36_s22, 128  ;;  %p5058_p4 = scmp.lt.s32.totalorder %s36_s22, %s36_s22 }
   0xd   :  { %p5054_p3 = scmp.ne.s32.totalorder %s36_s22, %s5053_s8  ;;  %p5059_p5 = scmp.lt.s32.totalorder %s5053_s8, %s5053_s8 }
   0xf   :  { %p5060_p6 = por %p5059_p5, %p5058_p4 }
  0x11   :  { %p5061_p7 = pnand %p5060_p6, %p5054_p3 }
  0x13   :  { %5064 = shalt.err (!%p5061_p7)
}
  0x14   :  { %38 = dma.hbm_to_vmem [thread:$0]  %s6153_s1, 128, %s36_s22, [#allocation8]  }
  0x15   :  { %s5065_s13 = scalar_lea.hbm %s6152_s0, 2048 }
  0x16   :  { %p5066_p8 = scmp.ne.s32.totalorder %s6152_s0, %s5065_s13  ;;  %p5069_p9 = scmp.lt.u32.totalorder %s5065_s13, %s6152_s0 }
  0x18   :  { %p5071_p10 = pnand %p5069_p9, %p5066_p8 }
  0x1a   :  { %5074 = shalt.err (!%p5071_p10)
}
  0x1b   :  { %s5075_s18 = scalar_lea.vmem %s5233_s24, 2048  ;;  %p5080_p12 = scmp.lt.s32.totalorder %s5233_s24, %s5233_s24 }
  0x1c   :  { %p5076_p11 = scmp.ne.s32.totalorder %s5233_s24, %s5075_s18  ;;  %p5081_p13 = scmp.lt.s32.totalorder %s5075_s18, %s5075_s18 }
  0x1e   :  { %p5082_p0 = por %p5081_p13, %p5080_p12 }
  0x20   :  { %p5083_p1 = pnand %p5082_p0, %p5076_p11 }
  0x22   :  { %5086 = shalt.err (!%p5083_p1)
}
  0x23   :  { %s5187_s1 = smov 128   ;;  %s5188_s19 = smov 8  }
  0x24   :  { %28 = dma.hbm_to_vmem [thread:$0]  %s6152_s0, 2048, %s5233_s24, [#allocation5], %s5187_s1, %s5187_s1, %s5188_s19  }
  0x25   :  { %s5189_s22 = smov [#allocation9]   ;;  %s5087_s27 = scalar_lea.hbm %s6154_s2, 2048 }
  0x26   :  { %s44_s23 = sshll.u32 %s5189_s22, 4  ;;  %p5088_p2 = scmp.ne.s32.totalorder %s6154_s2, %s5087_s27  ;;  %s45_s23 = int_to_ptr.vmem [resolvable:$true] %s44_s23 }
  0x27   :  { %p5091_p3 = scmp.lt.u32.totalorder %s5087_s27, %s6154_s2 }
  0x29   :  { %p5093_p4 = pnand %p5091_p3, %p5088_p2 }
  0x2b   :  { %5096 = shalt.err (!%p5093_p4)
}
  0x2c   :  { %s5097_s8 = scalar_lea.vmem %s45_s23, 2048  ;;  %p5102_p6 = scmp.lt.s32.totalorder %s45_s23, %s45_s23 }
  0x2d   :  { %p5098_p5 = scmp.ne.s32.totalorder %s45_s23, %s5097_s8  ;;  %p5103_p7 = scmp.lt.s32.totalorder %s5097_s8, %s5097_s8 }
  0x2f   :  { %p5104_p8 = por %p5103_p7, %p5102_p6 }
  0x31   :  { %p5105_p9 = pnand %p5104_p8, %p5098_p5 }
  0x33   :  { %5108 = shalt.err (!%p5105_p9)
}
  0x34   :  { %s5190_s0 = smov 256   ;;  %s5191_s24 = smov 16  }
  0x35   :  { %50 = dma.hbm_to_vmem [thread:$0]  %s6154_s2, 2048, %s45_s23, [#allocation8], %s5190_s0, %s5190_s0, %s5191_s24  }
  0x36   :  { %s5192_s11 = smov [#allocation10]   ;;  %s5109_s15 = scalar_lea.hbm %s6156_s4, 4096 }
  0x37   :  { %s58_s12 = sshll.u32 %s5192_s11, 4  ;;  %p5110_p10 = scmp.ne.s32.totalorder %s6156_s4, %s5109_s15  ;;  %s59_s12 = int_to_ptr.vmem [resolvable:$true] %s58_s12 }
  0x38   :  { %p5113_p11 = scmp.lt.u32.totalorder %s5109_s15, %s6156_s4 }
  0x3a   :  { %p5115_p12 = pnand %p5113_p11, %p5110_p10 }
  0x3c   :  { %5118 = shalt.err (!%p5115_p12)
}
  0x3d   :  { %s5119_s21 = scalar_lea.vmem %s59_s12, 4096  ;;  %p5124_p0 = scmp.lt.s32.totalorder %s59_s12, %s59_s12 }
  0x3e   :  { %p5120_p13 = scmp.ne.s32.totalorder %s59_s12, %s5119_s21  ;;  %p5125_p1 = scmp.lt.s32.totalorder %s5119_s21, %s5119_s21 }
  0x40   :  { %p5126_p2 = por %p5125_p1, %p5124_p0 }
  0x42   :  { %p5127_p3 = pnand %p5126_p2, %p5120_p13 }
  0x44   :  { %5130 = shalt.err (!%p5127_p3)
}
  0x45   :  { %64 = dma.hbm_to_vmem [thread:$0]  %s6156_s4, 4096, %s59_s12, [#allocation11], %s5190_s0, %s5190_s0, %s5191_s24  }
  0x46   :  { %5175 = dma.done.wait [#allocation5], 2048  }
  0x47   :  { %5176 = vsyncadd [#allocation5], 4294965248 }
  0x48   :  { %5177 = dma.done.wait [#allocation8], 2176  }
  0x49   :  { %5178 = vsyncadd [#allocation8], 4294965120 }
  0x4a   :  { %5179 = dma.done.wait [#allocation11], 4096  }
  0x4b   :  { %5180 = vsyncadd [#allocation11], 4294963200  ;;  %v5193_v0 = vmov 0.0   ;;  %v370_v1 = vld [vmem:[#allocation10 + $0x8] sm:$0xff]  ;;  %v372_v2 = vld [vmem:[#allocation10 + $0x18] sm:$0xff]  ;;  %vm127_vm0 = vcmask 523264  }
  0x4c   :  { %240 = vmatprep.mubr.f32.mxu0 %v5193_v0  ;;  %468 = vmatprep.mubr.f32.mxu1 %v5193_v0  ;;  %v369_v3 = vld [vmem:[#allocation10] sm:$0xff]  ;;  %v5293_v4 = vpack.c.bf16 %v372_v2, %v370_v1  ;;  %v371_v5 = vld [vmem:[#allocation10 + $0x10] sm:$0xff]  ;;  %v374_v6 = vld [vmem:[#allocation10 + $0x28] sm:$0xff]  ;;  %vm5195_vm1 = vmmov 0   ;;  %s5197_s26 = smov [#allocation13]  }
  0x4d   :  { %v376_v7 = vld [vmem:[#allocation10 + $0x38] sm:$0xff]  ;;  %v5295_v8 = vpack.c.bf16 %v371_v5, %v369_v3  ;;  %v373_v10 = vld [vmem:[#allocation10 + $0x20] sm:$0xff]  ;;  %v375_v11 = vld [vmem:[#allocation10 + $0x30] sm:$0xff]  ;;  %s3063_s27 = sshll.u32 %s5197_s26, 4  ;;  %s3064_s27 = int_to_ptr.vmem [resolvable:$true] %s3063_s27 }
  0x4e   :  { %v5297_v9 = vpack.c.bf16 %v376_v7, %v374_v6  ;;  %v378_v12 = vld [vmem:[#allocation10 + $0x48] sm:$0xff]  ;;  %3975 = vmatprep.subr.bf16.mxu1 %v5293_v4  ;;  %v380_v13 = vld [vmem:[#allocation10 + $0x58] sm:$0xff]  ;;  %v5301_v14 = vpack.c.bf16 %v375_v11, %v373_v10  ;;  %v377_v15 = vld [vmem:[#allocation10 + $0x40] sm:$0xff] }
  0x4f   :  { %3977 = vmatpush1.bf16.msra.mxu1 %v5295_v8  ;;  %v100_v16 = vld [vmem:[#allocation9 + $0x8] sm:$0xff]  ;;  %v5304_v17 = vpack.c.bf16 %v380_v13, %v378_v12  ;;  %v379_v18 = vld [vmem:[#allocation10 + $0x50] sm:$0xff]  ;;  %v102_v20 = vld [vmem:[#allocation9 + $0x18] sm:$0xff] }
  0x50   :  { %3979 = vmatprep.subr.bf16.mxu1 %v5297_v9  ;;  %v382_v19 = vld [vmem:[#allocation10 + $0x68] sm:$0xff]  ;;  %v384_v21 = vld [vmem:[#allocation10 + $0x78] sm:$0xff]  ;;  %v3958_v22 = vpack.c.bf16 %v102_v20, %v100_v16  ;;  %v99_v23 = vld [vmem:[#allocation9] sm:$0xff]  ;;  %v5307_v28 = vpack.c.bf16 %v379_v18, %v377_v15  ;;  %v5194_v16 = vmov 0.0|0.0  }
  0x51   :  { %v101_v24 = vld [vmem:[#allocation9 + $0x10] sm:$0xff]  ;;  %v104_v26 = vld [vmem:[#allocation9 + $0x28] sm:$0xff]  ;;  %v106_v27 = vld [vmem:[#allocation9 + $0x38] sm:$0xff]  ;;  %v5310_v32 = vpack.c.bf16 %v384_v21, %v382_v19 }
  0x52   :  { %v3960_v25 = vpack.c.bf16 %v101_v24, %v99_v23  ;;  %3959 = vmatprep.subr.bf16.mxu0 %v3958_v22  ;;  %v381_v29 = vld [vmem:[#allocation10 + $0x60] sm:$0xff]  ;;  %v3962_v30 = vpack.c.bf16 %v106_v27, %v104_v26  ;;  %v383_v33 = vld [vmem:[#allocation10 + $0x70] sm:$0xff]  ;;  %v386_v34 = vld [vmem:[#allocation10 + $0x88] sm:$0xff] }
  0x53   :  { %3981 = vmatpush1.bf16.msra.mxu1 %v5301_v14  ;;  %v103_v31 = vld [vmem:[#allocation9 + $0x20] sm:$0xff]  ;;  %v105_v35 = vld [vmem:[#allocation9 + $0x30] sm:$0xff]  ;;  %v388_v36 = vld [vmem:[#allocation10 + $0x98] sm:$0xff]  ;;  %v5313_v43 = vpack.c.bf16 %v383_v33, %v381_v29 }
  0x54   :  { %3983 = vmatprep.subr.bf16.mxu1 %v5304_v17  ;;  %3961 = vmatpush1.bf16.msra.mxu0 %v3960_v25  ;;  %v3964_v37 = vpack.c.bf16 %v105_v35, %v103_v31  ;;  %v108_v38 = vld [vmem:[#allocation9 + $0x48] sm:$0xff]  ;;  %v110_v39 = vld [vmem:[#allocation9 + $0x58] sm:$0xff]  ;;  %v107_v41 = vld [vmem:[#allocation9 + $0x40] sm:$0xff]  ;;  %v5316_v46 = vpack.c.bf16 %v388_v36, %v386_v34 }
  0x55   :  { %3963 = vmatprep.subr.bf16.mxu0 %v3962_v30  ;;  %v3966_v40 = vpack.c.bf16 %v110_v39, %v108_v38  ;;  %v109_v42 = vld [vmem:[#allocation9 + $0x50] sm:$0xff]  ;;  %v385_v44 = vld [vmem:[#allocation10 + $0x80] sm:$0xff]  ;;  %v112_v45 = vld [vmem:[#allocation9 + $0x68] sm:$0xff]  ;;  %v117_v30 = vlaneseq }
  0x56   :  { %v387_v47 = vld [vmem:[#allocation10 + $0x90] sm:$0xff]  ;;  %v390_v48 = vld [vmem:[#allocation10 + $0xa8] sm:$0xff]  ;;  %v3968_v49 = vpack.c.bf16 %v109_v42, %v107_v41  ;;  %v114_v50 = vld [vmem:[#allocation9 + $0x78] sm:$0xff] }
  0x57   :  { %3985 = vmatpush1.bf16.msra.mxu1 %v5307_v28  ;;  %v392_v51 = vld [vmem:[#allocation10 + $0xb8] sm:$0xff]  ;;  %v3970_v52 = vpack.c.bf16 %v114_v50, %v112_v45  ;;  %v111_v53 = vld [vmem:[#allocation9 + $0x60] sm:$0xff]  ;;  %v113_v54 = vld [vmem:[#allocation9 + $0x70] sm:$0xff]  ;;  %v5319_v55 = vpack.c.bf16 %v387_v47, %v385_v44  ;;  %v118_v31 = vshrl.u32 %v117_v30, 7 }
  0x58   :  { %3987 = vmatprep.subr.bf16.mxu1 %v5310_v32  ;;  %3965 = vmatpush1.bf16.msra.mxu0 %v3964_v37  ;;  %v5322_v56 = vpack.c.bf16 %v392_v51, %v390_v48  ;;  %v389_v57 = vld [vmem:[#allocation10 + $0xa0] sm:$0xff]  ;;  %v391_v58 = vld [vmem:[#allocation10 + $0xb0] sm:$0xff]  ;;  %v3972_v59 = vpack.c.bf16 %v113_v54, %v111_v53  ;;  %v394_v60 = vld [vmem:[#allocation10 + $0xc8] sm:$0xff] }
  0x59   :  { %3967 = vmatprep.subr.bf16.mxu0 %v3966_v40  ;;  %v396_v61 = vld [vmem:[#allocation10 + $0xd8] sm:$0xff]  ;;  %v5325_v62 = vpack.c.bf16 %v391_v58, %v389_v57  ;;  %v393_v1 = vld [vmem:[#allocation10 + $0xc0] sm:$0xff]  ;;  %v395_v2 = vld [vmem:[#allocation10 + $0xd0] sm:$0xff]  ;;  %v119_v33 = vsub.s32 0, %v118_v31  ;;  %v123_v36 = vsub.s32 1, %v118_v31 }
  0x5a   :  { %v5328_v63 = vpack.c.bf16 %v396_v61, %v394_v60  ;;  %v83_v3 = vld [vmem:[#allocation4] sm:$0xff]  ;;  %v398_v5 = vld [vmem:[#allocation10 + $0xe8] sm:$0xff]  ;;  %v5332_v7 = vpack.c.bf16 %v395_v2, %v393_v1  ;;  %v397_v11 = vld [vmem:[#allocation10 + $0xe0] sm:$0xff] }
  0x5b   :  { %3989 = vmatpush1.bf16.msra.mxu1 %v5313_v43  ;;  %v400_v6 = vld [vmem:[#allocation10 + $0xf8] sm:$0xff]  ;;  %v399_v12 = vld [vmem:[#allocation10 + $0xf0] sm:$0xff]  ;;  %v84_v18 = vld [vmem:[#allocation4 + $0x8] sm:$0xff] }
  0x5c   :  { %3991 = vmatprep.subr.bf16.mxu1 %v5316_v46  ;;  %3969 = vmatpush1.bf16.msra.mxu0 %v3968_v49  ;;  %v5336_v10 = vpack.c.bf16 %v400_v6, %v398_v5  ;;  %v5342_v13 = vpack.c.bf16 %v399_v12, %v397_v11  ;;  %v5348_v15 = vld [vmem:[#allocation7] sm:$0xff]  ;;  %v85_v19 = vld [vmem:[#allocation4 + $0x10] sm:$0xff]  ;;  %v86_v20 = vld [vmem:[#allocation4 + $0x18] sm:$0xff] }
  0x5d   :  { %3971 = vmatprep.subr.bf16.mxu0 %v3970_v52  ;;  %v87_v21 = vld [vmem:[#allocation4 + $0x20] sm:$0xff]  ;;  %v88_v22 = vld [vmem:[#allocation4 + $0x28] sm:$0xff]  ;;  %v89_v23 = vld [vmem:[#allocation4 + $0x30] sm:$0xff] }
  0x5e   :  { %v90_v24 = vld [vmem:[#allocation4 + $0x38] sm:$0xff]  ;;  %v91_v25 = vld [vmem:[#allocation4 + $0x40] sm:$0xff]  ;;  %v92_v26 = vld [vmem:[#allocation4 + $0x48] sm:$0xff] }
  0x5f   :  { %3993 = vmatpush1.bf16.msra.mxu1 %v5319_v55  ;;  %v93_v27 = vld [vmem:[#allocation4 + $0x50] sm:$0xff]  ;;  %v94_v29 = vld [vmem:[#allocation4 + $0x58] sm:$0xff]  ;;  %v115_v35 = vld [vmem:[%s6155_s3] sm:$0x3]  ;;  %s5196_s3 = smov [#allocation12]  }
  0x60   :  { %3995 = vmatprep.subr.bf16.mxu1 %v5322_v56  ;;  %3973 = vmatpush1.bf16.msra.mxu0 %v3972_v59  ;;  %v5407_v38 = vrot.slane %v115_v35, %v119_v33  ;;  %v5409_v39 = vrot.slane %v115_v35, %v123_v36  ;;  %v95_v53 = vld [vmem:[#allocation4 + $0x60] sm:$0xff]  ;;  %v96_v54 = vld [vmem:[#allocation4 + $0x68] sm:$0xff]  ;;  %v97_v57 = vld [vmem:[#allocation4 + $0x70] sm:$0xff]  ;;  %s3050_s25 = sshll.u32 %s5196_s3, 4  ;;  %s3051_s25 = int_to_ptr.vmem [resolvable:$true] %s3050_s25 }
  0x61   :  { %4031 = vmatprep.subr.bf16.mxu0 %v5293_v4  ;;  %v98_v58 = vld [vmem:[#allocation4 + $0x78] sm:$0xff]  ;;  %s5131_s28 = scalar_lea.vmem %s3051_s25, 2048  ;;  %p5136_p5 = scmp.lt.s32.totalorder %s3051_s25, %s3051_s25 }
  0x62   :  { %p5132_p4 = scmp.ne.s32.totalorder %s3051_s25, %s5131_s28  ;;  %p5137_p6 = scmp.lt.s32.totalorder %s5131_s28, %s5131_s28 }
  0x63   :  { %3997 = vmatpush1.bf16.msra.mxu1 %v5325_v62  ;;  %3078 = vmatmul.mubr.msk.f32.vlgmr.msra.gmra.mrb[0].mxu0 %vm127_vm0, %v83_v3 }
  0x64   :  { %3999 = vmatprep.subr.bf16.mxu1 %v5328_v63  ;;  %4033 = vmatpush1.bf16.msra.mxu0 %v5295_v8  ;;  %p5138_p7 = por %p5137_p6, %p5136_p5 }
  0x65   :  { %246 = vmatprep.mubr.f32.mxu0 %v5193_v0  ;;  %4035 = vmatprep.subr.bf16.mxu0 %v5297_v9 }
  0x66   :  { %p5139_p8 = pnand %p5138_p7, %p5132_p4 }
  0x67   :  { %4001 = vmatpush1.bf16.msra.mxu1 %v5332_v7  ;;  %3079 = vmatmul.mubr.msk.f32.gmra.mrb[2].mxu0 %vm127_vm0, %v84_v18 }
  0x68   :  { %4003 = vmatprep.subr.bf16.mxu1 %v5336_v10  ;;  %4037 = vmatpush1.bf16.msra.mxu0 %v5301_v14 }
  0x69   :  { %4039 = vmatprep.subr.bf16.mxu0 %v5304_v17  ;;  %252 = vmatprep.mubr.f32.mxu0 %v5193_v0 }
  0x6b   :  { %4005 = vmatpush1.bf16.msra.mxu1 %v5342_v13  ;;  %3080 = vmatmul.mubr.msk.f32.gmra.mrb[4].mxu0 %vm127_vm0, %v85_v19 }
  0x6c   :  { %4041 = vmatpush1.bf16.msra.mxu0 %v5307_v28  ;;  %4006 = vmatprep.subr.bf16.mxu1 %v5194_v16 }
  0x6d   :  { %4043 = vmatprep.subr.bf16.mxu0 %v5310_v32  ;;  %258 = vmatprep.mubr.f32.mxu0 %v5193_v0 }
  0x6e   :  { %469 = vmatmul.mubr.f32.vlgmr.msra.gmra.mrb[0].mxu1 %v5348_v15 }
  0x6f   :  { %4008 = vmatpush3.bf16.msra.mxu1 %v5293_v4  ;;  %3430 = vmatprep.mubr.msk.f32.mxu1 %vm5195_vm1, %v5193_v0 }
  0x70   :  { %4045 = vmatpush1.bf16.msra.mxu0 %v5313_v43  ;;  %4009 = vmatprep.subr.bf16.mxu1 %v5194_v16 }
  0x71   :  { %4047 = vmatprep.subr.bf16.mxu0 %v5316_v46  ;;  %3081 = vmatmul.mubr.msk.f32.gmra.mrb[6].mxu0 %vm127_vm0, %v86_v20 }
  0x72   :  { %264 = vmatprep.mubr.f32.mxu0 %v5193_v0 }
  0x73   :  { %4011 = vmatpush3.bf16.msra.mxu1 %v5297_v9 }
  0x74   :  { %4049 = vmatpush1.bf16.msra.mxu0 %v5319_v55  ;;  %4012 = vmatprep.subr.bf16.mxu1 %v5194_v16 }
  0x75   :  { %4051 = vmatprep.subr.bf16.mxu0 %v5322_v56  ;;  %3082 = vmatmul.mubr.msk.f32.gmra.mrb[8].mxu0 %vm127_vm0, %v87_v21 }
  0x76   :  { %270 = vmatprep.mubr.f32.mxu0 %v5193_v0 }
  0x77   :  { %4014 = vmatpush3.bf16.msra.mxu1 %v5304_v17 }
  0x78   :  { %4053 = vmatpush1.bf16.msra.mxu0 %v5325_v62  ;;  %4015 = vmatprep.subr.bf16.mxu1 %v5194_v16 }
  0x79   :  { %4055 = vmatprep.subr.bf16.mxu0 %v5328_v63  ;;  %3083 = vmatmul.mubr.msk.f32.gmra.mrb[10].mxu0 %vm127_vm0, %v88_v22 }
  0x7a   :  { %276 = vmatprep.mubr.f32.mxu0 %v5193_v0 }
  0x7b   :  { %4017 = vmatpush3.bf16.msra.mxu1 %v5310_v32 }
  0x7c   :  { %4057 = vmatpush1.bf16.msra.mxu0 %v5332_v7  ;;  %4018 = vmatprep.subr.bf16.mxu1 %v5194_v16 }
  0x7d   :  { %4059 = vmatprep.subr.bf16.mxu0 %v5336_v10  ;;  %3084 = vmatmul.mubr.msk.f32.gmra.mrb[12].mxu0 %vm127_vm0, %v89_v23 }
  0x7e   :  { %282 = vmatprep.mubr.f32.mxu0 %v5193_v0 }
  0x7f   :  { %4020 = vmatpush3.bf16.msra.mxu1 %v5316_v46 }
  0x80   :  { %4061 = vmatpush1.bf16.msra.mxu0 %v5342_v13  ;;  %4021 = vmatprep.subr.bf16.mxu1 %v5194_v16 }
  0x81   :  { %4087 = vmatprep.subr.bf16.mxu0 %v5293_v4  ;;  %3085 = vmatmul.mubr.msk.f32.gmra.mrb[14].mxu0 %vm127_vm0, %v90_v24 }
  0x82   :  { %288 = vmatprep.mubr.f32.mxu0 %v5193_v0 }
  0x83   :  { %4023 = vmatpush3.bf16.msra.mxu1 %v5322_v56 }
  0x84   :  { %4024 = vmatprep.subr.bf16.mxu1 %v5194_v16 }
  0x85   :  { %3086 = vmatmul.mubr.msk.f32.gmra.mrb[16].mxu0 %vm127_vm0, %v91_v25 }
  0x86   :  { %294 = vmatprep.mubr.f32.mxu0 %v5193_v0 }
  0x87   :  { %4026 = vmatpush3.bf16.msra.mxu1 %v5328_v63 }
  0x88   :  { %4027 = vmatprep.subr.bf16.mxu1 %v5194_v16 }
  0x89   :  { %3087 = vmatmul.mubr.msk.f32.gmra.mrb[18].mxu0 %vm127_vm0, %v92_v26 }
  0x8a   :  { %300 = vmatprep.mubr.f32.mxu0 %v5193_v0 }
  0x8b   :  { %4029 = vmatpush3.bf16.msra.mxu1 %v5336_v10 }
  0x8c   :  { %4062 = vmatprep.subr.bf16.mxu1 %v5194_v16 }
  0x8d   :  { %3088 = vmatmul.mubr.msk.f32.gmra.mrb[20].mxu0 %vm127_vm0, %v93_v27 }
  0x8e   :  { %306 = vmatprep.mubr.f32.mxu0 %v5193_v0 }
  0x91   :  { %3089 = vmatmul.mubr.msk.f32.gmra.mrb[22].mxu0 %vm127_vm0, %v94_v29 }
  0x92   :  { %312 = vmatprep.mubr.f32.mxu0 %v5193_v0 }
  0x95   :  { %3090 = vmatmul.mubr.msk.f32.gmra.mrb[24].mxu0 %vm127_vm0, %v95_v53 }
  0x96   :  { %318 = vmatprep.mubr.f32.mxu0 %v5193_v0 }
  0x99   :  { %3091 = vmatmul.mubr.msk.f32.gmra.mrb[26].mxu0 %vm127_vm0, %v96_v54 }
  0x9a   :  { %324 = vmatprep.mubr.f32.mxu0 %v5193_v0 }
  0x9d   :  { %3092 = vmatmul.mubr.msk.f32.gmra.mrb[28].mxu0 %vm127_vm0, %v97_v57 }
  0x9e   :  { %330 = vmatprep.mubr.f32.mxu0 %v5193_v0 }
  0xa1   :  { %3093 = vmatmul.mubr.msk.f32.gmra.mrb[30].mxu0 %vm127_vm0, %v98_v58 }
  0xa2   :  { %632 = vmatprep.mubr.f32.mxu0 %v5193_v0 }
 0x136   :  { %v242_v34 = vpop.f32.mrb[0].mxu0 }
 0x137   :  { %v244_v37 = vpop.f32.mrb[1].mxu0  ;;  %v243_v40 = vadd.f32 %v242_v34, %v5407_v38 }
 0x138   :  { %v5413_v41 = vadd.f32 %v244_v37, %v5409_v39 }
 0x13a   :  { %v248_v59 = vpop.f32.mrb[2].mxu0 }
 0x13b   :  { %v250_v60 = vpop.f32.mrb[3].mxu0  ;;  %v249_v53 = vadd.f32 %v248_v59, %v5407_v38 }
 0x13c   :  { %v251_v54 = vadd.f32 %v250_v60, %v5409_v39 }
 0x13e   :  { %v5443_v61 = vpop.f32.mrb[4].mxu0 }
 0x13f   :  { %v5445_v1 = vpop.f32.mrb[5].mxu0 }
 0x141   :  { %v470_v42 = vpop.f32.mrb[0].mxu1 }
 0x142   :  { %v475_v44 = vadd.f32 %v470_v42, %v243_v40  ;;  %v472_v45 = vpop.f32.mrb[1].mxu1 }
 0x143   :  { %v476_v47 = vadd.f32 %v472_v45, %v5413_v41 }
 0x144   :  { %v5447_v2 = vpop.f32.mrb[6].mxu0  ;;  %v3094_v31 = vmul.f32 -1.442695, %v475_v44 }
 0x145   :  { %v3095_v48 = vmul.f32 -1.442695, %v476_v47  ;;  %v5449_v3 = vpop.f32.mrb[7].mxu0 }
 0x147   :  { %4883 = vpow2.f32 %v3095_v48 }
 0x148   :  { %v5451_v5 = vpop.f32.mrb[8].mxu0 }
 0x149   :  { %v5453_v6 = vpop.f32.mrb[9].mxu0 }
 0x14c   :  { %v5455_v11 = vpop.f32.mrb[10].mxu0 }
 0x14d   :  { %v5457_v12 = vpop.f32.mrb[11].mxu0 }
 0x150   :  { %v5459_v18 = vpop.f32.mrb[12].mxu0 }
 0x151   :  { %v4884_v49 = vpop.eup %4883  ;;  %v5461_v19 = vpop.f32.mrb[13].mxu0 }
 0x152   :  { %v484_v50 = vadd.f32 1.0, %v4884_v49 }
 0x154   :  { %4885 = vrcp.f32 %v484_v50  ;;  %v5463_v20 = vpop.f32.mrb[14].mxu0 }
 0x155   :  { %v5465_v21 = vpop.f32.mrb[15].mxu0  ;;  %4887 = vpow2.f32 %v3094_v31 }
 0x158   :  { %v5467_v22 = vpop.f32.mrb[16].mxu0 }
 0x159   :  { %v5469_v23 = vpop.f32.mrb[17].mxu0 }
 0x15c   :  { %v5471_v24 = vpop.f32.mrb[18].mxu0 }
 0x15d   :  { %v5473_v25 = vpop.f32.mrb[19].mxu0 }
 0x15e   :  { %v4886_v51 = vpop.eup %4885 }
 0x15f   :  { %v489_v52 = vmul.f32 %v4886_v51, %v5348_v15  ;;  %v4888_v33 = vpop.eup %4887 }
 0x160   :  { %v5475_v26 = vpop.f32.mrb[20].mxu0  ;;  %v483_v35 = vadd.f32 1.0, %v4888_v33 }
 0x161   :  { %3431 = vmatmul.mubr.f32.vlgmr.msra.gmra.mrb[2].mxu1 %v489_v52  ;;  %v5477_v27 = vpop.f32.mrb[21].mxu0 }
 0x162   :  { %4064 = vmatpush3.bf16.msra.mxu1 %v5293_v4  ;;  %3465 = vmatprep.mubr.msk.f32.mxu1 %vm5195_vm1, %v5193_v0 }
 0x163   :  { %4065 = vmatprep.subr.bf16.mxu1 %v5194_v16 }
 0x164   :  { %v5479_v29 = vpop.f32.mrb[22].mxu0 }
 0x165   :  { %v5481_v30 = vpop.f32.mrb[23].mxu0 }
 0x166   :  { %4067 = vmatpush3.bf16.msra.mxu1 %v5297_v9 }
 0x167   :  { %4068 = vmatprep.subr.bf16.mxu1 %v5194_v16 }
 0x16a   :  { %4070 = vmatpush3.bf16.msra.mxu1 %v5304_v17 }
 0x16b   :  { %4071 = vmatprep.subr.bf16.mxu1 %v5194_v16 }
 0x16e   :  { %4073 = vmatpush3.bf16.msra.mxu1 %v5310_v32 }
 0x16f   :  { %4074 = vmatprep.subr.bf16.mxu1 %v5194_v16 }
 0x172   :  { %4076 = vmatpush3.bf16.msra.mxu1 %v5316_v46 }
 0x173   :  { %4077 = vmatprep.subr.bf16.mxu1 %v5194_v16 }
 0x176   :  { %4079 = vmatpush3.bf16.msra.mxu1 %v5322_v56 }
 0x177   :  { %4080 = vmatprep.subr.bf16.mxu1 %v5194_v16 }
 0x17a   :  { %4082 = vmatpush3.bf16.msra.mxu1 %v5328_v63 }
 0x17b   :  { %4083 = vmatprep.subr.bf16.mxu1 %v5194_v16 }
 0x17e   :  { %4085 = vmatpush3.bf16.msra.mxu1 %v5336_v10 }
 0x17f   :  { %4118 = vmatprep.subr.bf16.mxu1 %v5194_v16 }
 0x234   :  { %v556_v34 = vpop.f32.mrb[2].mxu1 }
 0x235   :  { %v560_v36 = vadd.f32 %v556_v34, %v5413_v41  ;;  %v3432_v37 = vpop.f32.mrb[3].mxu1 }
 0x237   :  { %4889 = vtanh.f32 %v560_v36 }
 0x238   :  { %4891 = vrcp.f32 %v483_v35 }
 0x241   :  { %v4890_v40 = vpop.eup %4889 }
 0x242   :  { %v562_v42 = vsub.f32 %v5348_v15, %v4890_v40  ;;  %v4892_v45 = vpop.eup %4891  ;;  %v5506_v15 = vpop.f32.mrb[24].mxu0 }
 0x243   :  { %v5508_v41 = vpop.f32.mrb[25].mxu0 }
 0x244   :  { %v5485_v47 = vmul.f32 %v4892_v45, %v562_v42  ;;  %v5510_v44 = vpop.f32.mrb[26].mxu0 }
 0x245   :  { %v5512_v48 = vpop.f32.mrb[27].mxu0 }
 0x246   :  { %564 = vst [vmem:[#allocation12] sm:$0xff] %v5485_v47  ;;  %633 = vmatmul.mubr.f32.vlgmr.msra.gmra.mrb[32].mxu0 %v5485_v47  ;;  %v5514_v49 = vpop.f32.mrb[28].mxu0 }
 0x247   :  { %4089 = vmatpush1.bf16.msra.mxu0 %v5295_v8  ;;  %797 = vmatprep.mubr.f32.mxu0 %v5193_v0  ;;  %v5516_v50 = vpop.f32.mrb[29].mxu0 }
 0x248   :  { %4091 = vmatprep.subr.bf16.mxu0 %v5297_v9  ;;  %v5518_v51 = vpop.f32.mrb[30].mxu0 }
 0x249   :  { %v5520_v52 = vpop.f32.mrb[31].mxu0 }
 0x24b   :  { %4093 = vmatpush1.bf16.msra.mxu0 %v5301_v14 }
 0x24c   :  { %4095 = vmatprep.subr.bf16.mxu0 %v5304_v17 }
 0x24f   :  { %4097 = vmatpush1.bf16.msra.mxu0 %v5307_v28 }
 0x250   :  { %4099 = vmatprep.subr.bf16.mxu0 %v5310_v32 }
 0x253   :  { %4101 = vmatpush1.bf16.msra.mxu0 %v5313_v43 }
 0x254   :  { %4103 = vmatprep.subr.bf16.mxu0 %v5316_v46 }
 0x257   :  { %4105 = vmatpush1.bf16.msra.mxu0 %v5319_v55 }
 0x258   :  { %4107 = vmatprep.subr.bf16.mxu0 %v5322_v56 }
 0x25b   :  { %4109 = vmatpush1.bf16.msra.mxu0 %v5325_v62 }
 0x25c   :  { %4111 = vmatprep.subr.bf16.mxu0 %v5328_v63 }
 0x25f   :  { %4113 = vmatpush1.bf16.msra.mxu0 %v5332_v7 }
 0x260   :  { %4115 = vmatprep.subr.bf16.mxu0 %v5336_v10 }
 0x263   :  { %4117 = vmatpush1.bf16.msra.mxu0 %v5342_v13 }
 0x264   :  { %4143 = vmatprep.subr.bf16.mxu0 %v5293_v4 }
 0x319   :  { %v634_v57 = vpop.f32.mrb[32].mxu0 }
 0x31a   :  { %v639_v58 = vadd.f32 %v634_v57, %v249_v53  ;;  %v636_v31 = vpop.f32.mrb[33].mxu0 }
 0x31b   :  { %v640_v33 = vadd.f32 %v636_v31, %v251_v54 }
 0x31c   :  { %v3096_v59 = vmul.f32 -1.442695, %v639_v58 }
 0x31d   :  { %v3097_v34 = vmul.f32 -1.442695, %v640_v33 }
 0x31f   :  { %4893 = vpow2.f32 %v3097_v34 }
 0x329   :  { %v4894_v35 = vpop.eup %4893 }
 0x32a   :  { %v648_v36 = vadd.f32 1.0, %v4894_v35 }
 0x32c   :  { %4895 = vrcp.f32 %v648_v36 }
 0x32d   :  { %4897 = vpow2.f32 %v3096_v59 }
 0x336   :  { %v4896_v37 = vpop.eup %4895 }
 0x337   :  { %v653_v40 = vmul.f32 %v4896_v37, %v5485_v47  ;;  %v4898_v60 = vpop.eup %4897 }
 0x338   :  { %v647_v45 = vadd.f32 1.0, %v4898_v60 }
 0x339   :  { %3466 = vmatmul.mubr.f32.vlgmr.msra.gmra.mrb[4].mxu1 %v653_v40 }
 0x33a   :  { %4120 = vmatpush3.bf16.msra.mxu1 %v5293_v4  ;;  %3500 = vmatprep.mubr.msk.f32.mxu1 %vm5195_vm1, %v5193_v0 }
 0x33b   :  { %4121 = vmatprep.subr.bf16.mxu1 %v5194_v16 }
 0x33e   :  { %4123 = vmatpush3.bf16.msra.mxu1 %v5297_v9 }
 0x33f   :  { %4124 = vmatprep.subr.bf16.mxu1 %v5194_v16 }
 0x342   :  { %4126 = vmatpush3.bf16.msra.mxu1 %v5304_v17 }
 0x343   :  { %4127 = vmatprep.subr.bf16.mxu1 %v5194_v16 }
 0x346   :  { %4129 = vmatpush3.bf16.msra.mxu1 %v5310_v32 }
 0x347   :  { %4130 = vmatprep.subr.bf16.mxu1 %v5194_v16 }
 0x34a   :  { %4132 = vmatpush3.bf16.msra.mxu1 %v5316_v46 }
 0x34b   :  { %4133 = vmatprep.subr.bf16.mxu1 %v5194_v16 }
 0x34e   :  { %4135 = vmatpush3.bf16.msra.mxu1 %v5322_v56 }
 0x34f   :  { %4136 = vmatprep.subr.bf16.mxu1 %v5194_v16 }
 0x352   :  { %4138 = vmatpush3.bf16.msra.mxu1 %v5328_v63 }
 0x353   :  { %4139 = vmatprep.subr.bf16.mxu1 %v5194_v16 }
 0x356   :  { %4141 = vmatpush3.bf16.msra.mxu1 %v5336_v10 }
 0x357   :  { %4174 = vmatprep.subr.bf16.mxu1 %v5194_v16 }
 0x40c   :  { %v720_v42 = vpop.f32.mrb[4].mxu1 }
 0x40d   :  { %v724_v53 = vadd.f32 %v720_v42, %v251_v54  ;;  %v3467_v57 = vpop.f32.mrb[5].mxu1  ;;  %v257_v54 = vadd.f32 %v5445_v1, %v5409_v39 }
 0x40f   :  { %4899 = vtanh.f32 %v724_v53 }
 0x410   :  { %4901 = vrcp.f32 %v647_v45 }
 0x419   :  { %v4900_v31 = vpop.eup %4899 }
 0x41a   :  { %v726_v33 = vsub.f32 %v5485_v47, %v4900_v31  ;;  %v4902_v34 = vpop.eup %4901  ;;  %v255_v47 = vadd.f32 %v5443_v61, %v5407_v38 }
 0x41c   :  { %v5544_v35 = vmul.f32 %v4902_v34, %v726_v33 }
 0x41e   :  { %729 = vst [vmem:[#allocation12 + $0x8] sm:$0xff] %v5544_v35  ;;  %798 = vmatmul.mubr.f32.vlgmr.msra.gmra.mrb[34].mxu0 %v5544_v35 }
 0x41f   :  { %4145 = vmatpush1.bf16.msra.mxu0 %v5295_v8  ;;  %962 = vmatprep.mubr.f32.mxu0 %v5193_v0 }
 0x420   :  { %4147 = vmatprep.subr.bf16.mxu0 %v5297_v9 }
 0x423   :  { %4149 = vmatpush1.bf16.msra.mxu0 %v5301_v14 }
 0x424   :  { %4151 = vmatprep.subr.bf16.mxu0 %v5304_v17 }
 0x427   :  { %4153 = vmatpush1.bf16.msra.mxu0 %v5307_v28 }
 0x428   :  { %4155 = vmatprep.subr.bf16.mxu0 %v5310_v32 }
 0x42b   :  { %4157 = vmatpush1.bf16.msra.mxu0 %v5313_v43 }
 0x42c   :  { %4159 = vmatprep.subr.bf16.mxu0 %v5316_v46 }
 0x42f   :  { %4161 = vmatpush1.bf16.msra.mxu0 %v5319_v55 }
 0x430   :  { %4163 = vmatprep.subr.bf16.mxu0 %v5322_v56 }
 0x433   :  { %4165 = vmatpush1.bf16.msra.mxu0 %v5325_v62 }
 0x434   :  { %4167 = vmatprep.subr.bf16.mxu0 %v5328_v63 }
 0x437   :  { %4169 = vmatpush1.bf16.msra.mxu0 %v5332_v7 }
 0x438   :  { %4171 = vmatprep.subr.bf16.mxu0 %v5336_v10 }
 0x43b   :  { %4173 = vmatpush1.bf16.msra.mxu0 %v5342_v13 }
 0x43c   :  { %4199 = vmatprep.subr.bf16.mxu0 %v5293_v4 }
 0x4f1   :  { %v799_v58 = vpop.f32.mrb[34].mxu0 }
 0x4f2   :  { %v804_v36 = vadd.f32 %v799_v58, %v255_v47  ;;  %v801_v37 = vpop.f32.mrb[35].mxu0 }
 0x4f3   :  { %v805_v40 = vadd.f32 %v801_v37, %v257_v54 }
 0x4f4   :  { %v3098_v61 = vmul.f32 -1.442695, %v804_v36 }
 0x4f5   :  { %v3099_v59 = vmul.f32 -1.442695, %v805_v40 }
 0x4f7   :  { %4903 = vpow2.f32 %v3099_v59 }
 0x501   :  { %v4904_v60 = vpop.eup %4903 }
 0x502   :  { %v813_v42 = vadd.f32 1.0, %v4904_v60 }
 0x504   :  { %4905 = vrcp.f32 %v813_v42 }
 0x505   :  { %4907 = vpow2.f32 %v3098_v61 }
 0x50e   :  { %v4906_v45 = vpop.eup %4905 }
 0x50f   :  { %v818_v53 = vmul.f32 %v4906_v45, %v5544_v35  ;;  %v4908_v1 = vpop.eup %4907 }
 0x510   :  { %v812_v31 = vadd.f32 1.0, %v4908_v1 }
 0x511   :  { %3501 = vmatmul.mubr.f32.vlgmr.msra.gmra.mrb[6].mxu1 %v818_v53 }
 0x512   :  { %4176 = vmatpush3.bf16.msra.mxu1 %v5293_v4  ;;  %3535 = vmatprep.mubr.msk.f32.mxu1 %vm5195_vm1, %v5193_v0 }
 0x513   :  { %4177 = vmatprep.subr.bf16.mxu1 %v5194_v16 }
 0x516   :  { %4179 = vmatpush3.bf16.msra.mxu1 %v5297_v9 }
 0x517   :  { %4180 = vmatprep.subr.bf16.mxu1 %v5194_v16 }
 0x51a   :  { %4182 = vmatpush3.bf16.msra.mxu1 %v5304_v17 }
 0x51b   :  { %4183 = vmatprep.subr.bf16.mxu1 %v5194_v16 }
 0x51e   :  { %4185 = vmatpush3.bf16.msra.mxu1 %v5310_v32 }
 0x51f   :  { %4186 = vmatprep.subr.bf16.mxu1 %v5194_v16 }
 0x522   :  { %4188 = vmatpush3.bf16.msra.mxu1 %v5316_v46 }
 0x523   :  { %4189 = vmatprep.subr.bf16.mxu1 %v5194_v16 }
 0x526   :  { %4191 = vmatpush3.bf16.msra.mxu1 %v5322_v56 }
 0x527   :  { %4192 = vmatprep.subr.bf16.mxu1 %v5194_v16 }
 0x52a   :  { %4194 = vmatpush3.bf16.msra.mxu1 %v5328_v63 }
 0x52b   :  { %4195 = vmatprep.subr.bf16.mxu1 %v5194_v16 }
 0x52e   :  { %4197 = vmatpush3.bf16.msra.mxu1 %v5336_v10 }
 0x52f   :  { %4230 = vmatprep.subr.bf16.mxu1 %v5194_v16 }
 0x5e4   :  { %v885_v57 = vpop.f32.mrb[6].mxu1 }
 0x5e5   :  { %v889_v33 = vadd.f32 %v885_v57, %v257_v54  ;;  %v3502_v34 = vpop.f32.mrb[7].mxu1  ;;  %v263_v54 = vadd.f32 %v5449_v3, %v5409_v39 }
 0x5e7   :  { %4909 = vtanh.f32 %v889_v33 }
 0x5e8   :  { %4911 = vrcp.f32 %v812_v31 }
 0x5f1   :  { %v4910_v47 = vpop.eup %4909 }
 0x5f2   :  { %v891_v58 = vsub.f32 %v5544_v35, %v4910_v47  ;;  %v4912_v37 = vpop.eup %4911  ;;  %v261_v35 = vadd.f32 %v5447_v2, %v5407_v38 }
 0x5f4   :  { %v5589_v40 = vmul.f32 %v4912_v37, %v891_v58 }
 0x5f6   :  { %894 = vst [vmem:[#allocation12 + $0x10] sm:$0xff] %v5589_v40  ;;  %963 = vmatmul.mubr.f32.vlgmr.msra.gmra.mrb[36].mxu0 %v5589_v40 }
 0x5f7   :  { %4201 = vmatpush1.bf16.msra.mxu0 %v5295_v8  ;;  %1127 = vmatprep.mubr.f32.mxu0 %v5193_v0 }
 0x5f8   :  { %4203 = vmatprep.subr.bf16.mxu0 %v5297_v9 }
 0x5fb   :  { %4205 = vmatpush1.bf16.msra.mxu0 %v5301_v14 }
 0x5fc   :  { %4207 = vmatprep.subr.bf16.mxu0 %v5304_v17 }
 0x5ff   :  { %4209 = vmatpush1.bf16.msra.mxu0 %v5307_v28 }
 0x600   :  { %4211 = vmatprep.subr.bf16.mxu0 %v5310_v32 }
 0x603   :  { %4213 = vmatpush1.bf16.msra.mxu0 %v5313_v43 }
 0x604   :  { %4215 = vmatprep.subr.bf16.mxu0 %v5316_v46 }
 0x607   :  { %4217 = vmatpush1.bf16.msra.mxu0 %v5319_v55 }
 0x608   :  { %4219 = vmatprep.subr.bf16.mxu0 %v5322_v56 }
 0x60b   :  { %4221 = vmatpush1.bf16.msra.mxu0 %v5325_v62 }
 0x60c   :  { %4223 = vmatprep.subr.bf16.mxu0 %v5328_v63 }
 0x60f   :  { %4225 = vmatpush1.bf16.msra.mxu0 %v5332_v7 }
 0x610   :  { %4227 = vmatprep.subr.bf16.mxu0 %v5336_v10 }
 0x613   :  { %4229 = vmatpush1.bf16.msra.mxu0 %v5342_v13 }
 0x614   :  { %4255 = vmatprep.subr.bf16.mxu0 %v5293_v4 }
 0x6c9   :  { %v964_v36 = vpop.f32.mrb[36].mxu0 }
 0x6ca   :  { %v969_v59 = vadd.f32 %v964_v36, %v261_v35  ;;  %v966_v60 = vpop.f32.mrb[37].mxu0 }
 0x6cb   :  { %v970_v42 = vadd.f32 %v966_v60, %v263_v54 }
 0x6cc   :  { %v3100_v2 = vmul.f32 -1.442695, %v969_v59 }
 0x6cd   :  { %v3101_v45 = vmul.f32 -1.442695, %v970_v42 }
 0x6cf   :  { %4913 = vpow2.f32 %v3101_v45 }
 0x6d9   :  { %v4914_v53 = vpop.eup %4913 }
 0x6da   :  { %v978_v61 = vadd.f32 1.0, %v4914_v53 }
 0x6dc   :  { %4915 = vrcp.f32 %v978_v61 }
 0x6dd   :  { %4917 = vpow2.f32 %v3100_v2 }
 0x6e6   :  { %v4916_v1 = vpop.eup %4915 }
 0x6e7   :  { %v983_v57 = vmul.f32 %v4916_v1, %v5589_v40  ;;  %v4918_v3 = vpop.eup %4917 }
 0x6e8   :  { %v977_v33 = vadd.f32 1.0, %v4918_v3 }
 0x6e9   :  { %3536 = vmatmul.mubr.f32.vlgmr.msra.gmra.mrb[8].mxu1 %v983_v57 }
 0x6ea   :  { %4232 = vmatpush3.bf16.msra.mxu1 %v5293_v4  ;;  %3570 = vmatprep.mubr.msk.f32.mxu1 %vm5195_vm1, %v5193_v0 }
 0x6eb   :  { %4233 = vmatprep.subr.bf16.mxu1 %v5194_v16 }
 0x6ee   :  { %4235 = vmatpush3.bf16.msra.mxu1 %v5297_v9 }
 0x6ef   :  { %4236 = vmatprep.subr.bf16.mxu1 %v5194_v16 }
 0x6f2   :  { %4238 = vmatpush3.bf16.msra.mxu1 %v5304_v17 }
 0x6f3   :  { %4239 = vmatprep.subr.bf16.mxu1 %v5194_v16 }
 0x6f6   :  { %4241 = vmatpush3.bf16.msra.mxu1 %v5310_v32 }
 0x6f7   :  { %4242 = vmatprep.subr.bf16.mxu1 %v5194_v16 }
 0x6fa   :  { %4244 = vmatpush3.bf16.msra.mxu1 %v5316_v46 }
 0x6fb   :  { %4245 = vmatprep.subr.bf16.mxu1 %v5194_v16 }
 0x6fe   :  { %4247 = vmatpush3.bf16.msra.mxu1 %v5322_v56 }
 0x6ff   :  { %4248 = vmatprep.subr.bf16.mxu1 %v5194_v16 }
 0x702   :  { %4250 = vmatpush3.bf16.msra.mxu1 %v5328_v63 }
 0x703   :  { %4251 = vmatprep.subr.bf16.mxu1 %v5194_v16 }
 0x706   :  { %4253 = vmatpush3.bf16.msra.mxu1 %v5336_v10 }
 0x707   :  { %4286 = vmatprep.subr.bf16.mxu1 %v5194_v16 }
 0x7bc   :  { %v1050_v31 = vpop.f32.mrb[8].mxu1 }
 0x7bd   :  { %v1054_v34 = vadd.f32 %v1050_v31, %v263_v54  ;;  %v3537_v47 = vpop.f32.mrb[9].mxu1  ;;  %v269_v54 = vadd.f32 %v5453_v6, %v5409_v39 }
 0x7bf   :  { %4919 = vtanh.f32 %v1054_v34 }
 0x7c0   :  { %4921 = vrcp.f32 %v977_v33 }
 0x7c9   :  { %v4920_v58 = vpop.eup %4919 }
 0x7ca   :  { %v1056_v37 = vsub.f32 %v5589_v40, %v4920_v58  ;;  %v4922_v35 = vpop.eup %4921  ;;  %v267_v40 = vadd.f32 %v5451_v5, %v5407_v38 }
 0x7cc   :  { %v5634_v36 = vmul.f32 %v4922_v35, %v1056_v37 }
 0x7ce   :  { %1059 = vst [vmem:[#allocation12 + $0x18] sm:$0xff] %v5634_v36  ;;  %1128 = vmatmul.mubr.f32.vlgmr.msra.gmra.mrb[38].mxu0 %v5634_v36 }
 0x7cf   :  { %4257 = vmatpush1.bf16.msra.mxu0 %v5295_v8  ;;  %1292 = vmatprep.mubr.f32.mxu0 %v5193_v0 }
 0x7d0   :  { %4259 = vmatprep.subr.bf16.mxu0 %v5297_v9 }
 0x7d3   :  { %4261 = vmatpush1.bf16.msra.mxu0 %v5301_v14 }
 0x7d4   :  { %4263 = vmatprep.subr.bf16.mxu0 %v5304_v17 }
 0x7d7   :  { %4265 = vmatpush1.bf16.msra.mxu0 %v5307_v28 }
 0x7d8   :  { %4267 = vmatprep.subr.bf16.mxu0 %v5310_v32 }
 0x7db   :  { %4269 = vmatpush1.bf16.msra.mxu0 %v5313_v43 }
 0x7dc   :  { %4271 = vmatprep.subr.bf16.mxu0 %v5316_v46 }
 0x7df   :  { %4273 = vmatpush1.bf16.msra.mxu0 %v5319_v55 }
 0x7e0   :  { %4275 = vmatprep.subr.bf16.mxu0 %v5322_v56 }
 0x7e3   :  { %4277 = vmatpush1.bf16.msra.mxu0 %v5325_v62 }
 0x7e4   :  { %4279 = vmatprep.subr.bf16.mxu0 %v5328_v63 }
 0x7e7   :  { %4281 = vmatpush1.bf16.msra.mxu0 %v5332_v7 }
 0x7e8   :  { %4283 = vmatprep.subr.bf16.mxu0 %v5336_v10 }
 0x7eb   :  { %4285 = vmatpush1.bf16.msra.mxu0 %v5342_v13 }
 0x7ec   :  { %4311 = vmatprep.subr.bf16.mxu0 %v5293_v4 }
 0x8a1   :  { %v1129_v59 = vpop.f32.mrb[38].mxu0 }
 0x8a2   :  { %v1134_v60 = vadd.f32 %v1129_v59, %v267_v40  ;;  %v1131_v42 = vpop.f32.mrb[39].mxu0  ;;  %v275_v40 = vadd.f32 %v5457_v12, %v5409_v39 }
 0x8a3   :  { %v1135_v45 = vadd.f32 %v1131_v42, %v269_v54 }
 0x8a4   :  { %v3102_v5 = vmul.f32 -1.442695, %v1134_v60 }
 0x8a5   :  { %v3103_v53 = vmul.f32 -1.442695, %v1135_v45 }
 0x8a7   :  { %4923 = vpow2.f32 %v3103_v53 }
 0x8b1   :  { %v4924_v61 = vpop.eup %4923 }
 0x8b2   :  { %v1143_v1 = vadd.f32 1.0, %v4924_v61 }
 0x8b4   :  { %4925 = vrcp.f32 %v1143_v1 }
 0x8b5   :  { %4927 = vpow2.f32 %v3102_v5 }
 0x8be   :  { %v4926_v57 = vpop.eup %4925 }
 0x8bf   :  { %v1148_v2 = vmul.f32 %v4926_v57, %v5634_v36  ;;  %v4928_v6 = vpop.eup %4927 }
 0x8c0   :  { %v1142_v31 = vadd.f32 1.0, %v4928_v6 }
 0x8c1   :  { %3571 = vmatmul.mubr.f32.vlgmr.msra.gmra.mrb[10].mxu1 %v1148_v2 }
 0x8c2   :  { %4288 = vmatpush3.bf16.msra.mxu1 %v5293_v4  ;;  %3605 = vmatprep.mubr.msk.f32.mxu1 %vm5195_vm1, %v5193_v0 }
 0x8c3   :  { %4289 = vmatprep.subr.bf16.mxu1 %v5194_v16 }
 0x8c6   :  { %4291 = vmatpush3.bf16.msra.mxu1 %v5297_v9 }
 0x8c7   :  { %4292 = vmatprep.subr.bf16.mxu1 %v5194_v16 }
 0x8ca   :  { %4294 = vmatpush3.bf16.msra.mxu1 %v5304_v17 }
 0x8cb   :  { %4295 = vmatprep.subr.bf16.mxu1 %v5194_v16 }
 0x8ce   :  { %4297 = vmatpush3.bf16.msra.mxu1 %v5310_v32 }
 0x8cf   :  { %4298 = vmatprep.subr.bf16.mxu1 %v5194_v16 }
 0x8d2   :  { %4300 = vmatpush3.bf16.msra.mxu1 %v5316_v46 }
 0x8d3   :  { %4301 = vmatprep.subr.bf16.mxu1 %v5194_v16 }
 0x8d6   :  { %4303 = vmatpush3.bf16.msra.mxu1 %v5322_v56 }
 0x8d7   :  { %4304 = vmatprep.subr.bf16.mxu1 %v5194_v16 }
 0x8da   :  { %4306 = vmatpush3.bf16.msra.mxu1 %v5328_v63 }
 0x8db   :  { %4307 = vmatprep.subr.bf16.mxu1 %v5194_v16 }
 0x8de   :  { %4309 = vmatpush3.bf16.msra.mxu1 %v5336_v10 }
 0x8df   :  { %4342 = vmatprep.subr.bf16.mxu1 %v5194_v16 }
 0x994   :  { %v1215_v3 = vpop.f32.mrb[10].mxu1 }
 0x995   :  { %v1219_v33 = vadd.f32 %v1215_v3, %v269_v54  ;;  %v3572_v34 = vpop.f32.mrb[11].mxu1 }
 0x997   :  { %4929 = vtanh.f32 %v1219_v33 }
 0x998   :  { %4931 = vrcp.f32 %v1142_v31 }
 0x9a1   :  { %v4930_v47 = vpop.eup %4929 }
 0x9a2   :  { %v1221_v58 = vsub.f32 %v5634_v36, %v4930_v47  ;;  %v4932_v37 = vpop.eup %4931  ;;  %v273_v36 = vadd.f32 %v5455_v11, %v5407_v38 }
 0x9a4   :  { %v5679_v35 = vmul.f32 %v4932_v37, %v1221_v58  ;;  %v279_v58 = vadd.f32 %v5459_v18, %v5407_v38  ;;  %v281_v37 = vadd.f32 %v5461_v19, %v5409_v39 }
 0x9a6   :  { %1224 = vst [vmem:[#allocation12 + $0x20] sm:$0xff] %v5679_v35  ;;  %1293 = vmatmul.mubr.f32.vlgmr.msra.gmra.mrb[40].mxu0 %v5679_v35 }
 0x9a7   :  { %4313 = vmatpush1.bf16.msra.mxu0 %v5295_v8  ;;  %1457 = vmatprep.mubr.f32.mxu0 %v5193_v0 }
 0x9a8   :  { %4315 = vmatprep.subr.bf16.mxu0 %v5297_v9 }
 0x9ab   :  { %4317 = vmatpush1.bf16.msra.mxu0 %v5301_v14 }
 0x9ac   :  { %4319 = vmatprep.subr.bf16.mxu0 %v5304_v17 }
 0x9af   :  { %4321 = vmatpush1.bf16.msra.mxu0 %v5307_v28 }
 0x9b0   :  { %4323 = vmatprep.subr.bf16.mxu0 %v5310_v32 }
 0x9b3   :  { %4325 = vmatpush1.bf16.msra.mxu0 %v5313_v43 }
 0x9b4   :  { %4327 = vmatprep.subr.bf16.mxu0 %v5316_v46 }
 0x9b7   :  { %4329 = vmatpush1.bf16.msra.mxu0 %v5319_v55 }
 0x9b8   :  { %4331 = vmatprep.subr.bf16.mxu0 %v5322_v56 }
 0x9bb   :  { %4333 = vmatpush1.bf16.msra.mxu0 %v5325_v62 }
 0x9bc   :  { %4335 = vmatprep.subr.bf16.mxu0 %v5328_v63 }
 0x9bf   :  { %4337 = vmatpush1.bf16.msra.mxu0 %v5332_v7 }
 0x9c0   :  { %4339 = vmatprep.subr.bf16.mxu0 %v5336_v10 }
 0x9c3   :  { %4341 = vmatpush1.bf16.msra.mxu0 %v5342_v13 }
 0x9c4   :  { %4367 = vmatprep.subr.bf16.mxu0 %v5293_v4 }
 0xa79   :  { %v1294_v54 = vpop.f32.mrb[40].mxu0 }
 0xa7a   :  { %v1299_v59 = vadd.f32 %v1294_v54, %v273_v36  ;;  %v1296_v60 = vpop.f32.mrb[41].mxu0 }
 0xa7b   :  { %v1300_v42 = vadd.f32 %v1296_v60, %v275_v40 }
 0xa7c   :  { %v3104_v11 = vmul.f32 -1.442695, %v1299_v59 }
 0xa7d   :  { %v3105_v45 = vmul.f32 -1.442695, %v1300_v42 }
 0xa7f   :  { %4933 = vpow2.f32 %v3105_v45 }
 0xa89   :  { %v4934_v53 = vpop.eup %4933 }
 0xa8a   :  { %v1308_v61 = vadd.f32 1.0, %v4934_v53 }
 0xa8c   :  { %4935 = vrcp.f32 %v1308_v61 }
 0xa8d   :  { %4937 = vpow2.f32 %v3104_v11 }
 0xa96   :  { %v4936_v1 = vpop.eup %4935 }
 0xa97   :  { %v1313_v57 = vmul.f32 %v4936_v1, %v5679_v35  ;;  %v4938_v12 = vpop.eup %4937 }
 0xa98   :  { %v1307_v5 = vadd.f32 1.0, %v4938_v12 }
 0xa99   :  { %3606 = vmatmul.mubr.f32.vlgmr.msra.gmra.mrb[12].mxu1 %v1313_v57 }
 0xa9a   :  { %4344 = vmatpush3.bf16.msra.mxu1 %v5293_v4  ;;  %3640 = vmatprep.mubr.msk.f32.mxu1 %vm5195_vm1, %v5193_v0 }
 0xa9b   :  { %4345 = vmatprep.subr.bf16.mxu1 %v5194_v16 }
 0xa9e   :  { %4347 = vmatpush3.bf16.msra.mxu1 %v5297_v9 }
 0xa9f   :  { %4348 = vmatprep.subr.bf16.mxu1 %v5194_v16 }
 0xaa2   :  { %4350 = vmatpush3.bf16.msra.mxu1 %v5304_v17 }
 0xaa3   :  { %4351 = vmatprep.subr.bf16.mxu1 %v5194_v16 }
 0xaa6   :  { %4353 = vmatpush3.bf16.msra.mxu1 %v5310_v32 }
 0xaa7   :  { %4354 = vmatprep.subr.bf16.mxu1 %v5194_v16 }
 0xaaa   :  { %4356 = vmatpush3.bf16.msra.mxu1 %v5316_v46 }
 0xaab   :  { %4357 = vmatprep.subr.bf16.mxu1 %v5194_v16 }
 0xaae   :  { %4359 = vmatpush3.bf16.msra.mxu1 %v5322_v56 }
 0xaaf   :  { %4360 = vmatprep.subr.bf16.mxu1 %v5194_v16 }
 0xab2   :  { %4362 = vmatpush3.bf16.msra.mxu1 %v5328_v63 }
 0xab3   :  { %4363 = vmatprep.subr.bf16.mxu1 %v5194_v16 }
 0xab6   :  { %4365 = vmatpush3.bf16.msra.mxu1 %v5336_v10 }
 0xab7   :  { %4398 = vmatprep.subr.bf16.mxu1 %v5194_v16 }
 0xb6c   :  { %v1380_v2 = vpop.f32.mrb[12].mxu1 }
 0xb6d   :  { %v1384_v6 = vadd.f32 %v1380_v2, %v275_v40  ;;  %v3607_v3 = vpop.f32.mrb[13].mxu1 }
 0xb6e   :  { %v285_v3 = vadd.f32 %v5463_v20, %v5407_v38 }
 0xb6f   :  { %4939 = vtanh.f32 %v1384_v6 }
 0xb70   :  { %4941 = vrcp.f32 %v1307_v5 }
 0xb79   :  { %v4940_v31 = vpop.eup %4939 }
 0xb7a   :  { %v1386_v33 = vsub.f32 %v5679_v35, %v4940_v31  ;;  %v4942_v34 = vpop.eup %4941  ;;  %v287_v31 = vadd.f32 %v5465_v21, %v5409_v39 }
 0xb7c   :  { %v5724_v47 = vmul.f32 %v4942_v34, %v1386_v33 }
 0xb7e   :  { %1389 = vst [vmem:[#allocation12 + $0x28] sm:$0xff] %v5724_v47  ;;  %1458 = vmatmul.mubr.f32.vlgmr.msra.gmra.mrb[42].mxu0 %v5724_v47 }
 0xb7f   :  { %4369 = vmatpush1.bf16.msra.mxu0 %v5295_v8  ;;  %1622 = vmatprep.mubr.f32.mxu0 %v5193_v0 }
 0xb80   :  { %4371 = vmatprep.subr.bf16.mxu0 %v5297_v9 }
 0xb83   :  { %4373 = vmatpush1.bf16.msra.mxu0 %v5301_v14 }
 0xb84   :  { %4375 = vmatprep.subr.bf16.mxu0 %v5304_v17 }
 0xb87   :  { %4377 = vmatpush1.bf16.msra.mxu0 %v5307_v28 }
 0xb88   :  { %4379 = vmatprep.subr.bf16.mxu0 %v5310_v32 }
 0xb8b   :  { %4381 = vmatpush1.bf16.msra.mxu0 %v5313_v43 }
 0xb8c   :  { %4383 = vmatprep.subr.bf16.mxu0 %v5316_v46 }
 0xb8f   :  { %4385 = vmatpush1.bf16.msra.mxu0 %v5319_v55 }
 0xb90   :  { %4387 = vmatprep.subr.bf16.mxu0 %v5322_v56 }
 0xb93   :  { %4389 = vmatpush1.bf16.msra.mxu0 %v5325_v62 }
 0xb94   :  { %4391 = vmatprep.subr.bf16.mxu0 %v5328_v63 }
 0xb97   :  { %4393 = vmatpush1.bf16.msra.mxu0 %v5332_v7 }
 0xb98   :  { %4395 = vmatprep.subr.bf16.mxu0 %v5336_v10 }
 0xb9b   :  { %4397 = vmatpush1.bf16.msra.mxu0 %v5342_v13 }
 0xb9c   :  { %4423 = vmatprep.subr.bf16.mxu0 %v5293_v4 }
 0xc51   :  { %v1459_v35 = vpop.f32.mrb[42].mxu0 }
 0xc52   :  { %v1464_v36 = vadd.f32 %v1459_v35, %v279_v58  ;;  %v1461_v40 = vpop.f32.mrb[43].mxu0 }
 0xc53   :  { %v1465_v54 = vadd.f32 %v1461_v40, %v281_v37 }
 0xc54   :  { %v3106_v18 = vmul.f32 -1.442695, %v1464_v36 }
 0xc55   :  { %v3107_v59 = vmul.f32 -1.442695, %v1465_v54 }
 0xc57   :  { %4943 = vpow2.f32 %v3107_v59 }
 0xc61   :  { %v4944_v60 = vpop.eup %4943 }
 0xc62   :  { %v1473_v42 = vadd.f32 1.0, %v4944_v60 }
 0xc64   :  { %4945 = vrcp.f32 %v1473_v42 }
 0xc65   :  { %4947 = vpow2.f32 %v3106_v18 }
 0xc6e   :  { %v4946_v45 = vpop.eup %4945 }
 0xc6f   :  { %v1478_v53 = vmul.f32 %v4946_v45, %v5724_v47  ;;  %v4948_v19 = vpop.eup %4947 }
 0xc70   :  { %v1472_v1 = vadd.f32 1.0, %v4948_v19 }
 0xc71   :  { %3641 = vmatmul.mubr.f32.vlgmr.msra.gmra.mrb[14].mxu1 %v1478_v53 }
 0xc72   :  { %4400 = vmatpush3.bf16.msra.mxu1 %v5293_v4  ;;  %3675 = vmatprep.mubr.msk.f32.mxu1 %vm5195_vm1, %v5193_v0 }
 0xc73   :  { %4401 = vmatprep.subr.bf16.mxu1 %v5194_v16 }
 0xc76   :  { %4403 = vmatpush3.bf16.msra.mxu1 %v5297_v9 }
 0xc77   :  { %4404 = vmatprep.subr.bf16.mxu1 %v5194_v16 }
 0xc7a   :  { %4406 = vmatpush3.bf16.msra.mxu1 %v5304_v17 }
 0xc7b   :  { %4407 = vmatprep.subr.bf16.mxu1 %v5194_v16 }
 0xc7e   :  { %4409 = vmatpush3.bf16.msra.mxu1 %v5310_v32 }
 0xc7f   :  { %4410 = vmatprep.subr.bf16.mxu1 %v5194_v16 }
 0xc82   :  { %4412 = vmatpush3.bf16.msra.mxu1 %v5316_v46 }
 0xc83   :  { %4413 = vmatprep.subr.bf16.mxu1 %v5194_v16 }
 0xc86   :  { %4415 = vmatpush3.bf16.msra.mxu1 %v5322_v56 }
 0xc87   :  { %4416 = vmatprep.subr.bf16.mxu1 %v5194_v16 }
 0xc8a   :  { %4418 = vmatpush3.bf16.msra.mxu1 %v5328_v63 }
 0xc8b   :  { %4419 = vmatprep.subr.bf16.mxu1 %v5194_v16 }
 0xc8e   :  { %4421 = vmatpush3.bf16.msra.mxu1 %v5336_v10 }
 0xc8f   :  { %4454 = vmatprep.subr.bf16.mxu1 %v5194_v16 }
 0xd44   :  { %v1545_v61 = vpop.f32.mrb[14].mxu1 }
 0xd45   :  { %v1549_v57 = vadd.f32 %v1545_v61, %v281_v37  ;;  %v3642_v11 = vpop.f32.mrb[15].mxu1 }
 0xd47   :  { %4949 = vtanh.f32 %v1549_v57  ;;  %v293_v57 = vadd.f32 %v5469_v23, %v5409_v39 }
 0xd48   :  { %4951 = vrcp.f32 %v1472_v1  ;;  %v291_v1 = vadd.f32 %v5467_v22, %v5407_v38 }
 0xd51   :  { %v4950_v12 = vpop.eup %4949 }
 0xd52   :  { %v1551_v2 = vsub.f32 %v5724_v47, %v4950_v12  ;;  %v4952_v5 = vpop.eup %4951 }
 0xd54   :  { %v5769_v6 = vmul.f32 %v4952_v5, %v1551_v2 }
 0xd56   :  { %1554 = vst [vmem:[#allocation12 + $0x30] sm:$0xff] %v5769_v6  ;;  %1623 = vmatmul.mubr.f32.vlgmr.msra.gmra.mrb[44].mxu0 %v5769_v6 }
 0xd57   :  { %4425 = vmatpush1.bf16.msra.mxu0 %v5295_v8  ;;  %1787 = vmatprep.mubr.f32.mxu0 %v5193_v0 }
 0xd58   :  { %4427 = vmatprep.subr.bf16.mxu0 %v5297_v9 }
 0xd5b   :  { %4429 = vmatpush1.bf16.msra.mxu0 %v5301_v14 }
 0xd5c   :  { %4431 = vmatprep.subr.bf16.mxu0 %v5304_v17 }
 0xd5f   :  { %4433 = vmatpush1.bf16.msra.mxu0 %v5307_v28 }
 0xd60   :  { %4435 = vmatprep.subr.bf16.mxu0 %v5310_v32 }
 0xd63   :  { %4437 = vmatpush1.bf16.msra.mxu0 %v5313_v43 }
 0xd64   :  { %4439 = vmatprep.subr.bf16.mxu0 %v5316_v46 }
 0xd67   :  { %4441 = vmatpush1.bf16.msra.mxu0 %v5319_v55 }
 0xd68   :  { %4443 = vmatprep.subr.bf16.mxu0 %v5322_v56 }
 0xd6b   :  { %4445 = vmatpush1.bf16.msra.mxu0 %v5325_v62 }
 0xd6c   :  { %4447 = vmatprep.subr.bf16.mxu0 %v5328_v63 }
 0xd6f   :  { %4449 = vmatpush1.bf16.msra.mxu0 %v5332_v7 }
 0xd70   :  { %4451 = vmatprep.subr.bf16.mxu0 %v5336_v10 }
 0xd73   :  { %4453 = vmatpush1.bf16.msra.mxu0 %v5342_v13 }
 0xd74   :  { %4479 = vmatprep.subr.bf16.mxu0 %v5293_v4 }
 0xe29   :  { %v1624_v33 = vpop.f32.mrb[44].mxu0 }
 0xe2a   :  { %v1629_v34 = vadd.f32 %v1624_v33, %v285_v3  ;;  %v1626_v47 = vpop.f32.mrb[45].mxu0 }
 0xe2b   :  { %v1630_v58 = vadd.f32 %v1626_v47, %v287_v31 }
 0xe2c   :  { %v3108_v20 = vmul.f32 -1.442695, %v1629_v34 }
 0xe2d   :  { %v3109_v37 = vmul.f32 -1.442695, %v1630_v58 }
 0xe2f   :  { %4953 = vpow2.f32 %v3109_v37 }
 0xe39   :  { %v4954_v35 = vpop.eup %4953 }
 0xe3a   :  { %v1638_v36 = vadd.f32 1.0, %v4954_v35 }
 0xe3c   :  { %4955 = vrcp.f32 %v1638_v36 }
 0xe3d   :  { %4957 = vpow2.f32 %v3108_v20 }
 0xe46   :  { %v4956_v40 = vpop.eup %4955 }
 0xe47   :  { %v1643_v54 = vmul.f32 %v4956_v40, %v5769_v6  ;;  %v4958_v21 = vpop.eup %4957 }
 0xe48   :  { %v1637_v60 = vadd.f32 1.0, %v4958_v21  ;;  %v297_v21 = vadd.f32 %v5471_v24, %v5407_v38 }
 0xe49   :  { %3676 = vmatmul.mubr.f32.vlgmr.msra.gmra.mrb[16].mxu1 %v1643_v54 }
 0xe4a   :  { %4456 = vmatpush3.bf16.msra.mxu1 %v5293_v4  ;;  %3710 = vmatprep.mubr.msk.f32.mxu1 %vm5195_vm1, %v5193_v0 }
 0xe4b   :  { %4457 = vmatprep.subr.bf16.mxu1 %v5194_v16 }
 0xe4e   :  { %4459 = vmatpush3.bf16.msra.mxu1 %v5297_v9 }
 0xe4f   :  { %4460 = vmatprep.subr.bf16.mxu1 %v5194_v16 }
 0xe52   :  { %4462 = vmatpush3.bf16.msra.mxu1 %v5304_v17 }
 0xe53   :  { %4463 = vmatprep.subr.bf16.mxu1 %v5194_v16 }
 0xe56   :  { %4465 = vmatpush3.bf16.msra.mxu1 %v5310_v32 }
 0xe57   :  { %4466 = vmatprep.subr.bf16.mxu1 %v5194_v16 }
 0xe5a   :  { %4468 = vmatpush3.bf16.msra.mxu1 %v5316_v46 }
 0xe5b   :  { %4469 = vmatprep.subr.bf16.mxu1 %v5194_v16 }
 0xe5e   :  { %4471 = vmatpush3.bf16.msra.mxu1 %v5322_v56 }
 0xe5f   :  { %4472 = vmatprep.subr.bf16.mxu1 %v5194_v16 }
 0xe62   :  { %4474 = vmatpush3.bf16.msra.mxu1 %v5328_v63 }
 0xe63   :  { %4475 = vmatprep.subr.bf16.mxu1 %v5194_v16 }
 0xe66   :  { %4477 = vmatpush3.bf16.msra.mxu1 %v5336_v10 }
 0xe67   :  { %4510 = vmatprep.subr.bf16.mxu1 %v5194_v16 }
 0xf1c   :  { %v1710_v59 = vpop.f32.mrb[16].mxu1 }
 0xf1d   :  { %v1714_v42 = vadd.f32 %v1710_v59, %v287_v31  ;;  %v3677_v45 = vpop.f32.mrb[17].mxu1  ;;  %v299_v59 = vadd.f32 %v5473_v25, %v5409_v39 }
 0xf1f   :  { %4959 = vtanh.f32 %v1714_v42 }
 0xf20   :  { %4961 = vrcp.f32 %v1637_v60 }
 0xf29   :  { %v4960_v53 = vpop.eup %4959 }
 0xf2a   :  { %v1716_v18 = vsub.f32 %v5769_v6, %v4960_v53  ;;  %v4962_v19 = vpop.eup %4961 }
 0xf2c   :  { %v5814_v61 = vmul.f32 %v4962_v19, %v1716_v18 }
 0xf2e   :  { %1719 = vst [vmem:[#allocation12 + $0x38] sm:$0xff] %v5814_v61  ;;  %1788 = vmatmul.mubr.f32.vlgmr.msra.gmra.mrb[46].mxu0 %v5814_v61 }
 0xf2f   :  { %4481 = vmatpush1.bf16.msra.mxu0 %v5295_v8  ;;  %1952 = vmatprep.mubr.f32.mxu0 %v5193_v0 }
 0xf30   :  { %4483 = vmatprep.subr.bf16.mxu0 %v5297_v9 }
 0xf33   :  { %4485 = vmatpush1.bf16.msra.mxu0 %v5301_v14 }
 0xf34   :  { %4487 = vmatprep.subr.bf16.mxu0 %v5304_v17 }
 0xf37   :  { %4489 = vmatpush1.bf16.msra.mxu0 %v5307_v28 }
 0xf38   :  { %4491 = vmatprep.subr.bf16.mxu0 %v5310_v32 }
 0xf3b   :  { %4493 = vmatpush1.bf16.msra.mxu0 %v5313_v43 }
 0xf3c   :  { %4495 = vmatprep.subr.bf16.mxu0 %v5316_v46 }
 0xf3f   :  { %4497 = vmatpush1.bf16.msra.mxu0 %v5319_v55 }
 0xf40   :  { %4499 = vmatprep.subr.bf16.mxu0 %v5322_v56 }
 0xf43   :  { %4501 = vmatpush1.bf16.msra.mxu0 %v5325_v62 }
 0xf44   :  { %4503 = vmatprep.subr.bf16.mxu0 %v5328_v63 }
 0xf47   :  { %4505 = vmatpush1.bf16.msra.mxu0 %v5332_v7 }
 0xf48   :  { %4507 = vmatprep.subr.bf16.mxu0 %v5336_v10 }
 0xf4b   :  { %4509 = vmatpush1.bf16.msra.mxu0 %v5342_v13 }
 0xf4c   :  { %4535 = vmatprep.subr.bf16.mxu0 %v5293_v4 }
0x1001   :  { %v1789_v11 = vpop.f32.mrb[46].mxu0 }
0x1002   :  { %v1794_v12 = vadd.f32 %v1789_v11, %v291_v1  ;;  %v1791_v2 = vpop.f32.mrb[47].mxu0 }
0x1003   :  { %v1795_v5 = vadd.f32 %v1791_v2, %v293_v57 }
0x1004   :  { %v3110_v22 = vmul.f32 -1.442695, %v1794_v12 }
0x1005   :  { %v3111_v6 = vmul.f32 -1.442695, %v1795_v5 }
0x1007   :  { %4963 = vpow2.f32 %v3111_v6 }
0x1011   :  { %v4964_v3 = vpop.eup %4963 }
0x1012   :  { %v1803_v31 = vadd.f32 1.0, %v4964_v3 }
0x1014   :  { %4965 = vrcp.f32 %v1803_v31 }
0x1015   :  { %4967 = vpow2.f32 %v3110_v22  ;;  %v305_v22 = vadd.f32 %v5477_v27, %v5409_v39 }
0x101e   :  { %v4966_v33 = vpop.eup %4965 }
0x101f   :  { %v1808_v34 = vmul.f32 %v4966_v33, %v5814_v61  ;;  %v4968_v23 = vpop.eup %4967 }
0x1020   :  { %v1802_v58 = vadd.f32 1.0, %v4968_v23 }
0x1021   :  { %3711 = vmatmul.mubr.f32.vlgmr.msra.gmra.mrb[18].mxu1 %v1808_v34  ;;  %v303_v34 = vadd.f32 %v5475_v26, %v5407_v38 }
0x1022   :  { %4512 = vmatpush3.bf16.msra.mxu1 %v5293_v4  ;;  %3745 = vmatprep.mubr.msk.f32.mxu1 %vm5195_vm1, %v5193_v0 }
0x1023   :  { %4513 = vmatprep.subr.bf16.mxu1 %v5194_v16 }
0x1026   :  { %4515 = vmatpush3.bf16.msra.mxu1 %v5297_v9 }
0x1027   :  { %4516 = vmatprep.subr.bf16.mxu1 %v5194_v16 }
0x102a   :  { %4518 = vmatpush3.bf16.msra.mxu1 %v5304_v17 }
0x102b   :  { %4519 = vmatprep.subr.bf16.mxu1 %v5194_v16 }
0x102e   :  { %4521 = vmatpush3.bf16.msra.mxu1 %v5310_v32 }
0x102f   :  { %4522 = vmatprep.subr.bf16.mxu1 %v5194_v16 }
0x1032   :  { %4524 = vmatpush3.bf16.msra.mxu1 %v5316_v46 }
0x1033   :  { %4525 = vmatprep.subr.bf16.mxu1 %v5194_v16 }
0x1036   :  { %4527 = vmatpush3.bf16.msra.mxu1 %v5322_v56 }
0x1037   :  { %4528 = vmatprep.subr.bf16.mxu1 %v5194_v16 }
0x103a   :  { %4530 = vmatpush3.bf16.msra.mxu1 %v5328_v63 }
0x103b   :  { %4531 = vmatprep.subr.bf16.mxu1 %v5194_v16 }
0x103e   :  { %4533 = vmatpush3.bf16.msra.mxu1 %v5336_v10 }
0x103f   :  { %4566 = vmatprep.subr.bf16.mxu1 %v5194_v16 }
0x10f4   :  { %v1875_v47 = vpop.f32.mrb[18].mxu1 }
0x10f5   :  { %v1879_v37 = vadd.f32 %v1875_v47, %v293_v57  ;;  %v3712_v35 = vpop.f32.mrb[19].mxu1 }
0x10f7   :  { %4969 = vtanh.f32 %v1879_v37 }
0x10f8   :  { %4971 = vrcp.f32 %v1802_v58 }
0x1101   :  { %v4970_v36 = vpop.eup %4969 }
0x1102   :  { %v1881_v40 = vsub.f32 %v5814_v61, %v4970_v36  ;;  %v4972_v54 = vpop.eup %4971 }
0x1104   :  { %v5859_v20 = vmul.f32 %v4972_v54, %v1881_v40 }
0x1106   :  { %1884 = vst [vmem:[#allocation12 + $0x40] sm:$0xff] %v5859_v20  ;;  %1953 = vmatmul.mubr.f32.vlgmr.msra.gmra.mrb[48].mxu0 %v5859_v20 }
0x1107   :  { %4537 = vmatpush1.bf16.msra.mxu0 %v5295_v8  ;;  %2117 = vmatprep.mubr.f32.mxu0 %v5193_v0 }
0x1108   :  { %4539 = vmatprep.subr.bf16.mxu0 %v5297_v9 }
0x110b   :  { %4541 = vmatpush1.bf16.msra.mxu0 %v5301_v14 }
0x110c   :  { %4543 = vmatprep.subr.bf16.mxu0 %v5304_v17 }
0x110f   :  { %4545 = vmatpush1.bf16.msra.mxu0 %v5307_v28 }
0x1110   :  { %4547 = vmatprep.subr.bf16.mxu0 %v5310_v32 }
0x1113   :  { %4549 = vmatpush1.bf16.msra.mxu0 %v5313_v43 }
0x1114   :  { %4551 = vmatprep.subr.bf16.mxu0 %v5316_v46 }
0x1117   :  { %4553 = vmatpush1.bf16.msra.mxu0 %v5319_v55 }
0x1118   :  { %4555 = vmatprep.subr.bf16.mxu0 %v5322_v56 }
0x111b   :  { %4557 = vmatpush1.bf16.msra.mxu0 %v5325_v62 }
0x111c   :  { %4559 = vmatprep.subr.bf16.mxu0 %v5328_v63 }
0x111f   :  { %4561 = vmatpush1.bf16.msra.mxu0 %v5332_v7 }
0x1120   :  { %4563 = vmatprep.subr.bf16.mxu0 %v5336_v10 }
0x1123   :  { %4565 = vmatpush1.bf16.msra.mxu0 %v5342_v13 }
0x1124   :  { %4591 = vmatprep.subr.bf16.mxu0 %v5293_v4 }
0x11d9   :  { %v1954_v60 = vpop.f32.mrb[48].mxu0 }
0x11da   :  { %v1959_v42 = vadd.f32 %v1954_v60, %v297_v21  ;;  %v1956_v45 = vpop.f32.mrb[49].mxu0 }
0x11db   :  { %v1960_v53 = vadd.f32 %v1956_v45, %v299_v59 }
0x11dc   :  { %v3112_v24 = vmul.f32 -1.442695, %v1959_v42 }
0x11dd   :  { %v3113_v18 = vmul.f32 -1.442695, %v1960_v53 }
0x11df   :  { %4973 = vpow2.f32 %v3113_v18 }
0x11e9   :  { %v4974_v19 = vpop.eup %4973 }
0x11ea   :  { %v1968_v61 = vadd.f32 1.0, %v4974_v19 }
0x11ec   :  { %4975 = vrcp.f32 %v1968_v61  ;;  %v309_v61 = vadd.f32 %v5479_v29, %v5407_v38 }
0x11ed   :  { %4977 = vpow2.f32 %v3112_v24 }
0x11f6   :  { %v4976_v1 = vpop.eup %4975 }
0x11f7   :  { %v1973_v57 = vmul.f32 %v4976_v1, %v5859_v20  ;;  %v4978_v25 = vpop.eup %4977  ;;  %v311_v1 = vadd.f32 %v5481_v30, %v5409_v39 }
0x11f8   :  { %v1967_v12 = vadd.f32 1.0, %v4978_v25 }
0x11f9   :  { %3746 = vmatmul.mubr.f32.vlgmr.msra.gmra.mrb[20].mxu1 %v1973_v57 }
0x11fa   :  { %4568 = vmatpush3.bf16.msra.mxu1 %v5293_v4  ;;  %3780 = vmatprep.mubr.msk.f32.mxu1 %vm5195_vm1, %v5193_v0 }
0x11fb   :  { %4569 = vmatprep.subr.bf16.mxu1 %v5194_v16 }
0x11fe   :  { %4571 = vmatpush3.bf16.msra.mxu1 %v5297_v9 }
0x11ff   :  { %4572 = vmatprep.subr.bf16.mxu1 %v5194_v16 }
0x1202   :  { %4574 = vmatpush3.bf16.msra.mxu1 %v5304_v17 }
0x1203   :  { %4575 = vmatprep.subr.bf16.mxu1 %v5194_v16 }
0x1206   :  { %4577 = vmatpush3.bf16.msra.mxu1 %v5310_v32 }
0x1207   :  { %4578 = vmatprep.subr.bf16.mxu1 %v5194_v16 }
0x120a   :  { %4580 = vmatpush3.bf16.msra.mxu1 %v5316_v46 }
0x120b   :  { %4581 = vmatprep.subr.bf16.mxu1 %v5194_v16 }
0x120e   :  { %4583 = vmatpush3.bf16.msra.mxu1 %v5322_v56 }
0x120f   :  { %4584 = vmatprep.subr.bf16.mxu1 %v5194_v16 }
0x1212   :  { %4586 = vmatpush3.bf16.msra.mxu1 %v5328_v63 }
0x1213   :  { %4587 = vmatprep.subr.bf16.mxu1 %v5194_v16 }
0x1216   :  { %4589 = vmatpush3.bf16.msra.mxu1 %v5336_v10 }
0x1217   :  { %4622 = vmatprep.subr.bf16.mxu1 %v5194_v16 }
0x12cc   :  { %v2040_v11 = vpop.f32.mrb[20].mxu1 }
0x12cd   :  { %v2044_v2 = vadd.f32 %v2040_v11, %v299_v59  ;;  %v3747_v5 = vpop.f32.mrb[21].mxu1 }
0x12cf   :  { %4979 = vtanh.f32 %v2044_v2 }
0x12d0   :  { %4981 = vrcp.f32 %v1967_v12 }
0x12d9   :  { %v4980_v6 = vpop.eup %4979 }
0x12da   :  { %v2046_v3 = vsub.f32 %v5859_v20, %v4980_v6  ;;  %v4982_v31 = vpop.eup %4981 }
0x12dc   :  { %v5904_v33 = vmul.f32 %v4982_v31, %v2046_v3 }
0x12de   :  { %2049 = vst [vmem:[#allocation12 + $0x48] sm:$0xff] %v5904_v33  ;;  %2118 = vmatmul.mubr.f32.vlgmr.msra.gmra.mrb[50].mxu0 %v5904_v33 }
0x12df   :  { %4593 = vmatpush1.bf16.msra.mxu0 %v5295_v8  ;;  %2282 = vmatprep.mubr.f32.mxu0 %v5193_v0 }
0x12e0   :  { %4595 = vmatprep.subr.bf16.mxu0 %v5297_v9 }
0x12e3   :  { %4597 = vmatpush1.bf16.msra.mxu0 %v5301_v14 }
0x12e4   :  { %4599 = vmatprep.subr.bf16.mxu0 %v5304_v17 }
0x12e7   :  { %4601 = vmatpush1.bf16.msra.mxu0 %v5307_v28 }
0x12e8   :  { %4603 = vmatprep.subr.bf16.mxu0 %v5310_v32 }
0x12eb   :  { %4605 = vmatpush1.bf16.msra.mxu0 %v5313_v43 }
0x12ec   :  { %4607 = vmatprep.subr.bf16.mxu0 %v5316_v46 }
0x12ef   :  { %4609 = vmatpush1.bf16.msra.mxu0 %v5319_v55 }
0x12f0   :  { %4611 = vmatprep.subr.bf16.mxu0 %v5322_v56 }
0x12f3   :  { %4613 = vmatpush1.bf16.msra.mxu0 %v5325_v62 }
0x12f4   :  { %4615 = vmatprep.subr.bf16.mxu0 %v5328_v63 }
0x12f7   :  { %4617 = vmatpush1.bf16.msra.mxu0 %v5332_v7 }
0x12f8   :  { %4619 = vmatprep.subr.bf16.mxu0 %v5336_v10 }
0x12fb   :  { %4621 = vmatpush1.bf16.msra.mxu0 %v5342_v13 }
0x12fc   :  { %4647 = vmatprep.subr.bf16.mxu0 %v5293_v4 }
0x13b1   :  { %v2119_v23 = vpop.f32.mrb[50].mxu0 }
0x13b2   :  { %v2124_v47 = vadd.f32 %v2119_v23, %v303_v34  ;;  %v2121_v58 = vpop.f32.mrb[51].mxu0 }
0x13b3   :  { %v2125_v37 = vadd.f32 %v2121_v58, %v305_v22 }
0x13b4   :  { %v3114_v26 = vmul.f32 -1.442695, %v2124_v47 }
0x13b5   :  { %v3115_v35 = vmul.f32 -1.442695, %v2125_v37 }
0x13b7   :  { %4983 = vpow2.f32 %v3115_v35  ;;  %v315_v35 = vadd.f32 %v5506_v15, %v5407_v38 }
0x13c1   :  { %v4984_v36 = vpop.eup %4983 }
0x13c2   :  { %v2133_v40 = vadd.f32 1.0, %v4984_v36  ;;  %v317_v36 = vadd.f32 %v5508_v41, %v5409_v39 }
0x13c4   :  { %4985 = vrcp.f32 %v2133_v40 }
0x13c5   :  { %4987 = vpow2.f32 %v3114_v26 }
0x13ce   :  { %v4986_v54 = vpop.eup %4985 }
0x13cf   :  { %v2138_v20 = vmul.f32 %v4986_v54, %v5904_v33  ;;  %v4988_v27 = vpop.eup %4987 }
0x13d0   :  { %v2132_v59 = vadd.f32 1.0, %v4988_v27 }
0x13d1   :  { %3781 = vmatmul.mubr.f32.vlgmr.msra.gmra.mrb[22].mxu1 %v2138_v20 }
0x13d2   :  { %4624 = vmatpush3.bf16.msra.mxu1 %v5293_v4  ;;  %3815 = vmatprep.mubr.msk.f32.mxu1 %vm5195_vm1, %v5193_v0 }
0x13d3   :  { %4625 = vmatprep.subr.bf16.mxu1 %v5194_v16 }
0x13d6   :  { %4627 = vmatpush3.bf16.msra.mxu1 %v5297_v9 }
0x13d7   :  { %4628 = vmatprep.subr.bf16.mxu1 %v5194_v16 }
0x13da   :  { %4630 = vmatpush3.bf16.msra.mxu1 %v5304_v17 }
0x13db   :  { %4631 = vmatprep.subr.bf16.mxu1 %v5194_v16 }
0x13de   :  { %4633 = vmatpush3.bf16.msra.mxu1 %v5310_v32 }
0x13df   :  { %4634 = vmatprep.subr.bf16.mxu1 %v5194_v16 }
0x13e2   :  { %4636 = vmatpush3.bf16.msra.mxu1 %v5316_v46 }
0x13e3   :  { %4637 = vmatprep.subr.bf16.mxu1 %v5194_v16 }
0x13e6   :  { %4639 = vmatpush3.bf16.msra.mxu1 %v5322_v56 }
0x13e7   :  { %4640 = vmatprep.subr.bf16.mxu1 %v5194_v16 }
0x13ea   :  { %4642 = vmatpush3.bf16.msra.mxu1 %v5328_v63 }
0x13eb   :  { %4643 = vmatprep.subr.bf16.mxu1 %v5194_v16 }
0x13ee   :  { %4645 = vmatpush3.bf16.msra.mxu1 %v5336_v10 }
0x13ef   :  { %4678 = vmatprep.subr.bf16.mxu1 %v5194_v16 }
0x14a4   :  { %v2205_v21 = vpop.f32.mrb[22].mxu1 }
0x14a5   :  { %v2209_v60 = vadd.f32 %v2205_v21, %v305_v22  ;;  %v3782_v42 = vpop.f32.mrb[23].mxu1 }
0x14a7   :  { %4989 = vtanh.f32 %v2209_v60 }
0x14a8   :  { %4991 = vrcp.f32 %v2132_v59 }
0x14b1   :  { %v4990_v45 = vpop.eup %4989 }
0x14b2   :  { %v2211_v53 = vsub.f32 %v5904_v33, %v4990_v45  ;;  %v4992_v18 = vpop.eup %4991 }
0x14b4   :  { %v5949_v19 = vmul.f32 %v4992_v18, %v2211_v53 }
0x14b6   :  { %2214 = vst [vmem:[#allocation12 + $0x50] sm:$0xff] %v5949_v19  ;;  %2283 = vmatmul.mubr.f32.vlgmr.msra.gmra.mrb[52].mxu0 %v5949_v19 }
0x14b7   :  { %4649 = vmatpush1.bf16.msra.mxu0 %v5295_v8  ;;  %2447 = vmatprep.mubr.f32.mxu0 %v5193_v0 }
0x14b8   :  { %4651 = vmatprep.subr.bf16.mxu0 %v5297_v9 }
0x14bb   :  { %4653 = vmatpush1.bf16.msra.mxu0 %v5301_v14 }
0x14bc   :  { %4655 = vmatprep.subr.bf16.mxu0 %v5304_v17 }
0x14bf   :  { %4657 = vmatpush1.bf16.msra.mxu0 %v5307_v28 }
0x14c0   :  { %4659 = vmatprep.subr.bf16.mxu0 %v5310_v32 }
0x14c3   :  { %4661 = vmatpush1.bf16.msra.mxu0 %v5313_v43 }
0x14c4   :  { %4663 = vmatprep.subr.bf16.mxu0 %v5316_v46 }
0x14c7   :  { %4665 = vmatpush1.bf16.msra.mxu0 %v5319_v55 }
0x14c8   :  { %4667 = vmatprep.subr.bf16.mxu0 %v5322_v56 }
0x14cb   :  { %4669 = vmatpush1.bf16.msra.mxu0 %v5325_v62 }
0x14cc   :  { %4671 = vmatprep.subr.bf16.mxu0 %v5328_v63 }
0x14cf   :  { %4673 = vmatpush1.bf16.msra.mxu0 %v5332_v7 }
0x14d0   :  { %4675 = vmatprep.subr.bf16.mxu0 %v5336_v10 }
0x14d3   :  { %4677 = vmatpush1.bf16.msra.mxu0 %v5342_v13 }
0x14d4   :  { %4703 = vmatprep.subr.bf16.mxu0 %v5293_v4 }
0x1589   :  { %v2284_v57 = vpop.f32.mrb[52].mxu0 }
0x158a   :  { %v2289_v24 = vadd.f32 %v2284_v57, %v309_v61  ;;  %v2286_v25 = vpop.f32.mrb[53].mxu0 }
0x158b   :  { %v2290_v11 = vadd.f32 %v2286_v25, %v311_v1  ;;  %v321_v25 = vadd.f32 %v5510_v44, %v5407_v38 }
0x158c   :  { %v3116_v29 = vmul.f32 -1.442695, %v2289_v24 }
0x158d   :  { %v3117_v12 = vmul.f32 -1.442695, %v2290_v11  ;;  %v323_v11 = vadd.f32 %v5512_v48, %v5409_v39 }
0x158f   :  { %4993 = vpow2.f32 %v3117_v12 }
0x1599   :  { %v4994_v2 = vpop.eup %4993 }
0x159a   :  { %v2298_v5 = vadd.f32 1.0, %v4994_v2 }
0x159c   :  { %4995 = vrcp.f32 %v2298_v5 }
0x159d   :  { %4997 = vpow2.f32 %v3116_v29 }
0x15a6   :  { %v4996_v6 = vpop.eup %4995 }
0x15a7   :  { %v2303_v3 = vmul.f32 %v4996_v6, %v5949_v19  ;;  %v4998_v30 = vpop.eup %4997 }
0x15a8   :  { %v2297_v33 = vadd.f32 1.0, %v4998_v30 }
0x15a9   :  { %3816 = vmatmul.mubr.f32.vlgmr.msra.gmra.mrb[24].mxu1 %v2303_v3 }
0x15aa   :  { %4680 = vmatpush3.bf16.msra.mxu1 %v5293_v4  ;;  %3850 = vmatprep.mubr.msk.f32.mxu1 %vm5195_vm1, %v5193_v0 }
0x15ab   :  { %4681 = vmatprep.subr.bf16.mxu1 %v5194_v16 }
0x15ae   :  { %4683 = vmatpush3.bf16.msra.mxu1 %v5297_v9 }
0x15af   :  { %4684 = vmatprep.subr.bf16.mxu1 %v5194_v16 }
0x15b2   :  { %4686 = vmatpush3.bf16.msra.mxu1 %v5304_v17 }
0x15b3   :  { %4687 = vmatprep.subr.bf16.mxu1 %v5194_v16 }
0x15b6   :  { %4689 = vmatpush3.bf16.msra.mxu1 %v5310_v32 }
0x15b7   :  { %4690 = vmatprep.subr.bf16.mxu1 %v5194_v16 }
0x15ba   :  { %4692 = vmatpush3.bf16.msra.mxu1 %v5316_v46 }
0x15bb   :  { %4693 = vmatprep.subr.bf16.mxu1 %v5194_v16 }
0x15be   :  { %4695 = vmatpush3.bf16.msra.mxu1 %v5322_v56 }
0x15bf   :  { %4696 = vmatprep.subr.bf16.mxu1 %v5194_v16 }
0x15c2   :  { %4698 = vmatpush3.bf16.msra.mxu1 %v5328_v63 }
0x15c3   :  { %4699 = vmatprep.subr.bf16.mxu1 %v5194_v16 }
0x15c6   :  { %4701 = vmatpush3.bf16.msra.mxu1 %v5336_v10 }
0x15c7   :  { %4734 = vmatprep.subr.bf16.mxu1 %v5194_v16 }
0x167c   :  { %v2370_v31 = vpop.f32.mrb[24].mxu1 }
0x167d   :  { %v2374_v34 = vadd.f32 %v2370_v31, %v311_v1  ;;  %v3817_v22 = vpop.f32.mrb[25].mxu1 }
0x167f   :  { %4999 = vtanh.f32 %v2374_v34 }
0x1680   :  { %5001 = vrcp.f32 %v2297_v33 }
0x1689   :  { %v5000_v23 = vpop.eup %4999 }
0x168a   :  { %v2376_v47 = vsub.f32 %v5949_v19, %v5000_v23  ;;  %v5002_v58 = vpop.eup %5001 }
0x168c   :  { %v5994_v37 = vmul.f32 %v5002_v58, %v2376_v47 }
0x168e   :  { %2379 = vst [vmem:[#allocation12 + $0x58] sm:$0xff] %v5994_v37  ;;  %2448 = vmatmul.mubr.f32.vlgmr.msra.gmra.mrb[54].mxu0 %v5994_v37 }
0x168f   :  { %4705 = vmatpush1.bf16.msra.mxu0 %v5295_v8  ;;  %2612 = vmatprep.mubr.f32.mxu0 %v5193_v0 }
0x1690   :  { %4707 = vmatprep.subr.bf16.mxu0 %v5297_v9 }
0x1693   :  { %4709 = vmatpush1.bf16.msra.mxu0 %v5301_v14 }
0x1694   :  { %4711 = vmatprep.subr.bf16.mxu0 %v5304_v17 }
0x1697   :  { %4713 = vmatpush1.bf16.msra.mxu0 %v5307_v28 }
0x1698   :  { %4715 = vmatprep.subr.bf16.mxu0 %v5310_v32 }
0x169b   :  { %4717 = vmatpush1.bf16.msra.mxu0 %v5313_v43 }
0x169c   :  { %4719 = vmatprep.subr.bf16.mxu0 %v5316_v46 }
0x169f   :  { %4721 = vmatpush1.bf16.msra.mxu0 %v5319_v55 }
0x16a0   :  { %4723 = vmatprep.subr.bf16.mxu0 %v5322_v56 }
0x16a3   :  { %4725 = vmatpush1.bf16.msra.mxu0 %v5325_v62 }
0x16a4   :  { %4727 = vmatprep.subr.bf16.mxu0 %v5328_v63 }
0x16a7   :  { %4729 = vmatpush1.bf16.msra.mxu0 %v5332_v7 }
0x16a8   :  { %4731 = vmatprep.subr.bf16.mxu0 %v5336_v10 }
0x16ab   :  { %4733 = vmatpush1.bf16.msra.mxu0 %v5342_v13 }
0x16ac   :  { %4759 = vmatprep.subr.bf16.mxu0 %v5293_v4 }
0x1761   :  { %v2449_v40 = vpop.f32.mrb[54].mxu0 }
0x1762   :  { %v2454_v54 = vadd.f32 %v2449_v40, %v315_v35  ;;  %v2451_v20 = vpop.f32.mrb[55].mxu0 }
0x1763   :  { %v2455_v26 = vadd.f32 %v2451_v20, %v317_v36 }
0x1764   :  { %v3118_v15 = vmul.f32 -1.442695, %v2454_v54 }
0x1765   :  { %v3119_v27 = vmul.f32 -1.442695, %v2455_v26 }
0x1767   :  { %5003 = vpow2.f32 %v3119_v27 }
0x1771   :  { %v5004_v21 = vpop.eup %5003 }
0x1772   :  { %v2463_v59 = vadd.f32 1.0, %v5004_v21 }
0x1774   :  { %5005 = vrcp.f32 %v2463_v59 }
0x1775   :  { %5007 = vpow2.f32 %v3118_v15 }
0x177e   :  { %v5006_v60 = vpop.eup %5005 }
0x177f   :  { %v2468_v42 = vmul.f32 %v5006_v60, %v5994_v37  ;;  %v5008_v41 = vpop.eup %5007 }
0x1780   :  { %v2462_v53 = vadd.f32 1.0, %v5008_v41 }
0x1781   :  { %3851 = vmatmul.mubr.f32.vlgmr.msra.gmra.mrb[26].mxu1 %v2468_v42 }
0x1782   :  { %4736 = vmatpush3.bf16.msra.mxu1 %v5293_v4  ;;  %3885 = vmatprep.mubr.msk.f32.mxu1 %vm5195_vm1, %v5193_v0 }
0x1783   :  { %4737 = vmatprep.subr.bf16.mxu1 %v5194_v16 }
0x1786   :  { %4739 = vmatpush3.bf16.msra.mxu1 %v5297_v9 }
0x1787   :  { %4740 = vmatprep.subr.bf16.mxu1 %v5194_v16 }
0x178a   :  { %4742 = vmatpush3.bf16.msra.mxu1 %v5304_v17 }
0x178b   :  { %4743 = vmatprep.subr.bf16.mxu1 %v5194_v16 }
0x178e   :  { %4745 = vmatpush3.bf16.msra.mxu1 %v5310_v32 }
0x178f   :  { %4746 = vmatprep.subr.bf16.mxu1 %v5194_v16 }
0x1792   :  { %4748 = vmatpush3.bf16.msra.mxu1 %v5316_v46 }
0x1793   :  { %4749 = vmatprep.subr.bf16.mxu1 %v5194_v16 }
0x1796   :  { %4751 = vmatpush3.bf16.msra.mxu1 %v5322_v56 }
0x1797   :  { %4752 = vmatprep.subr.bf16.mxu1 %v5194_v16 }
0x179a   :  { %4754 = vmatpush3.bf16.msra.mxu1 %v5328_v63 }
0x179b   :  { %4755 = vmatprep.subr.bf16.mxu1 %v5194_v16 }
0x179e   :  { %4757 = vmatpush3.bf16.msra.mxu1 %v5336_v10 }
0x179f   :  { %4790 = vmatprep.subr.bf16.mxu1 %v5194_v16 }
0x1854   :  { %v2535_v45 = vpop.f32.mrb[26].mxu1 }
0x1855   :  { %v2539_v18 = vadd.f32 %v2535_v45, %v317_v36  ;;  %v3852_v19 = vpop.f32.mrb[27].mxu1 }
0x1857   :  { %5009 = vtanh.f32 %v2539_v18 }
0x1858   :  { %5011 = vrcp.f32 %v2462_v53 }
0x1861   :  { %v5010_v61 = vpop.eup %5009 }
0x1862   :  { %v2541_v1 = vsub.f32 %v5994_v37, %v5010_v61  ;;  %v5012_v57 = vpop.eup %5011 }
0x1864   :  { %v6039_v24 = vmul.f32 %v5012_v57, %v2541_v1 }
0x1866   :  { %2544 = vst [vmem:[#allocation12 + $0x60] sm:$0xff] %v6039_v24  ;;  %2613 = vmatmul.mubr.f32.vlgmr.msra.gmra.mrb[56].mxu0 %v6039_v24 }
0x1867   :  { %4761 = vmatpush1.bf16.msra.mxu0 %v5295_v8  ;;  %2777 = vmatprep.mubr.f32.mxu0 %v5193_v0 }
0x1868   :  { %4763 = vmatprep.subr.bf16.mxu0 %v5297_v9 }
0x186b   :  { %4765 = vmatpush1.bf16.msra.mxu0 %v5301_v14 }
0x186c   :  { %4767 = vmatprep.subr.bf16.mxu0 %v5304_v17 }
0x186f   :  { %4769 = vmatpush1.bf16.msra.mxu0 %v5307_v28 }
0x1870   :  { %4771 = vmatprep.subr.bf16.mxu0 %v5310_v32 }
0x1873   :  { %4773 = vmatpush1.bf16.msra.mxu0 %v5313_v43 }
0x1874   :  { %4775 = vmatprep.subr.bf16.mxu0 %v5316_v46 }
0x1877   :  { %4777 = vmatpush1.bf16.msra.mxu0 %v5319_v55 }
0x1878   :  { %4779 = vmatprep.subr.bf16.mxu0 %v5322_v56 }
0x187b   :  { %4781 = vmatpush1.bf16.msra.mxu0 %v5325_v62 }
0x187c   :  { %4783 = vmatprep.subr.bf16.mxu0 %v5328_v63 }
0x187f   :  { %4785 = vmatpush1.bf16.msra.mxu0 %v5332_v7 }
0x1880   :  { %4787 = vmatprep.subr.bf16.mxu0 %v5336_v10 }
0x1883   :  { %4789 = vmatpush1.bf16.msra.mxu0 %v5342_v13 }
0x1884   :  { %4815 = vmatprep.subr.bf16.mxu0 %v5293_v4 }
0x1939   :  { %v2614_v12 = vpop.f32.mrb[56].mxu0 }
0x193a   :  { %v2619_v2 = vadd.f32 %v2614_v12, %v321_v25  ;;  %v2616_v5 = vpop.f32.mrb[57].mxu0 }
0x193b   :  { %v2620_v6 = vadd.f32 %v2616_v5, %v323_v11 }
0x193c   :  { %v3120_v44 = vmul.f32 -1.442695, %v2619_v2 }
0x193d   :  { %v3121_v3 = vmul.f32 -1.442695, %v2620_v6 }
0x193f   :  { %5013 = vpow2.f32 %v3121_v3 }
0x1949   :  { %v5014_v29 = vpop.eup %5013 }
0x194a   :  { %v2628_v30 = vadd.f32 1.0, %v5014_v29 }
0x194c   :  { %5015 = vrcp.f32 %v2628_v30 }
0x194d   :  { %5017 = vpow2.f32 %v3120_v44 }
0x1956   :  { %v5016_v31 = vpop.eup %5015 }
0x1957   :  { %v2633_v33 = vmul.f32 %v5016_v31, %v6039_v24  ;;  %v5018_v48 = vpop.eup %5017 }
0x1958   :  { %v2627_v22 = vadd.f32 1.0, %v5018_v48 }
0x1959   :  { %3886 = vmatmul.mubr.f32.vlgmr.msra.gmra.mrb[28].mxu1 %v2633_v33 }
0x195a   :  { %4792 = vmatpush3.bf16.msra.mxu1 %v5293_v4  ;;  %3920 = vmatprep.mubr.msk.f32.mxu1 %vm5195_vm1, %v5193_v0 }
0x195b   :  { %4793 = vmatprep.subr.bf16.mxu1 %v5194_v16 }
0x195e   :  { %4795 = vmatpush3.bf16.msra.mxu1 %v5297_v9 }
0x195f   :  { %4796 = vmatprep.subr.bf16.mxu1 %v5194_v16 }
0x1962   :  { %4798 = vmatpush3.bf16.msra.mxu1 %v5304_v17 }
0x1963   :  { %4799 = vmatprep.subr.bf16.mxu1 %v5194_v16 }
0x1966   :  { %4801 = vmatpush3.bf16.msra.mxu1 %v5310_v32 }
0x1967   :  { %4802 = vmatprep.subr.bf16.mxu1 %v5194_v16 }
0x196a   :  { %4804 = vmatpush3.bf16.msra.mxu1 %v5316_v46 }
0x196b   :  { %4805 = vmatprep.subr.bf16.mxu1 %v5194_v16 }
0x196e   :  { %4807 = vmatpush3.bf16.msra.mxu1 %v5322_v56 }
0x196f   :  { %4808 = vmatprep.subr.bf16.mxu1 %v5194_v16 }
0x1972   :  { %4810 = vmatpush3.bf16.msra.mxu1 %v5328_v63 }
0x1973   :  { %4811 = vmatprep.subr.bf16.mxu1 %v5194_v16 }
0x1976   :  { %4813 = vmatpush3.bf16.msra.mxu1 %v5336_v10 }
0x1977   :  { %4846 = vmatprep.subr.bf16.mxu1 %v5194_v16 }
0x1a2c   :  { %v2700_v34 = vpop.f32.mrb[28].mxu1 }
0x1a2d   :  { %v2704_v23 = vadd.f32 %v2700_v34, %v323_v11  ;;  %v3887_v47 = vpop.f32.mrb[29].mxu1 }
0x1a2f   :  { %5019 = vtanh.f32 %v2704_v23 }
0x1a30   :  { %5021 = vrcp.f32 %v2627_v22 }
0x1a39   :  { %v5020_v58 = vpop.eup %5019 }
0x1a3a   :  { %v2706_v37 = vsub.f32 %v6039_v24, %v5020_v58  ;;  %v5022_v35 = vpop.eup %5021 }
0x1a3c   :  { %v2707_v36 = vmul.f32 %v5022_v35, %v2706_v37 }
0x1a3e   :  { %2709 = vst [vmem:[#allocation12 + $0x68] sm:$0xff] %v2707_v36  ;;  %2778 = vmatmul.mubr.f32.vlgmr.msra.gmra.mrb[58].mxu0 %v2707_v36 }
0x1a3f   :  { %4817 = vmatpush1.bf16.msra.mxu0 %v5295_v8  ;;  %2942 = vmatprep.mubr.f32.mxu0 %v5193_v0  ;;  %v327_v8 = vadd.f32 %v5514_v49, %v5407_v38 }
0x1a40   :  { %4819 = vmatprep.subr.bf16.mxu0 %v5297_v9 }
0x1a43   :  { %4821 = vmatpush1.bf16.msra.mxu0 %v5301_v14  ;;  %v329_v14 = vadd.f32 %v5516_v50, %v5409_v39 }
0x1a44   :  { %4823 = vmatprep.subr.bf16.mxu0 %v5304_v17 }
0x1a47   :  { %4825 = vmatpush1.bf16.msra.mxu0 %v5307_v28 }
0x1a48   :  { %4827 = vmatprep.subr.bf16.mxu0 %v5310_v32 }
0x1a4b   :  { %4829 = vmatpush1.bf16.msra.mxu0 %v5313_v43 }
0x1a4c   :  { %4831 = vmatprep.subr.bf16.mxu0 %v5316_v46 }
0x1a4f   :  { %4833 = vmatpush1.bf16.msra.mxu0 %v5319_v55 }
0x1a50   :  { %4835 = vmatprep.subr.bf16.mxu0 %v5322_v56 }
0x1a53   :  { %4837 = vmatpush1.bf16.msra.mxu0 %v5325_v62 }
0x1a54   :  { %4839 = vmatprep.subr.bf16.mxu0 %v5328_v63 }
0x1a57   :  { %4841 = vmatpush1.bf16.msra.mxu0 %v5332_v7 }
0x1a58   :  { %4843 = vmatprep.subr.bf16.mxu0 %v5336_v10 }
0x1a5b   :  { %4845 = vmatpush1.bf16.msra.mxu0 %v5342_v13 }
0x1b11   :  { %v2779_v28 = vpop.f32.mrb[58].mxu0 }
0x1b12   :  { %v2784_v43 = vadd.f32 %v2779_v28, %v327_v8  ;;  %v2781_v55 = vpop.f32.mrb[59].mxu0 }
0x1b13   :  { %v2785_v40 = vadd.f32 %v2781_v55, %v329_v14 }
0x1b15   :  { %v3123_v54 = vmul.f32 -1.442695, %v2785_v40 }
0x1b17   :  { %5023 = vpow2.f32 %v3123_v54 }
0x1b21   :  { %v5024_v62 = vpop.eup %5023 }
0x1b22   :  { %v2793_v20 = vadd.f32 1.0, %v5024_v62 }
0x1b24   :  { %5025 = vrcp.f32 %v2793_v20 }
0x1b2e   :  { %v5026_v7 = vpop.eup %5025 }
0x1b2f   :  { %v2798_v26 = vmul.f32 %v5026_v7, %v2707_v36 }
0x1b31   :  { %3921 = vmatmul.mubr.f32.vlgmr.msra.gmra.mrb[30].mxu1 %v2798_v26 }
0x1b32   :  { %4848 = vmatpush3.bf16.msra.mxu1 %v5293_v4  ;;  %3955 = vmatprep.mubr.msk.f32.mxu1 %vm5195_vm1, %v5193_v0  ;;  %v3122_v0 = vmul.f32 -1.442695, %v2784_v43 }
0x1b33   :  { %4849 = vmatprep.subr.bf16.mxu1 %v5194_v16 }
0x1b34   :  { %5027 = vpow2.f32 %v3122_v0 }
0x1b36   :  { %4851 = vmatpush3.bf16.msra.mxu1 %v5297_v9 }
0x1b37   :  { %4852 = vmatprep.subr.bf16.mxu1 %v5194_v16 }
0x1b3a   :  { %4854 = vmatpush3.bf16.msra.mxu1 %v5304_v17 }
0x1b3b   :  { %4855 = vmatprep.subr.bf16.mxu1 %v5194_v16 }
0x1b3e   :  { %4857 = vmatpush3.bf16.msra.mxu1 %v5310_v32  ;;  %v5028_v4 = vpop.eup %5027 }
0x1b3f   :  { %4858 = vmatprep.subr.bf16.mxu1 %v5194_v16  ;;  %v2792_v17 = vadd.f32 1.0, %v5028_v4 }
0x1b42   :  { %4860 = vmatpush3.bf16.msra.mxu1 %v5316_v46 }
0x1b43   :  { %4861 = vmatprep.subr.bf16.mxu1 %v5194_v16 }
0x1b46   :  { %4863 = vmatpush3.bf16.msra.mxu1 %v5322_v56 }
0x1b47   :  { %4864 = vmatprep.subr.bf16.mxu1 %v5194_v16 }
0x1b4a   :  { %4866 = vmatpush3.bf16.msra.mxu1 %v5328_v63  ;;  %v333_v63 = vadd.f32 %v5518_v51, %v5407_v38 }
0x1b4b   :  { %4867 = vmatprep.subr.bf16.mxu1 %v5194_v16 }
0x1b4e   :  { %4869 = vmatpush3.bf16.msra.mxu1 %v5336_v10  ;;  %v335_v10 = vadd.f32 %v5520_v52, %v5409_v39 }
0x1c04   :  { %v2865_v9 = vpop.f32.mrb[30].mxu1 }
0x1c05   :  { %v2869_v32 = vadd.f32 %v2865_v9, %v329_v14  ;;  %v3922_v13 = vpop.f32.mrb[31].mxu1 }
0x1c07   :  { %5029 = vtanh.f32 %v2869_v32 }
0x1c08   :  { %5031 = vrcp.f32 %v2792_v17 }
0x1c11   :  { %v5030_v46 = vpop.eup %5029 }
0x1c12   :  { %v2871_v49 = vsub.f32 %v2707_v36, %v5030_v46  ;;  %v5032_v56 = vpop.eup %5031 }
0x1c14   :  { %v2872_v50 = vmul.f32 %v5032_v56, %v2871_v49 }
0x1c16   :  { %2874 = vst [vmem:[#allocation12 + $0x70] sm:$0xff] %v2872_v50  ;;  %2943 = vmatmul.mubr.f32.vlgmr.msra.gmra.mrb[60].mxu0 %v2872_v50 }
0x1ce9   :  { %v2944_v16 = vpop.f32.mrb[60].mxu0 }
0x1cea   :  { %v2949_v27 = vadd.f32 %v2944_v16, %v333_v63  ;;  %v2946_v21 = vpop.f32.mrb[61].mxu0 }
0x1ceb   :  { %v2950_v59 = vadd.f32 %v2946_v21, %v335_v10 }
0x1cec   :  { %v3124_v53 = vmul.f32 -1.442695, %v2949_v27 }
0x1ced   :  { %v3125_v60 = vmul.f32 -1.442695, %v2950_v59 }
0x1cef   :  { %5033 = vpow2.f32 %v3125_v60 }
0x1cf9   :  { %v5034_v42 = vpop.eup %5033 }
0x1cfa   :  { %v2958_v15 = vadd.f32 1.0, %v5034_v42 }
0x1cfc   :  { %5035 = vrcp.f32 %v2958_v15 }
0x1cfd   :  { %5037 = vpow2.f32 %v3124_v53 }
0x1d06   :  { %v5036_v41 = vpop.eup %5035 }
0x1d07   :  { %v2963_v45 = vmul.f32 %v5036_v41, %v2872_v50  ;;  %v5038_v18 = vpop.eup %5037 }
0x1d08   :  { %v2957_v38 = vadd.f32 1.0, %v5038_v18 }
0x1d09   :  { %3956 = vmatmul.mubr.f32.vlgmr.msra.gmra.mrb[32].mxu1 %v2963_v45 }
0x1ddc   :  { %v3030_v19 = vpop.f32.mrb[32].mxu1 }
0x1ddd   :  { %v3034_v51 = vadd.f32 %v3030_v19, %v335_v10  ;;  %v3957_v61 = vpop.f32.mrb[33].mxu1 }
0x1ddf   :  { %5039 = vtanh.f32 %v3034_v51 }
0x1de0   :  { %5041 = vrcp.f32 %v2957_v38 }
0x1de9   :  { %v5040_v39 = vpop.eup %5039 }
0x1dea   :  { %v3036_v52 = vsub.f32 %v2872_v50, %v5040_v39  ;;  %v5042_v1 = vpop.eup %5041 }
0x1dec   :  { %v3037_v57 = vmul.f32 %v5042_v1, %v3036_v52 }
0x1dee   :  { %3039 = vst [vmem:[#allocation12 + $0x78] sm:$0xff] %v3037_v57  ;;  %3044 = vst [vmem:[#allocation13] sm:$0xff] %v3037_v57 }
0x1def   :  { %5142 = shalt.err (!%p5139_p8)
}
0x1df0   :  { %s5143_s7 = scalar_lea.hbm %s6157_s5, 2048 }
0x1df1   :  { %p5144_p9 = scmp.ne.s32.totalorder %s6157_s5, %s5143_s7  ;;  %p5147_p10 = scmp.lt.u32.totalorder %s5143_s7, %s6157_s5 }
0x1df3   :  { %p5149_p11 = pnand %p5147_p10, %p5144_p9 }
0x1df5   :  { %5152 = shalt.err (!%p5149_p11)
}
0x1df6   :  { %3056 = dma.vmem_to_hbm [thread:$0]  %s3051_s25, 2048, %s6157_s5, [#allocation6], %s5187_s1, %s5187_s1, %s5188_s19  }
0x1df7   :  { %s5153_s12 = scalar_lea.vmem %s3064_s27, 128  ;;  %p5158_p13 = scmp.lt.s32.totalorder %s3064_s27, %s3064_s27 }
0x1df8   :  { %p5154_p12 = scmp.ne.s32.totalorder %s3064_s27, %s5153_s12  ;;  %p5159_p0 = scmp.lt.s32.totalorder %s5153_s12, %s5153_s12 }
0x1dfa   :  { %p5160_p1 = por %p5159_p0, %p5158_p13 }
0x1dfc   :  { %p5161_p2 = pnand %p5160_p1, %p5154_p12 }
0x1dfe   :  { %5164 = shalt.err (!%p5161_p2)
}
0x1dff   :  { %s5165_s15 = scalar_lea.hbm %s6158_s6, 128 }
0x1e00   :  { %p5166_p3 = scmp.ne.s32.totalorder %s6158_s6, %s5165_s15  ;;  %p5169_p4 = scmp.lt.u32.totalorder %s5165_s15, %s6158_s6 }
0x1e02   :  { %p5171_p5 = pnand %p5169_p4, %p5166_p3 }
0x1e04   :  { %5174 = shalt.err (!%p5171_p5)
}
0x1e05   :  { %3066 = dma.vmem_to_hbm [thread:$0]  %s3064_s27, 128, %s6158_s6, [#allocation14]  }
0x1e06   :  { %5181 = dma.done.wait [#allocation6], 2048  }
0x1e07   :  { %5182 = vsyncadd [#allocation6], 4294965248 }
0x1e08   :  { %5183 = dma.done.wait [#allocation14], 128  }
0x1e09   :  { %5184 = vsyncadd [#allocation14], 4294967168 }
0x1e0a   :  { %3073 = vsyncpa [#allocation5], 1 }
0x1e0b   :  { %3074 = vsyncpa [#allocation8], 1 }
0x1e0c   :  { %3075 = vsyncpa [#allocation11], 1 }
0x1e0d   :  { %3076 = vsyncpa [#allocation6], 1 }
0x1e0e   :  { %3077 = vsyncpa [#allocation14], 1 }

</bundles_post_ra>
